<compile_context>
chip_gen: v6e
topology: v6e:2x2x1
jax: 0.10.0
libtpu: 0.0.40
codegen_flags: <defaults>
</compile_context>

<pallas_src>
import jax
import jax.numpy as jnp
from jax.experimental import pallas as pl
from jax.experimental.pallas import tpu as pltpu


# -------------------- small helpers --------------------

def _round_up(x, m):
    return ((x + m - 1) // m) * m


def _choose_tm(m, ns):
    """Pick the per-step row tile (in points).

    Caps tm*ns (matmul rows per grid step) so f32 intermediates stay a few MiB
    (safe even for v7x's 64 MiB VMEM), while keeping tiles big enough to
    amortize the ~0.35us/step pipeline overhead and feed the 256-wide MXU,
    and keeping >=2 grid steps on the "parallel" axis for megacore.
    """
    max_tm = max(8, (2048 // ns) // 8 * 8)
    if m <= 8:
        return m
    tm = min(max_tm, max(8, ((m + 1) // 2) // 8 * 8))
    return tm


# -------------------- Pallas kernels (hot path) --------------------

def _sa_mlp_kernel(g_ref, w1_ref, b1_ref, w2_ref, b2_ref, w3_ref, b3_ref,
                   o_ref):
    """Fused SharedMLP (3x (1x1 conv -> folded BN -> ReLU)) + max over nsample.

    g_ref: (tm*ns, Cin) bf16 (flattened grouped points)
    w_l:   (Cin_l, Cpad)  bf16  -- pre-transposed, BN scale folded in
    b_l:   (1, Cpad)      f32   -- folded BN bias
    o_ref: (tm, Cpad)     f32   -- lane-dense (Cpad multiple of 128)
    """
    tm, cpad = o_ref.shape
    ns = g_ref.shape[0] // tm

    x = g_ref[...]                                                # bf16
    # layer 1 (K = true grouped Cin, unpadded)
    y = jnp.dot(x, w1_ref[...], preferred_element_type=jnp.float32)
    x = jnp.maximum(y + b1_ref[...], 0.0)                         # f32 epilogue
    # layer 2
    y = jnp.dot(x.astype(jnp.bfloat16), w2_ref[...],
                preferred_element_type=jnp.float32)
    x = jnp.maximum(y + b2_ref[...], 0.0)
    # layer 3
    y = jnp.dot(x.astype(jnp.bfloat16), w3_ref[...],
                preferred_element_type=jnp.float32)
    x = jnp.maximum(y + b3_ref[...], 0.0)
    # max-pool over the nsample axis (lane dim stays 128-dense)
    o_ref[...] = jnp.max(x.reshape(tm, ns, cpad), axis=1)


def sa_mlp_maxpool(g, kparams, c_out):
    """g: (M, nsample, Cin) f32 -> (M, c_out) f32.  M = B * npoint."""
    M, ns, cin = g.shape
    (w1, b1), (w2, b2), (w3, b3) = kparams
    cpad = w3.shape[1]

    tm = _choose_tm(M, ns)
    n_blocks = -(-M // tm)
    Mp = n_blocks * tm
    if Mp != M:                                   # pad tail block (sliced off below)
        g = jnp.pad(g, ((0, Mp - M), (0, 0), (0, 0)))
    # flatten in the wrapper (free in XLA) -> clean 2-D vreg layout in-kernel,
    # bf16 halves the HBM->VMEM bytes for the grouped tensor.
    g2d = g.reshape(Mp * ns, cin).astype(jnp.bfloat16)

    def const2(arr):  # untiled 2-D parameter, same block every grid step
        return pl.BlockSpec(arr.shape, lambda i: (0, 0))

    out = pl.pallas_call(
        _sa_mlp_kernel,
        out_shape=jax.ShapeDtypeStruct((Mp, cpad), jnp.float32),
        grid=(n_blocks,),
        in_specs=[pl.BlockSpec((tm * ns, cin), lambda i: (i, 0)),
                  const2(w1), const2(b1),
                  const2(w2), const2(b2),
                  const2(w3), const2(b3)],
        out_specs=pl.BlockSpec((tm, cpad), lambda i: (i, 0)),
        compiler_params=pltpu.CompilerParams(
            dimension_semantics=("parallel",)),
    )(g2d, w1, b1, w2, b2, w3, b3)
    return out[:M, :c_out]


def _gap_kernel(f_ref, o_ref):
    """AdaptiveAvgPool1d(1) on channel-last data: mean over the point axis."""
    k = f_ref.shape[1]
    o_ref[...] = jnp.sum(f_ref[...], axis=1) * (1.0 / k)


def global_avg_pool(features_bkd):
    """(B, K, D) channel-last -> (B, D, 1) (PyTorch gap output convention)."""
    B, K, D = features_bkd.shape
    pooled = pl.pallas_call(
        _gap_kernel,
        out_shape=jax.ShapeDtypeStruct((B, D), jnp.float32),
    )(features_bkd)
    return pooled.reshape(B, D, 1)


# -------------------- plain-JAX glue (sampling / grouping) --------------------

def furthest_point_sample(xyz, npoint):
    """xyz: (B, N, 3) -> (B, npoint) int32. Matches CUDA FPS (starts at index 0)."""
    B, N, _ = xyz.shape
    barange = jnp.arange(B)

    def body(i, state):
        inds, dists, farthest = state
        inds = inds.at[:, i].set(farthest)
        centroid = xyz[barange, farthest]                        # (B, 3)
        d = jnp.sum((xyz - centroid[:, None, :]) ** 2, axis=-1)  # (B, N)
        dists = jnp.minimum(dists, d)
        farthest = jnp.argmax(dists, axis=-1).astype(jnp.int32)
        return inds, dists, farthest

    inds0 = jnp.zeros((B, npoint), jnp.int32)
    dists0 = jnp.full((B, N), 1e10, jnp.float32)
    far0 = jnp.zeros((B,), jnp.int32)
    inds, _, _ = jax.lax.fori_loop(0, npoint, body, (inds0, dists0, far0))
    return inds


def ball_query(radius, nsample, xyz, new_xyz):
    """First `nsample` indices within `radius`, padded with the first hit (0 if none)."""
    B, N, _ = xyz.shape
    d2 = jnp.sum((new_xyz[:, :, None, :] - xyz[:, None, :, :]) ** 2, axis=-1)  # (B,S,N)
    in_ball = d2 < (radius * radius)
    cand = jnp.where(in_ball, jnp.arange(N)[None, None, :], N)
    ordered = jnp.sort(cand, axis=-1)[..., :nsample]                            # (B,S,K)
    first = ordered[..., :1]
    first = jnp.where(first == N, 0, first)
    return jnp.where(ordered == N, first, ordered).astype(jnp.int32)


def sa_module(xyz, features, *, npoint, radius, nsample, kparams, c_out,
              use_xyz=True, normalize_xyz=True):
    """One PointnetSAModuleVotes (single-scale grouping, max pooling)."""
    B, N, _ = xyz.shape
    fps_inds = furthest_point_sample(xyz, npoint)                # (B, S)
    bidx = jnp.arange(B)[:, None]
    new_xyz = xyz[bidx, fps_inds]                                # (B, S, 3)

    idx = ball_query(radius, nsample, xyz, new_xyz)              # (B, S, K)
    bidx2 = jnp.arange(B)[:, None, None]
    grouped_xyz = xyz[bidx2, idx] - new_xyz[:, :, None, :]       # (B, S, K, 3)
    if normalize_xyz:
        grouped_xyz = grouped_xyz / radius

    if features is not None:
        grouped_feats = features[bidx2, idx]                     # (B, S, K, C)
        grouped = (jnp.concatenate([grouped_xyz, grouped_feats], axis=-1)
                   if use_xyz else grouped_feats)
    else:
        grouped = grouped_xyz

    # TODO(synk): fuse this gather into the Pallas kernel (scalar-prefetched idx
    # in SMEM + manual DMA from HBM) to avoid the extra HBM round trip for
    # `grouped`; at toy sizes the XLA vectorized gather is cheaper/safer.
    g = grouped.reshape(B * npoint, nsample, grouped.shape[-1])
    out = sa_mlp_maxpool(g, kparams, c_out)                      # (B*S, c_out)
    return new_xyz, out.reshape(B, npoint, c_out), fps_inds


def pointnet2_backbone(pointcloud, all_kparams, cfg):
    """pointcloud: (B, N, 3 + input_feature_dim) -> (xyz (B,K,3), features (B,D,1))."""
    xyz = pointcloud[..., 0:3]
    features = pointcloud[..., 3:] if pointcloud.shape[-1] > 3 else None  # (B,N,C)

    for layer, kparams in zip(cfg["layers"], all_kparams):
        xyz, features, _ = sa_module(
            xyz, features,
            npoint=layer["npoint"], radius=layer["radius"],
            nsample=layer["nsample"], kparams=kparams,
            c_out=layer["mlp"][-1],
            use_xyz=cfg["use_xyz"], normalize_xyz=cfg["normalize_xyz"])

    if cfg["use_pooling"]:
        feats = global_avg_pool(features)                        # (B, D, 1)
    else:
        feats = jnp.transpose(features, (0, 2, 1))               # (B, D, K)
    return xyz, feats


# -------------------- deterministic parameter init / folding --------------------

def init_sa_params(key, mlp_channels, eps=1e-5):
    """mlp_channels: [c0, c1, c2, c3] (c0 already includes +3 if use_xyz).

    Returns raw per-layer (w (cout,cin), scale (1,cout), bias (1,cout)) where
    scale/bias are the folded eval-mode BatchNorm2d affine."""
    raw = []
    for l in range(3):
        cin, cout = mlp_channels[l], mlp_channels[l + 1]
        key, kw = jax.random.split(key)
        w = 0.1 * jax.random.normal(kw, (cout, cin), jnp.float32)  # Conv2d 1x1, no bias
        gamma = jnp.ones((1, cout), jnp.float32)                   # BN eval-mode stats
        beta = jnp.zeros((1, cout), jnp.float32)
        running_mean = jnp.zeros((1, cout), jnp.float32)
        running_var = jnp.ones((1, cout), jnp.float32)
        scale = gamma / jnp.sqrt(running_var + eps)
        bias = beta - running_mean * scale
        raw.append((w, scale, bias))
    return raw, key


def fold_and_pad_params(raw, cpad):
    """Pre-transpose to (Cin, Cout), fold BN scale into the weights, zero-pad
    Cout to `cpad` (lane-dense).  Layer 0 keeps its true Cin (grouped-tensor
    channels stay unpadded); deeper layers take the cpad-wide activations."""
    out = []
    for l, (w, s, b) in enumerate(raw):
        cout, cin = w.shape
        wt = w.T * s                                    # (cin, cout), BN scale folded
        cin_p = cin if l == 0 else cpad
        wp = jnp.zeros((cin_p, cpad), jnp.float32).at[:cin, :cout].set(wt)
        bp = jnp.zeros((1, cpad), jnp.float32).at[:, :cout].set(b)
        out.append((wp.astype(jnp.bfloat16), bp))
    return out


if __name__ == "__main__":
    B, N, input_feature_dim = 2, 64, 3
    cfg = dict(
        use_xyz=True, normalize_xyz=True, use_pooling=True,
        layers=[
            dict(npoint=32, radius=0.4, nsample=16, mlp=[input_feature_dim, 16, 16, 32]),
            dict(npoint=16, radius=0.8, nsample=8,  mlp=[32, 32, 32, 64]),
            dict(npoint=8,  radius=1.2, nsample=8,  mlp=[64, 64, 64, 128]),
        ],
    )

    # Deterministic synthetic parameters (PointnetSAModuleVotes adds +3 to mlp[0] if use_xyz).
    pkey = jax.random.PRNGKey(1)
    all_kparams = []
    for layer in cfg["layers"]:
        mlp = list(layer["mlp"])
        if cfg["use_xyz"]:
            mlp[0] += 3
        raw, pkey = init_sa_params(pkey, mlp)
        cpad = max(128, _round_up(max(mlp[1:]), 128))
        all_kparams.append(fold_and_pad_params(raw, cpad))

    # Deterministic input point cloud (B, N, 3 + input_feature_dim).
    pointcloud = jax.random.normal(
        jax.random.PRNGKey(0), (B, N, 3 + input_feature_dim), jnp.float32)

    fwd = jax.jit(lambda pc, params: pointnet2_backbone(pc, params, cfg))
    xyz_out, feat_out = jax.block_until_ready(fwd(pointcloud, all_kparams))

    assert xyz_out.shape == (B, cfg["layers"][-1]["npoint"], 3), xyz_out.shape
    assert feat_out.shape == (B, cfg["layers"][-1]["mlp"][-1], 1), feat_out.shape
    assert xyz_out.dtype == jnp.float32 and feat_out.dtype == jnp.float32
    assert bool(jnp.all(jnp.isfinite(feat_out)))
    print("KERNEL_OK")
</pallas_src>

<mosaic_0001>
module attributes {stable_mosaic.version = 11 : i64} {
  func.func @_sa_mlp_kernel(%arg0: i32, %arg1: memref<512x6xbf16, #tpu.memory_space<vmem>>, %arg2: memref<6x128xbf16, #tpu.memory_space<vmem>>, %arg3: memref<1x128xf32, #tpu.memory_space<vmem>>, %arg4: memref<128x128xbf16, #tpu.memory_space<vmem>>, %arg5: memref<1x128xf32, #tpu.memory_space<vmem>>, %arg6: memref<128x128xbf16, #tpu.memory_space<vmem>>, %arg7: memref<1x128xf32, #tpu.memory_space<vmem>>, %arg8: memref<32x128xf32, #tpu.memory_space<vmem>>) attributes {dimension_semantics = [#tpu.dimension_semantics<parallel>], iteration_bounds = array<i64: 2>, scalar_prefetch = 0 : i64, scratch_operands = 0 : i64, tpu.core_type = #tpu.core_type<tc>, window_params = [{transform_indices = @transform_0, window_bounds = array<i64: 512, 6>}, {pipeline_mode = #tpu.pipeline_mode<synchronous>, transform_indices = @transform_1, window_bounds = array<i64: 6, 128>}, {pipeline_mode = #tpu.pipeline_mode<synchronous>, transform_indices = @transform_2, window_bounds = array<i64: 1, 128>}, {pipeline_mode = #tpu.pipeline_mode<synchronous>, transform_indices = @transform_3, window_bounds = array<i64: 128, 128>}, {pipeline_mode = #tpu.pipeline_mode<synchronous>, transform_indices = @transform_4, window_bounds = array<i64: 1, 128>}, {pipeline_mode = #tpu.pipeline_mode<synchronous>, transform_indices = @transform_5, window_bounds = array<i64: 128, 128>}, {pipeline_mode = #tpu.pipeline_mode<synchronous>, transform_indices = @transform_6, window_bounds = array<i64: 1, 128>}, {transform_indices = @transform_7, window_bounds = array<i64: 32, 128>}]} {
    %c0 = arith.constant 0 : index
    %c0_0 = arith.constant 0 : index
    %0 = vector.load %arg1[%c0, %c0_0] : memref<512x6xbf16, #tpu.memory_space<vmem>>, vector<512x6xbf16>
    %c0_1 = arith.constant 0 : index
    %c0_2 = arith.constant 0 : index
    %1 = vector.load %arg2[%c0_1, %c0_2] : memref<6x128xbf16, #tpu.memory_space<vmem>>, vector<6x128xbf16>
    %cst = arith.constant dense<0.000000e+00> : vector<512x128xf32>
    %2 = tpu.matmul %0, %1, %cst {dimension_numbers = #tpu.dot_dimension_numbers<[1], [0], [0], [1], [0, 0, 1, 1], [], []>} : vector<512x6xbf16>, vector<6x128xbf16>, vector<512x128xf32> -> vector<512x128xf32>
    %c0_3 = arith.constant 0 : index
    %c0_4 = arith.constant 0 : index
    %3 = vector.load %arg3[%c0_3, %c0_4] : memref<1x128xf32, #tpu.memory_space<vmem>>, vector<1x128xf32>
    %4 = vector.broadcast %3 : vector<1x128xf32> to vector<512x128xf32>
    %5 = arith.addf %2, %4 : vector<512x128xf32>
    %cst_5 = arith.constant 0.000000e+00 : f32
    %6 = vector.broadcast %cst_5 : f32 to vector<512x128xf32>
    %7 = arith.maximumf %5, %6 : vector<512x128xf32>
    %8 = arith.truncf %7 : vector<512x128xf32> to vector<512x128xbf16>
    %c0_6 = arith.constant 0 : index
    %c0_7 = arith.constant 0 : index
    %9 = vector.load %arg4[%c0_6, %c0_7] : memref<128x128xbf16, #tpu.memory_space<vmem>>, vector<128x128xbf16>
    %cst_8 = arith.constant dense<0.000000e+00> : vector<512x128xf32>
    %10 = tpu.matmul %8, %9, %cst_8 {dimension_numbers = #tpu.dot_dimension_numbers<[1], [0], [0], [1], [0, 0, 1, 1], [], []>} : vector<512x128xbf16>, vector<128x128xbf16>, vector<512x128xf32> -> vector<512x128xf32>
    %c0_9 = arith.constant 0 : index
    %c0_10 = arith.constant 0 : index
    %11 = vector.load %arg5[%c0_9, %c0_10] : memref<1x128xf32, #tpu.memory_space<vmem>>, vector<1x128xf32>
    %12 = vector.broadcast %11 : vector<1x128xf32> to vector<512x128xf32>
    %13 = arith.addf %10, %12 : vector<512x128xf32>
    %cst_11 = arith.constant 0.000000e+00 : f32
    %14 = vector.broadcast %cst_11 : f32 to vector<512x128xf32>
    %15 = arith.maximumf %13, %14 : vector<512x128xf32>
    %16 = arith.truncf %15 : vector<512x128xf32> to vector<512x128xbf16>
    %c0_12 = arith.constant 0 : index
    %c0_13 = arith.constant 0 : index
    %17 = vector.load %arg6[%c0_12, %c0_13] : memref<128x128xbf16, #tpu.memory_space<vmem>>, vector<128x128xbf16>
    %cst_14 = arith.constant dense<0.000000e+00> : vector<512x128xf32>
    %18 = tpu.matmul %16, %17, %cst_14 {dimension_numbers = #tpu.dot_dimension_numbers<[1], [0], [0], [1], [0, 0, 1, 1], [], []>} : vector<512x128xbf16>, vector<128x128xbf16>, vector<512x128xf32> -> vector<512x128xf32>
    %c0_15 = arith.constant 0 : index
    %c0_16 = arith.constant 0 : index
    %19 = vector.load %arg7[%c0_15, %c0_16] : memref<1x128xf32, #tpu.memory_space<vmem>>, vector<1x128xf32>
    %20 = vector.broadcast %19 : vector<1x128xf32> to vector<512x128xf32>
    %21 = arith.addf %18, %20 : vector<512x128xf32>
    %cst_17 = arith.constant 0.000000e+00 : f32
    %22 = vector.broadcast %cst_17 : f32 to vector<512x128xf32>
    %23 = arith.maximumf %21, %22 : vector<512x128xf32>
    %24 = vector.shape_cast %23 : vector<512x128xf32> to vector<32x16x128xf32>
    %cst_18 = arith.constant dense<0xFF800000> : vector<32x128xf32>
    %25 = vector.multi_reduction <maximumf>, %24, %cst_18 [1] : vector<32x16x128xf32> to vector<32x128xf32>
    %c0_19 = arith.constant 0 : index
    %c0_20 = arith.constant 0 : index
    %26 = vector.load %arg8[%c0_19, %c0_20] : memref<32x128xf32, #tpu.memory_space<vmem>>, vector<32x128xf32>
    tpu.vector_store %arg8[%c0_19, %c0_20], %25 {strides = array<i32>} : memref<32x128xf32, #tpu.memory_space<vmem>>, vector<32x128xf32>,
    return
  }
  func.func @transform_0(%arg0: i32) -> (i32, i32) {
    %c0_i32 = arith.constant 0 : i32
    %c0_i32_0 = arith.constant 0 : i32
    return %arg0, %c0_i32 : i32, i32
  }
  func.func @transform_1(%arg0: i32) -> (i32, i32) {
    %c0_i32 = arith.constant 0 : i32
    %c0_i32_0 = arith.constant 0 : i32
    %c0_i32_1 = arith.constant 0 : i32
    return %c0_i32, %c0_i32_0 : i32, i32
  }
  func.func @transform_2(%arg0: i32) -> (i32, i32) {
    %c0_i32 = arith.constant 0 : i32
    %c0_i32_0 = arith.constant 0 : i32
    %c0_i32_1 = arith.constant 0 : i32
    return %c0_i32, %c0_i32_0 : i32, i32
  }
  func.func @transform_3(%arg0: i32) -> (i32, i32) {
    %c0_i32 = arith.constant 0 : i32
    %c0_i32_0 = arith.constant 0 : i32
    %c0_i32_1 = arith.constant 0 : i32
    return %c0_i32, %c0_i32_0 : i32, i32
  }
  func.func @transform_4(%arg0: i32) -> (i32, i32) {
    %c0_i32 = arith.constant 0 : i32
    %c0_i32_0 = arith.constant 0 : i32
    %c0_i32_1 = arith.constant 0 : i32
    return %c0_i32, %c0_i32_0 : i32, i32
  }
  func.func @transform_5(%arg0: i32) -> (i32, i32) {
    %c0_i32 = arith.constant 0 : i32
    %c0_i32_0 = arith.constant 0 : i32
    %c0_i32_1 = arith.constant 0 : i32
    return %c0_i32, %c0_i32_0 : i32, i32
  }
  func.func @transform_6(%arg0: i32) -> (i32, i32) {
    %c0_i32 = arith.constant 0 : i32
    %c0_i32_0 = arith.constant 0 : i32
    %c0_i32_1 = arith.constant 0 : i32
    return %c0_i32, %c0_i32_0 : i32, i32
  }
  func.func @transform_7(%arg0: i32) -> (i32, i32) {
    %c0_i32 = arith.constant 0 : i32
    %c0_i32_0 = arith.constant 0 : i32
    return %arg0, %c0_i32 : i32, i32
  }
}

module attributes {stable_mosaic.version = 11 : i64} {
  func.func @_sa_mlp_kernel(%arg0: i32, %arg1: memref<128x35xbf16, #tpu.memory_space<vmem>>, %arg2: memref<35x128xbf16, #tpu.memory_space<vmem>>, %arg3: memref<1x128xf32, #tpu.memory_space<vmem>>, %arg4: memref<128x128xbf16, #tpu.memory_space<vmem>>, %arg5: memref<1x128xf32, #tpu.memory_space<vmem>>, %arg6: memref<128x128xbf16, #tpu.memory_space<vmem>>, %arg7: memref<1x128xf32, #tpu.memory_space<vmem>>, %arg8: memref<16x128xf32, #tpu.memory_space<vmem>>) attributes {dimension_semantics = [#tpu.dimension_semantics<parallel>], iteration_bounds = array<i64: 2>, scalar_prefetch = 0 : i64, scratch_operands = 0 : i64, tpu.core_type = #tpu.core_type<tc>, window_params = [{transform_indices = @transform_0, window_bounds = array<i64: 128, 35>}, {pipeline_mode = #tpu.pipeline_mode<synchronous>, transform_indices = @transform_1, window_bounds = array<i64: 35, 128>}, {pipeline_mode = #tpu.pipeline_mode<synchronous>, transform_indices = @transform_2, window_bounds = array<i64: 1, 128>}, {pipeline_mode = #tpu.pipeline_mode<synchronous>, transform_indices = @transform_3, window_bounds = array<i64: 128, 128>}, {pipeline_mode = #tpu.pipeline_mode<synchronous>, transform_indices = @transform_4, window_bounds = array<i64: 1, 128>}, {pipeline_mode = #tpu.pipeline_mode<synchronous>, transform_indices = @transform_5, window_bounds = array<i64: 128, 128>}, {pipeline_mode = #tpu.pipeline_mode<synchronous>, transform_indices = @transform_6, window_bounds = array<i64: 1, 128>}, {transform_indices = @transform_7, window_bounds = array<i64: 16, 128>}]} {
    %c0 = arith.constant 0 : index
    %c0_0 = arith.constant 0 : index
    %0 = vector.load %arg1[%c0, %c0_0] : memref<128x35xbf16, #tpu.memory_space<vmem>>, vector<128x35xbf16>
    %c0_1 = arith.constant 0 : index
    %c0_2 = arith.constant 0 : index
    %1 = vector.load %arg2[%c0_1, %c0_2] : memref<35x128xbf16, #tpu.memory_space<vmem>>, vector<35x128xbf16>
    %cst = arith.constant dense<0.000000e+00> : vector<128x128xf32>
    %2 = tpu.matmul %0, %1, %cst {dimension_numbers = #tpu.dot_dimension_numbers<[1], [0], [0], [1], [0, 0, 1, 1], [], []>} : vector<128x35xbf16>, vector<35x128xbf16>, vector<128x128xf32> -> vector<128x128xf32>
    %c0_3 = arith.constant 0 : index
    %c0_4 = arith.constant 0 : index
    %3 = vector.load %arg3[%c0_3, %c0_4] : memref<1x128xf32, #tpu.memory_space<vmem>>, vector<1x128xf32>
    %4 = vector.broadcast %3 : vector<1x128xf32> to vector<128x128xf32>
    %5 = arith.addf %2, %4 : vector<128x128xf32>
    %cst_5 = arith.constant 0.000000e+00 : f32
    %6 = vector.broadcast %cst_5 : f32 to vector<128x128xf32>
    %7 = arith.maximumf %5, %6 : vector<128x128xf32>
    %8 = arith.truncf %7 : vector<128x128xf32> to vector<128x128xbf16>
    %c0_6 = arith.constant 0 : index
    %c0_7 = arith.constant 0 : index
    %9 = vector.load %arg4[%c0_6, %c0_7] : memref<128x128xbf16, #tpu.memory_space<vmem>>, vector<128x128xbf16>
    %cst_8 = arith.constant dense<0.000000e+00> : vector<128x128xf32>
    %10 = tpu.matmul %8, %9, %cst_8 {dimension_numbers = #tpu.dot_dimension_numbers<[1], [0], [0], [1], [0, 0, 1, 1], [], []>} : vector<128x128xbf16>, vector<128x128xbf16>, vector<128x128xf32> -> vector<128x128xf32>
    %c0_9 = arith.constant 0 : index
    %c0_10 = arith.constant 0 : index
    %11 = vector.load %arg5[%c0_9, %c0_10] : memref<1x128xf32, #tpu.memory_space<vmem>>, vector<1x128xf32>
    %12 = vector.broadcast %11 : vector<1x128xf32> to vector<128x128xf32>
    %13 = arith.addf %10, %12 : vector<128x128xf32>
    %cst_11 = arith.constant 0.000000e+00 : f32
    %14 = vector.broadcast %cst_11 : f32 to vector<128x128xf32>
    %15 = arith.maximumf %13, %14 : vector<128x128xf32>
    %16 = arith.truncf %15 : vector<128x128xf32> to vector<128x128xbf16>
    %c0_12 = arith.constant 0 : index
    %c0_13 = arith.constant 0 : index
    %17 = vector.load %arg6[%c0_12, %c0_13] : memref<128x128xbf16, #tpu.memory_space<vmem>>, vector<128x128xbf16>
    %cst_14 = arith.constant dense<0.000000e+00> : vector<128x128xf32>
    %18 = tpu.matmul %16, %17, %cst_14 {dimension_numbers = #tpu.dot_dimension_numbers<[1], [0], [0], [1], [0, 0, 1, 1], [], []>} : vector<128x128xbf16>, vector<128x128xbf16>, vector<128x128xf32> -> vector<128x128xf32>
    %c0_15 = arith.constant 0 : index
    %c0_16 = arith.constant 0 : index
    %19 = vector.load %arg7[%c0_15, %c0_16] : memref<1x128xf32, #tpu.memory_space<vmem>>, vector<1x128xf32>
    %20 = vector.broadcast %19 : vector<1x128xf32> to vector<128x128xf32>
    %21 = arith.addf %18, %20 : vector<128x128xf32>
    %cst_17 = arith.constant 0.000000e+00 : f32
    %22 = vector.broadcast %cst_17 : f32 to vector<128x128xf32>
    %23 = arith.maximumf %21, %22 : vector<128x128xf32>
    %24 = vector.shape_cast %23 : vector<128x128xf32> to vector<16x8x128xf32>
    %cst_18 = arith.constant dense<0xFF800000> : vector<16x128xf32>
    %25 = vector.multi_reduction <maximumf>, %24, %cst_18 [1] : vector<16x8x128xf32> to vector<16x128xf32>
    %c0_19 = arith.constant 0 : index
    %c0_20 = arith.constant 0 : index
    %26 = vector.load %arg8[%c0_19, %c0_20] : memref<16x128xf32, #tpu.memory_space<vmem>>, vector<16x128xf32>
    tpu.vector_store %arg8[%c0_19, %c0_20], %25 {strides = array<i32>} : memref<16x128xf32, #tpu.memory_space<vmem>>, vector<16x128xf32>,
    return
  }
  func.func @transform_0(%arg0: i32) -> (i32, i32) {
    %c0_i32 = arith.constant 0 : i32
    %c0_i32_0 = arith.constant 0 : i32
    return %arg0, %c0_i32 : i32, i32
  }
  func.func @transform_1(%arg0: i32) -> (i32, i32) {
    %c0_i32 = arith.constant 0 : i32
    %c0_i32_0 = arith.constant 0 : i32
    %c0_i32_1 = arith.constant 0 : i32
    return %c0_i32, %c0_i32_0 : i32, i32
  }
  func.func @transform_2(%arg0: i32) -> (i32, i32) {
    %c0_i32 = arith.constant 0 : i32
    %c0_i32_0 = arith.constant 0 : i32
    %c0_i32_1 = arith.constant 0 : i32
    return %c0_i32, %c0_i32_0 : i32, i32
  }
  func.func @transform_3(%arg0: i32) -> (i32, i32) {
    %c0_i32 = arith.constant 0 : i32
    %c0_i32_0 = arith.constant 0 : i32
    %c0_i32_1 = arith.constant 0 : i32
    return %c0_i32, %c0_i32_0 : i32, i32
  }
  func.func @transform_4(%arg0: i32) -> (i32, i32) {
    %c0_i32 = arith.constant 0 : i32
    %c0_i32_0 = arith.constant 0 : i32
    %c0_i32_1 = arith.constant 0 : i32
    return %c0_i32, %c0_i32_0 : i32, i32
  }
  func.func @transform_5(%arg0: i32) -> (i32, i32) {
    %c0_i32 = arith.constant 0 : i32
    %c0_i32_0 = arith.constant 0 : i32
    %c0_i32_1 = arith.constant 0 : i32
    return %c0_i32, %c0_i32_0 : i32, i32
  }
  func.func @transform_6(%arg0: i32) -> (i32, i32) {
    %c0_i32 = arith.constant 0 : i32
    %c0_i32_0 = arith.constant 0 : i32
    %c0_i32_1 = arith.constant 0 : i32
    return %c0_i32, %c0_i32_0 : i32, i32
  }
  func.func @transform_7(%arg0: i32) -> (i32, i32) {
    %c0_i32 = arith.constant 0 : i32
    %c0_i32_0 = arith.constant 0 : i32
    return %arg0, %c0_i32 : i32, i32
  }
}

module attributes {stable_mosaic.version = 11 : i64} {
  func.func @_sa_mlp_kernel(%arg0: i32, %arg1: memref<64x67xbf16, #tpu.memory_space<vmem>>, %arg2: memref<67x128xbf16, #tpu.memory_space<vmem>>, %arg3: memref<1x128xf32, #tpu.memory_space<vmem>>, %arg4: memref<128x128xbf16, #tpu.memory_space<vmem>>, %arg5: memref<1x128xf32, #tpu.memory_space<vmem>>, %arg6: memref<128x128xbf16, #tpu.memory_space<vmem>>, %arg7: memref<1x128xf32, #tpu.memory_space<vmem>>, %arg8: memref<8x128xf32, #tpu.memory_space<vmem>>) attributes {dimension_semantics = [#tpu.dimension_semantics<parallel>], iteration_bounds = array<i64: 2>, scalar_prefetch = 0 : i64, scratch_operands = 0 : i64, tpu.core_type = #tpu.core_type<tc>, window_params = [{transform_indices = @transform_0, window_bounds = array<i64: 64, 67>}, {pipeline_mode = #tpu.pipeline_mode<synchronous>, transform_indices = @transform_1, window_bounds = array<i64: 67, 128>}, {pipeline_mode = #tpu.pipeline_mode<synchronous>, transform_indices = @transform_2, window_bounds = array<i64: 1, 128>}, {pipeline_mode = #tpu.pipeline_mode<synchronous>, transform_indices = @transform_3, window_bounds = array<i64: 128, 128>}, {pipeline_mode = #tpu.pipeline_mode<synchronous>, transform_indices = @transform_4, window_bounds = array<i64: 1, 128>}, {pipeline_mode = #tpu.pipeline_mode<synchronous>, transform_indices = @transform_5, window_bounds = array<i64: 128, 128>}, {pipeline_mode = #tpu.pipeline_mode<synchronous>, transform_indices = @transform_6, window_bounds = array<i64: 1, 128>}, {transform_indices = @transform_7, window_bounds = array<i64: 8, 128>}]} {
    %c0 = arith.constant 0 : index
    %c0_0 = arith.constant 0 : index
    %0 = vector.load %arg1[%c0, %c0_0] : memref<64x67xbf16, #tpu.memory_space<vmem>>, vector<64x67xbf16>
    %c0_1 = arith.constant 0 : index
    %c0_2 = arith.constant 0 : index
    %1 = vector.load %arg2[%c0_1, %c0_2] : memref<67x128xbf16, #tpu.memory_space<vmem>>, vector<67x128xbf16>
    %cst = arith.constant dense<0.000000e+00> : vector<64x128xf32>
    %2 = tpu.matmul %0, %1, %cst {dimension_numbers = #tpu.dot_dimension_numbers<[1], [0], [0], [1], [0, 0, 1, 1], [], []>} : vector<64x67xbf16>, vector<67x128xbf16>, vector<64x128xf32> -> vector<64x128xf32>
    %c0_3 = arith.constant 0 : index
    %c0_4 = arith.constant 0 : index
    %3 = vector.load %arg3[%c0_3, %c0_4] : memref<1x128xf32, #tpu.memory_space<vmem>>, vector<1x128xf32>
    %4 = vector.broadcast %3 : vector<1x128xf32> to vector<64x128xf32>
    %5 = arith.addf %2, %4 : vector<64x128xf32>
    %cst_5 = arith.constant 0.000000e+00 : f32
    %6 = vector.broadcast %cst_5 : f32 to vector<64x128xf32>
    %7 = arith.maximumf %5, %6 : vector<64x128xf32>
    %8 = arith.truncf %7 : vector<64x128xf32> to vector<64x128xbf16>
    %c0_6 = arith.constant 0 : index
    %c0_7 = arith.constant 0 : index
    %9 = vector.load %arg4[%c0_6, %c0_7] : memref<128x128xbf16, #tpu.memory_space<vmem>>, vector<128x128xbf16>
    %cst_8 = arith.constant dense<0.000000e+00> : vector<64x128xf32>
    %10 = tpu.matmul %8, %9, %cst_8 {dimension_numbers = #tpu.dot_dimension_numbers<[1], [0], [0], [1], [0, 0, 1, 1], [], []>} : vector<64x128xbf16>, vector<128x128xbf16>, vector<64x128xf32> -> vector<64x128xf32>
    %c0_9 = arith.constant 0 : index
    %c0_10 = arith.constant 0 : index
    %11 = vector.load %arg5[%c0_9, %c0_10] : memref<1x128xf32, #tpu.memory_space<vmem>>, vector<1x128xf32>
    %12 = vector.broadcast %11 : vector<1x128xf32> to vector<64x128xf32>
    %13 = arith.addf %10, %12 : vector<64x128xf32>
    %cst_11 = arith.constant 0.000000e+00 : f32
    %14 = vector.broadcast %cst_11 : f32 to vector<64x128xf32>
    %15 = arith.maximumf %13, %14 : vector<64x128xf32>
    %16 = arith.truncf %15 : vector<64x128xf32> to vector<64x128xbf16>
    %c0_12 = arith.constant 0 : index
    %c0_13 = arith.constant 0 : index
    %17 = vector.load %arg6[%c0_12, %c0_13] : memref<128x128xbf16, #tpu.memory_space<vmem>>, vector<128x128xbf16>
    %cst_14 = arith.constant dense<0.000000e+00> : vector<64x128xf32>
    %18 = tpu.matmul %16, %17, %cst_14 {dimension_numbers = #tpu.dot_dimension_numbers<[1], [0], [0], [1], [0, 0, 1, 1], [], []>} : vector<64x128xbf16>, vector<128x128xbf16>, vector<64x128xf32> -> vector<64x128xf32>
    %c0_15 = arith.constant 0 : index
    %c0_16 = arith.constant 0 : index
    %19 = vector.load %arg7[%c0_15, %c0_16] : memref<1x128xf32, #tpu.memory_space<vmem>>, vector<1x128xf32>
    %20 = vector.broadcast %19 : vector<1x128xf32> to vector<64x128xf32>
    %21 = arith.addf %18, %20 : vector<64x128xf32>
    %cst_17 = arith.constant 0.000000e+00 : f32
    %22 = vector.broadcast %cst_17 : f32 to vector<64x128xf32>
    %23 = arith.maximumf %21, %22 : vector<64x128xf32>
    %24 = vector.shape_cast %23 : vector<64x128xf32> to vector<8x8x128xf32>
    %cst_18 = arith.constant dense<0xFF800000> : vector<8x128xf32>
    %25 = vector.multi_reduction <maximumf>, %24, %cst_18 [1] : vector<8x8x128xf32> to vector<8x128xf32>
    %c0_19 = arith.constant 0 : index
    %c0_20 = arith.constant 0 : index
    %26 = vector.load %arg8[%c0_19, %c0_20] : memref<8x128xf32, #tpu.memory_space<vmem>>, vector<8x128xf32>
    tpu.vector_store %arg8[%c0_19, %c0_20], %25 {strides = array<i32>} : memref<8x128xf32, #tpu.memory_space<vmem>>, vector<8x128xf32>,
    return
  }
  func.func @transform_0(%arg0: i32) -> (i32, i32) {
    %c0_i32 = arith.constant 0 : i32
    %c0_i32_0 = arith.constant 0 : i32
    return %arg0, %c0_i32 : i32, i32
  }
  func.func @transform_1(%arg0: i32) -> (i32, i32) {
    %c0_i32 = arith.constant 0 : i32
    %c0_i32_0 = arith.constant 0 : i32
    %c0_i32_1 = arith.constant 0 : i32
    return %c0_i32, %c0_i32_0 : i32, i32
  }
  func.func @transform_2(%arg0: i32) -> (i32, i32) {
    %c0_i32 = arith.constant 0 : i32
    %c0_i32_0 = arith.constant 0 : i32
    %c0_i32_1 = arith.constant 0 : i32
    return %c0_i32, %c0_i32_0 : i32, i32
  }
  func.func @transform_3(%arg0: i32) -> (i32, i32) {
    %c0_i32 = arith.constant 0 : i32
    %c0_i32_0 = arith.constant 0 : i32
    %c0_i32_1 = arith.constant 0 : i32
    return %c0_i32, %c0_i32_0 : i32, i32
  }
  func.func @transform_4(%arg0: i32) -> (i32, i32) {
    %c0_i32 = arith.constant 0 : i32
    %c0_i32_0 = arith.constant 0 : i32
    %c0_i32_1 = arith.constant 0 : i32
    return %c0_i32, %c0_i32_0 : i32, i32
  }
  func.func @transform_5(%arg0: i32) -> (i32, i32) {
    %c0_i32 = arith.constant 0 : i32
    %c0_i32_0 = arith.constant 0 : i32
    %c0_i32_1 = arith.constant 0 : i32
    return %c0_i32, %c0_i32_0 : i32, i32
  }
  func.func @transform_6(%arg0: i32) -> (i32, i32) {
    %c0_i32 = arith.constant 0 : i32
    %c0_i32_0 = arith.constant 0 : i32
    %c0_i32_1 = arith.constant 0 : i32
    return %c0_i32, %c0_i32_0 : i32, i32
  }
  func.func @transform_7(%arg0: i32) -> (i32, i32) {
    %c0_i32 = arith.constant 0 : i32
    %c0_i32_0 = arith.constant 0 : i32
    return %arg0, %c0_i32 : i32, i32
  }
}

module attributes {stable_mosaic.version = 11 : i64} {
  func.func @_gap_kernel(%arg0: memref<2x8x128xf32, #tpu.memory_space<vmem>>, %arg1: memref<2x128xf32, #tpu.memory_space<vmem>>) attributes {dimension_semantics = [], scalar_prefetch = 0 : i64, scratch_operands = 0 : i64, tpu.core_type = #tpu.core_type<tc>} {
    %c0 = arith.constant 0 : index
    %c0_0 = arith.constant 0 : index
    %c0_1 = arith.constant 0 : index
    %0 = vector.load %arg0[%c0, %c0_0, %c0_1] : memref<2x8x128xf32, #tpu.memory_space<vmem>>, vector<2x8x128xf32>
    %cst = arith.constant dense<0.000000e+00> : vector<2x128xf32>
    %1 = vector.multi_reduction <add>, %0, %cst [1] : vector<2x8x128xf32> to vector<2x128xf32>
    %cst_2 = arith.constant 1.250000e-01 : f32
    %2 = vector.broadcast %cst_2 : f32 to vector<2x128xf32>
    %3 = arith.mulf %1, %2 : vector<2x128xf32>
    %c0_3 = arith.constant 0 : index
    %c0_4 = arith.constant 0 : index
    %4 = vector.load %arg1[%c0_3, %c0_4] : memref<2x128xf32, #tpu.memory_space<vmem>>, vector<2x128xf32>
    tpu.vector_store %arg1[%c0_3, %c0_4], %3 {strides = array<i32>} : memref<2x128xf32, #tpu.memory_space<vmem>>, vector<2x128xf32>,
    return
  }
}

</mosaic_0001>

<bundles_post_ra>
// kernel: custom-call.24
= control target key start
LH: loop header
LB: loop body
LE: loop exit
PB: predicated region body
PF: predicated region fallthrough
CT: control target
= control target key end

     0   :  { %s6_s0 = inlined_call_operand.vmem [shape: f32[2,64], index: 0, kind: output, shape index: {}]  }

// kernel: custom-call.25
= control target key start
LH: loop header
LB: loop body
LE: loop exit
PB: predicated region body
PF: predicated region fallthrough
CT: control target
= control target key end

     0   :  { %s6_s0 = inlined_call_operand.vmem [shape: f32[2,32], index: 0, kind: output, shape index: {}]  }

// kernel: _lambda_.4
= control target key start
LH: loop header
LB: loop body
LE: loop exit
PB: predicated region body
PF: predicated region fallthrough
CT: control target
= control target key end

     0   :  { %s2777_s24 = smov 0   ;;  %s3225_s0 = inlined_call_operand.vmem [shape: bf16[1024,6], index: 0, kind: input, shape index: {}]   ;;  %s3226_s1 = inlined_call_operand.vmem [shape: bf16[6,128], index: 1, kind: input, shape index: {}]   ;;  %s3227_s2 = inlined_call_operand.vmem [shape: f32[1,128], index: 2, kind: input, shape index: {}]   ;;  %s3228_s3 = inlined_call_operand.vmem [shape: bf16[128,128], index: 3, kind: input, shape index: {}]   ;;  %s3229_s4 = inlined_call_operand.vmem [shape: f32[1,128], index: 4, kind: input, shape index: {}]   ;;  %s3230_s5 = inlined_call_operand.vmem [shape: bf16[128,128], index: 5, kind: input, shape index: {}]   ;;  %s3231_s6 = inlined_call_operand.vmem [shape: f32[1,128], index: 6, kind: input, shape index: {}]   ;;  %s3232_s7 = inlined_call_operand.vmem [shape: f32[64,128], index: 7, kind: output, shape index: {}]  }
   0x1 LB: > { %s2236_s25 = sadd.s32 4294967295, %s2735_s24   ;;  %p2240_p0 = scmp.ge.s32.totalorder %s2735_s24, 1  ;;  %s2735_s24 = sphi %s2777_s24, %s17_s24  }
   0x2   : > { %p238_p1 = scmp.lt.s32.totalorder %s2735_s24, 3 }
   0x4   : > { %p239_p2 = pnand %p2240_p0, %p238_p1 }
   0x5   : > { %s2241_s28 = sshll.u32 (!%p239_p2), %s2236_s25, 6  ;;  %s3128_s29 = sshll.u32 (!%p239_p2), %s2236_s25, 2 }
   0x6   : > { %242 = sbr.rel (%p239_p2) target bundleno = 768 (0x300), region = 48  ;;  %p271_p3 = scmp.lt.s32.totalorder (!%p239_p2), %s2241_s28, 127 }
   0x7   : > { %p277_p4 = scmp.lt.s32.totalorder (!%p239_p2), %s3128_s29, 7 }
   0xb   : > { %v347_v0 = vld [vmem:[%s3226_s1] sm:$0x7]  ;;  %vm612_vm0 = vcmask 1042432   ;;  %v2713_v1 = vld [vmem:[%s3228_s3 + $0x38] sm:$0xff]   ;;  %s3234_s28 = smov (!%p271_p3, %s2241_s28), 127  ;;  %vm515_vm1 = vcmask 48128  }
   0xc   : > { %2671 = vmatprep.subr.msk.bf16.mxu0 %vm612_vm0, %v347_v0  ;;  %v614_v2 = vsel %vm612_vm0, %v347_v0, 0  ;;  %2672 = vmatprep.subr.msk.bf16.mxu1 %vm612_vm0, %v347_v0  ;;  %s2242_s8 = sshll.u32 %s3234_s28, 2  ;;  %v2714_v11 = vld [vmem:[%s3228_s3 + $0x30] sm:$0xff]   ;;  %v2715_v14 = vld [vmem:[%s3228_s3 + $0x28] sm:$0xff]   ;;  %v2716_v19 = vld [vmem:[%s3228_s3 + $0x20] sm:$0xff]   ;;  %vm2137_vm2 = vcmask 1041409  }
   0xd   : > { %2444 = vmatpush3.bf16.msra.mxu0 %v614_v2  ;;  %2670 = vmatpush3.bf16.msra.mxu1 %v614_v2  ;;  %s2796_s11 = scalar_lea.vmem %s3225_s0, %s2242_s8  ;;  %v2717_v20 = vld [vmem:[%s3228_s3 + $0x18] sm:$0xff]   ;;  %v2718_v25 = vld [vmem:[%s3228_s3 + $0x10] sm:$0xff]   ;;  %v2719_v26 = vld [vmem:[%s3228_s3 + $0x8] sm:$0xff]   ;;  %vm2139_vm3 = vcmask 1042434   ;;  %vm2141_vm4 = vcmask 1043459   ;;  %vm2143_vm5 = vcmask 1044484  }
   0xe   : > { %2509 = vmatprep.subr.bf16.mxu1 %v2713_v1  ;;  %v2681_v3 = vld [vmem:[%s2796_s11] sm:$0xff]   ;;  %v2682_v4 = vld [vmem:[%s2796_s11 + $0x8] sm:$0xff]   ;;  %v2683_v5 = vld [vmem:[%s2796_s11 + $0x10] sm:$0xff]   ;;  %s3236_s29 = smov (!%p277_p4, %s3128_s29), 7  ;;  %vm2145_vm6 = vcmask 1045509   ;;  %vm2147_vm7 = vcmask 1046534  }
   0xf   : > { %2445 = vmatprep.mubr.msk.bf16.mxu0 %vm515_vm1, %v2681_v3  ;;  %v2684_v6 = vld [vmem:[%s2796_s11 + $0x18] sm:$0xff]   ;;  %v2685_v7 = vld [vmem:[%s2796_s11 + $0x20] sm:$0xff]   ;;  %v2686_v8 = vld [vmem:[%s2796_s11 + $0x28] sm:$0xff]   ;;  %s2244_s25 = sshll.u32 %s3236_s29, 3  ;;  %vm2149_vm8 = vcmask 1047559  }
  0x10   : > { %2446 = vmatmul.mubr.msk.bf16.vlgmr.msra.gmra.mxu0 %vm515_vm1, %v2682_v4  ;;  %v2687_v9 = vld [vmem:[%s2796_s11 + $0x30] sm:$0xff]   ;;  %v2697_v10 = vld [vmem:[%s2796_s11 + $0x80] sm:$0xff]   ;;  %v2698_v12 = vld [vmem:[%s2796_s11 + $0x88] sm:$0xff]   ;;  %s3153_s9 = scalar_lea.vmem %s3232_s7, %s2244_s25 }
  0x11   : > { %2449 = vmatprep.mubr.msk.bf16.mxu0 %vm515_vm1, %v2683_v5  ;;  %2477 = vmatprep.mubr.msk.bf16.mxu1 %vm515_vm1, %v2697_v10  ;;  %v2699_v13 = vld [vmem:[%s2796_s11 + $0x90] sm:$0xff]   ;;  %v2688_v15 = vld [vmem:[%s2796_s11 + $0x38] sm:$0xff]   ;;  %v2689_v16 = vld [vmem:[%s2796_s11 + $0x40] sm:$0xff]  }
  0x12   : > { %2478 = vmatmul.mubr.msk.bf16.vlgmr.msra.gmra.mxu1 %vm515_vm1, %v2698_v12  ;;  %v2700_v17 = vld [vmem:[%s2796_s11 + $0x98] sm:$0xff]   ;;  %v2701_v18 = vld [vmem:[%s2796_s11 + $0xa0] sm:$0xff]   ;;  %v2690_v21 = vld [vmem:[%s2796_s11 + $0x48] sm:$0xff]  }
  0x13   : > { %2481 = vmatprep.mubr.msk.bf16.mxu1 %vm515_vm1, %v2699_v13  ;;  %2510 = vmatpush3.bf16.msra.mxu1 %v2713_v1  ;;  %v2691_v22 = vld [vmem:[%s2796_s11 + $0x50] sm:$0xff]   ;;  %v2702_v23 = vld [vmem:[%s2796_s11 + $0xa8] sm:$0xff]   ;;  %v2692_v27 = vld [vmem:[%s2796_s11 + $0x58] sm:$0xff]  }
  0x14   : > { %2511 = vmatprep.subr.bf16.mxu1 %v2714_v11  ;;  %v2703_v24 = vld [vmem:[%s2796_s11 + $0xb0] sm:$0xff]   ;;  %v2704_v28 = vld [vmem:[%s2796_s11 + $0xb8] sm:$0xff]   ;;  %v2693_v29 = vld [vmem:[%s2796_s11 + $0x60] sm:$0xff]  }
  0x15   : > { %v2705_v30 = vld [vmem:[%s2796_s11 + $0xc0] sm:$0xff]   ;;  %v2694_v31 = vld [vmem:[%s2796_s11 + $0x68] sm:$0xff]   ;;  %v2695_v33 = vld [vmem:[%s2796_s11 + $0x70] sm:$0xff]  }
  0x16   : > { %v2706_v32 = vld [vmem:[%s2796_s11 + $0xc8] sm:$0xff]   ;;  %v2707_v34 = vld [vmem:[%s2796_s11 + $0xd0] sm:$0xff]   ;;  %v2696_v35 = vld [vmem:[%s2796_s11 + $0x78] sm:$0xff]  }
  0x17   : > { %2512 = vmatpush3.bf16.msra.mxu1 %v2714_v11  ;;  %v2708_v36 = vld [vmem:[%s2796_s11 + $0xd8] sm:$0xff]   ;;  %v2709_v37 = vld [vmem:[%s2796_s11 + $0xe0] sm:$0xff]   ;;  %v2710_v38 = vld [vmem:[%s2796_s11 + $0xe8] sm:$0xff]  }
  0x18   : > { %2450 = vmatmul.mubr.msk.bf16.gmra.mxu0 %vm515_vm1, %v2684_v6  ;;  %2513 = vmatprep.subr.bf16.mxu1 %v2715_v14  ;;  %v2711_v39 = vld [vmem:[%s2796_s11 + $0xf0] sm:$0xff]   ;;  %v2712_v40 = vld [vmem:[%s2796_s11 + $0xf8] sm:$0xff]   ;;  %v2720_v41 = vld [vmem:[%s3228_s3] sm:$0xff]  }
  0x19   : > { %2453 = vmatprep.mubr.msk.bf16.mxu0 %vm515_vm1, %v2685_v7  ;;  %v2886_v44 = vld [vmem:[%s3227_s2] ss:$0 sm:$0xff]  ;;  %v2721_v50 = vld [vmem:[%s3230_s5 + $0x38] sm:$0xff]   ;;  %v2722_v51 = vld [vmem:[%s3230_s5 + $0x30] sm:$0xff]  }
  0x1a   : > { %2482 = vmatmul.mubr.msk.bf16.gmra.mxu1 %vm515_vm1, %v2700_v17  ;;  %2589 = vmatprep.subr.bf16.mxu0 %v2721_v50  ;;  %v2723_v59 = vld [vmem:[%s3230_s5 + $0x28] sm:$0xff]   ;;  %v2724_v3 = vld [vmem:[%s3230_s5 + $0x20] sm:$0xff]   ;;  %v2725_v13 = vld [vmem:[%s3230_s5 + $0x18] sm:$0xff]  }
  0x1b   : > { %2485 = vmatprep.mubr.msk.bf16.mxu1 %vm515_vm1, %v2701_v18  ;;  %2514 = vmatpush3.bf16.msra.mxu1 %v2715_v14 }
  0x1c   : > { %2515 = vmatprep.subr.bf16.mxu1 %v2716_v19  ;;  %2590 = vmatpush3.bf16.msra.mxu0 %v2721_v50 }
  0x1d   : > { %2591 = vmatprep.subr.bf16.mxu0 %v2722_v51 }
  0x1f   : > { %2516 = vmatpush3.bf16.msra.mxu1 %v2716_v19 }
  0x20   : > { %2454 = vmatmul.mubr.msk.bf16.gmra.mxu0 %vm515_vm1, %v2686_v8  ;;  %2517 = vmatprep.subr.bf16.mxu1 %v2717_v20 }
  0x21   : > { %2457 = vmatprep.mubr.msk.bf16.mxu0 %vm515_vm1, %v2687_v9  ;;  %2592 = vmatpush3.bf16.msra.mxu0 %v2722_v51 }
  0x22   : > { %2486 = vmatmul.mubr.msk.bf16.gmra.mxu1 %vm515_vm1, %v2702_v23  ;;  %2593 = vmatprep.subr.bf16.mxu0 %v2723_v59  ;;  %v2726_v23 = vld [vmem:[%s3230_s5 + $0x10] sm:$0xff]  }
  0x23   : > { %2489 = vmatprep.mubr.msk.bf16.mxu1 %vm515_vm1, %v2703_v24  ;;  %2518 = vmatpush3.bf16.msra.mxu1 %v2717_v20 }
  0x24   : > { %2519 = vmatprep.subr.bf16.mxu1 %v2718_v25 }
  0x25   : > { %2594 = vmatpush3.bf16.msra.mxu0 %v2723_v59 }
  0x26   : > { %2595 = vmatprep.subr.bf16.mxu0 %v2724_v3 }
  0x27   : > { %2520 = vmatpush3.bf16.msra.mxu1 %v2718_v25 }
  0x28   : > { %2458 = vmatmul.mubr.msk.bf16.gmra.mxu0 %vm515_vm1, %v2688_v15  ;;  %2521 = vmatprep.subr.bf16.mxu1 %v2719_v26 }
  0x29   : > { %2461 = vmatprep.mubr.msk.bf16.mxu0 %vm515_vm1, %v2689_v16  ;;  %2596 = vmatpush3.bf16.msra.mxu0 %v2724_v3 }
  0x2a   : > { %2490 = vmatmul.mubr.msk.bf16.gmra.mxu1 %vm515_vm1, %v2704_v28  ;;  %2597 = vmatprep.subr.bf16.mxu0 %v2725_v13 }
  0x2b   : > { %2493 = vmatprep.mubr.msk.bf16.mxu1 %vm515_vm1, %v2705_v30  ;;  %2522 = vmatpush3.bf16.msra.mxu1 %v2719_v26 }
  0x2c   : > { %2523 = vmatprep.subr.bf16.mxu1 %v2720_v41 }
  0x2d   : > { %2598 = vmatpush3.bf16.msra.mxu0 %v2725_v13 }
  0x2e   : > { %2599 = vmatprep.subr.bf16.mxu0 %v2726_v23 }
  0x2f   : > { %2524 = vmatpush3.bf16.msra.mxu1 %v2720_v41 }
  0x30   : > { %2462 = vmatmul.mubr.msk.bf16.gmra.mxu0 %vm515_vm1, %v2690_v21 }
  0x31   : > { %2465 = vmatprep.mubr.msk.bf16.mxu0 %vm515_vm1, %v2691_v22  ;;  %2600 = vmatpush3.bf16.msra.mxu0 %v2726_v23 }
  0x32   : > { %2494 = vmatmul.mubr.msk.bf16.gmra.mxu1 %vm515_vm1, %v2706_v32 }
  0x33   : > { %2497 = vmatprep.mubr.msk.bf16.mxu1 %vm515_vm1, %v2707_v34 }
  0x38   : > { %2466 = vmatmul.mubr.msk.bf16.gmra.mxu0 %vm515_vm1, %v2692_v27 }
  0x39   : > { %2469 = vmatprep.mubr.msk.bf16.mxu0 %vm515_vm1, %v2693_v29 }
  0x3a   : > { %2498 = vmatmul.mubr.msk.bf16.gmra.mxu1 %vm515_vm1, %v2708_v36 }
  0x3b   : > { %2501 = vmatprep.mubr.msk.bf16.mxu1 %vm515_vm1, %v2709_v37 }
  0x40   : > { %2470 = vmatmul.mubr.msk.bf16.gmra.mxu0 %vm515_vm1, %v2694_v31 }
  0x41   : > { %2473 = vmatprep.mubr.msk.bf16.mxu0 %vm515_vm1, %v2695_v33  ;;  %v2727_v33 = vld [vmem:[%s3230_s5 + $0x8] sm:$0xff]  }
  0x42   : > { %2502 = vmatmul.mubr.msk.bf16.gmra.mxu1 %vm515_vm1, %v2710_v38  ;;  %2601 = vmatprep.subr.bf16.mxu0 %v2727_v33 }
  0x43   : > { %2505 = vmatprep.mubr.msk.bf16.mxu1 %vm515_vm1, %v2711_v39  ;;  %2602 = vmatpush3.bf16.msra.mxu0 %v2727_v33 }
  0x48   : > { %2474 = vmatmul.mubr.msk.bf16.gmra.mxu0 %vm515_vm1, %v2696_v35 }
  0x4a   : > { %2506 = vmatmul.mubr.msk.bf16.gmra.mxu1 %vm515_vm1, %v2712_v40 }
  0xd0   : > { %v2447_v42 = vpop.f32.mrf.mxu0 }
  0xd1   : > { %v659_v48 = vadd.f32 %v2447_v42, %v2886_v44 }
  0xd2   : > { %v650_v43 = vpop.f32.mrf.mxu0  ;;  %v2908_v7 = vpop.f32.mrf.mxu1 }
  0xd3   : > { %v651_v46 = vadd.f32 %v2886_v44, %v650_v43  ;;  %v907_v57 = vmax.f32 %v659_v48, 0.0 }
  0xd4   : > { %v2448_v45 = vpop.f32.mrf.mxu0  ;;  %v2910_v12 = vpop.f32.mrf.mxu1 }
  0xd5   : > { %v662_v47 = vadd.f32 %v2448_v45, %v2886_v44  ;;  %v905_v55 = vmax.f32 %v651_v46, 0.0 }
  0xd6   : > { %v653_v49 = vpop.f32.mrf.mxu0  ;;  %v2915_v17 = vpop.f32.mrf.mxu1 }
  0xd7   : > { %v654_v52 = vadd.f32 %v2886_v44, %v653_v49  ;;  %v908_v53 = vmax.f32 %v662_v47, 0.0 }
  0xd8   : > { %v2451_v54 = vpop.f32.mrf.mxu0  ;;  %v2920_v22 = vpop.f32.mrf.mxu1 }
  0xd9   : > { %v906_v56 = vmax.f32 %v654_v52, 0.0  ;;  %v970_v61 = vpack.c.bf16 %v908_v53, %v907_v57  ;;  %v675_v1 = vadd.f32 %v2451_v54, %v2886_v44 }
  0xda   : > { %v666_v58 = vpop.f32.mrf.mxu0  ;;  %v2926_v27 = vpop.f32.mrf.mxu1 }
  0xdb   : > { %v969_v60 = vpack.c.bf16 %v906_v56, %v905_v55  ;;  %v667_v63 = vadd.f32 %v2886_v44, %v666_v58  ;;  %v911_v10 = vmax.f32 %v675_v1, 0.0 }
  0xdc   : > { %v2452_v62 = vpop.f32.mrf.mxu0  ;;  %v2928_v32 = vpop.f32.mrf.mxu1 }
  0xdd   : > { %v678_v0 = vadd.f32 %v2452_v62, %v2886_v44  ;;  %2525 = vmatprep.mubr.bf16.mxu1 %v969_v60  ;;  %v909_v8 = vmax.f32 %v667_v63, 0.0 }
  0xde   : > { %v669_v2 = vpop.f32.mrf.mxu0  ;;  %2526 = vmatmul.mubr.bf16.vlgmr.msra.gmra.mxu1 %v970_v61  ;;  %v2933_v37 = vpop.f32.mrf.mxu1 }
  0xdf   : > { %v670_v4 = vadd.f32 %v2886_v44, %v669_v2  ;;  %v912_v5 = vmax.f32 %v678_v0, 0.0 }
  0xe0   : > { %v2455_v6 = vpop.f32.mrf.mxu0  ;;  %v2938_v42 = vpop.f32.mrf.mxu1 }
  0xe1   : > { %v910_v9 = vmax.f32 %v670_v4, 0.0  ;;  %v972_v15 = vpack.c.bf16 %v912_v5, %v911_v10  ;;  %v691_v20 = vadd.f32 %v2455_v6, %v2886_v44 }
  0xe2   : > { %v682_v11 = vpop.f32.mrf.mxu0  ;;  %v2941_v47 = vpop.f32.mrf.mxu1 }
  0xe3   : > { %v971_v14 = vpack.c.bf16 %v910_v9, %v909_v8  ;;  %v683_v18 = vadd.f32 %v2886_v44, %v682_v11  ;;  %v915_v30 = vmax.f32 %v691_v20, 0.0 }
  0xe4   : > { %v2456_v16 = vpop.f32.mrf.mxu0  ;;  %v2943_v52 = vpop.f32.mrf.mxu1 }
  0xe5   : > { %v694_v19 = vadd.f32 %v2456_v16, %v2886_v44  ;;  %2529 = vmatprep.mubr.bf16.mxu1 %v971_v14  ;;  %v913_v28 = vmax.f32 %v683_v18, 0.0 }
  0xe6   : > { %v685_v21 = vpop.f32.mrf.mxu0  ;;  %2530 = vmatmul.mubr.bf16.gmra.mxu1 %v972_v15  ;;  %v2945_v56 = vpop.f32.mrf.mxu1 }
  0xe7   : > { %v686_v24 = vadd.f32 %v2886_v44, %v685_v21  ;;  %v916_v25 = vmax.f32 %v694_v19, 0.0 }
  0xe8   : > { %v2459_v26 = vpop.f32.mrf.mxu0  ;;  %v2950_v61 = vpop.f32.mrf.mxu1 }
  0xe9   : > { %v914_v29 = vmax.f32 %v686_v24, 0.0  ;;  %v974_v35 = vpack.c.bf16 %v916_v25, %v915_v30  ;;  %v707_v40 = vadd.f32 %v2459_v26, %v2886_v44 }
  0xea   : > { %v698_v31 = vpop.f32.mrf.mxu0  ;;  %v2953_v1 = vpop.f32.mrf.mxu1 }
  0xeb   : > { %v973_v34 = vpack.c.bf16 %v914_v29, %v913_v28  ;;  %v699_v38 = vadd.f32 %v2886_v44, %v698_v31  ;;  %v919_v50 = vmax.f32 %v707_v40, 0.0 }
  0xec   : > { %v2460_v36 = vpop.f32.mrf.mxu0  ;;  %v2955_v6 = vpop.f32.mrf.mxu1 }
  0xed   : > { %v710_v39 = vadd.f32 %v2460_v36, %v2886_v44  ;;  %2533 = vmatprep.mubr.bf16.mxu1 %v973_v34  ;;  %v917_v48 = vmax.f32 %v699_v38, 0.0 }
  0xee   : > { %v701_v41 = vpop.f32.mrf.mxu0  ;;  %2534 = vmatmul.mubr.bf16.gmra.mxu1 %v974_v35  ;;  %v2957_v11 = vpop.f32.mrf.mxu1 }
  0xef   : > { %v702_v43 = vadd.f32 %v2886_v44, %v701_v41  ;;  %v920_v45 = vmax.f32 %v710_v39, 0.0 }
  0xf0   : > { %v2463_v46 = vpop.f32.mrf.mxu0  ;;  %v2963_v21 = vpop.f32.mrf.mxu1 }
  0xf1   : > { %v918_v49 = vmax.f32 %v702_v43, 0.0  ;;  %v976_v54 = vpack.c.bf16 %v920_v45, %v919_v50  ;;  %v723_v59 = vadd.f32 %v2463_v46, %v2886_v44  ;;  %v779_v50 = vadd.f32 %v2886_v44, %v2910_v12 }
  0xf2   : > { %v714_v51 = vpop.f32.mrf.mxu0  ;;  %v2965_v31 = vpop.f32.mrf.mxu1 }
  0xf3   : > { %v975_v53 = vpack.c.bf16 %v918_v49, %v917_v48  ;;  %v715_v57 = vadd.f32 %v2886_v44, %v714_v51  ;;  %v923_v4 = vmax.f32 %v723_v59, 0.0  ;;  %v782_v51 = vadd.f32 %v2886_v44, %v2920_v22 }
  0xf4   : > { %v2464_v55 = vpop.f32.mrf.mxu0  ;;  %v2971_v41 = vpop.f32.mrf.mxu1 }
  0xf5   : > { %v726_v58 = vadd.f32 %v2464_v55, %v2886_v44  ;;  %2537 = vmatprep.mubr.bf16.mxu1 %v975_v53  ;;  %v921_v2 = vmax.f32 %v715_v57, 0.0  ;;  %v938_v12 = vmax.f32 %v782_v51, 0.0  ;;  %v838_v51 = vadd.f32 %v2957_v11, %v2886_v44 }
  0xf6   : > { %v717_v60 = vpop.f32.mrf.mxu0  ;;  %2538 = vmatmul.mubr.bf16.gmra.mxu1 %v976_v54  ;;  %v2977_v55 = vpop.f32.mrf.mxu1 }
  0xf7   : > { %v718_v62 = vadd.f32 %v2886_v44, %v717_v60  ;;  %v924_v63 = vmax.f32 %v726_v58, 0.0  ;;  %v854_v11 = vadd.f32 %v2977_v55, %v2886_v44 }
  0xf8   : > { %v2467_v0 = vpop.f32.mrf.mxu0 }
  0xf9   : > { %v922_v3 = vmax.f32 %v718_v62, 0.0  ;;  %v978_v9 = vpack.c.bf16 %v924_v63, %v923_v4  ;;  %v739_v15 = vadd.f32 %v2467_v0, %v2886_v44  ;;  %v937_v62 = vmax.f32 %v779_v50, 0.0 }
  0xfa   : > { %v730_v5 = vpop.f32.mrf.mxu0  ;;  %v835_v50 = vadd.f32 %v2953_v1, %v2886_v44  ;;  %v851_v1 = vadd.f32 %v2965_v31, %v2886_v44 }
  0xfb   : > { %v977_v8 = vpack.c.bf16 %v922_v3, %v921_v2  ;;  %v731_v13 = vadd.f32 %v2886_v44, %v730_v5  ;;  %v927_v25 = vmax.f32 %v739_v15, 0.0  ;;  %v845_v2 = vpop.f32.mrf.mxu1  ;;  %v790_v15 = vadd.f32 %v2915_v17, %v2886_v44 }
  0xfc   : > { %v2468_v10 = vpop.f32.mrf.mxu0  ;;  %v803_v17 = vadd.f32 %v2926_v27, %v2886_v44  ;;  %v819_v27 = vadd.f32 %v2941_v47, %v2886_v44  ;;  %v843_v47 = vadd.f32 %v2886_v44, %v2971_v41 }
  0xfd   : > { %v742_v14 = vadd.f32 %v2468_v10, %v2886_v44  ;;  %2541 = vmatprep.mubr.bf16.mxu1 %v977_v8  ;;  %v925_v23 = vmax.f32 %v731_v13, 0.0  ;;  %v985_v8 = vpack.c.bf16 %v938_v12, %v937_v62  ;;  %v798_v10 = vadd.f32 %v2886_v44, %v2938_v42 }
  0xfe   : > { %v733_v16 = vpop.f32.mrf.mxu0  ;;  %2542 = vmatmul.mubr.bf16.gmra.mxu1 %v978_v9  ;;  %v795_v9 = vadd.f32 %v2886_v44, %v2928_v32  ;;  %v787_v13 = vadd.f32 %v2908_v7, %v2886_v44  ;;  %v811_v42 = vadd.f32 %v2886_v44, %v2943_v52  ;;  %v814_v7 = vadd.f32 %v2886_v44, %v2950_v61 }
  0xff   : > { %v734_v18 = vadd.f32 %v2886_v44, %v733_v16  ;;  %v928_v19 = vmax.f32 %v742_v14, 0.0  ;;  %v2991_v16 = vpop.f32.mrf.mxu1  ;;  %v827_v52 = vadd.f32 %v2886_v44, %v2955_v6  ;;  %v830_v61 = vadd.f32 %v2886_v44, %v2963_v21 }
 0x100   : > { %v2471_v20 = vpop.f32.mrf.mxu0  ;;  %v947_v6 = vmax.f32 %v819_v27, 0.0  ;;  %v867_v31 = vadd.f32 %v2991_v16, %v2886_v44 }
 0x101   : > { %v926_v24 = vmax.f32 %v734_v18, 0.0  ;;  %v980_v29 = vpack.c.bf16 %v928_v19, %v927_v25  ;;  %v755_v35 = vadd.f32 %v2471_v20, %v2886_v44  ;;  %v941_v18 = vmax.f32 %v795_v9, 0.0  ;;  %v858_v32 = vpop.f32.mrf.mxu1 }
 0x102   : > { %v746_v26 = vpop.f32.mrf.mxu0  ;;  %v942_v19 = vmax.f32 %v798_v10, 0.0  ;;  %v939_v20 = vmax.f32 %v787_v13, 0.0  ;;  %v859_v41 = vadd.f32 %v2886_v44, %v858_v32 }
 0x103   : > { %v979_v28 = vpack.c.bf16 %v926_v24, %v925_v23  ;;  %v747_v33 = vadd.f32 %v2886_v44, %v746_v26  ;;  %v931_v46 = vmax.f32 %v755_v35, 0.0  ;;  %v940_v23 = vmax.f32 %v790_v15, 0.0 }
 0x104   : > { %v2472_v30 = vpop.f32.mrf.mxu0  ;;  %v987_v24 = vpack.c.bf16 %v942_v19, %v941_v18  ;;  %v806_v26 = vadd.f32 %v2933_v37, %v2886_v44  ;;  %v822_v37 = vadd.f32 %v2945_v56, %v2886_v44  ;;  %v846_v56 = vadd.f32 %v2886_v44, %v845_v2 }
 0x105   : > { %v758_v34 = vadd.f32 %v2472_v30, %v2886_v44  ;;  %2545 = vmatprep.mubr.bf16.mxu1 %v979_v28  ;;  %v929_v43 = vmax.f32 %v747_v33, 0.0  ;;  %v986_v25 = vpack.c.bf16 %v940_v23, %v939_v20  ;;  %v2500_v28 = vpop.f32.mrf.mxu1  ;;  %v946_v30 = vmax.f32 %v814_v7, 0.0 }
 0x106   : > { %v749_v36 = vpop.f32.mrf.mxu0  ;;  %2546 = vmatmul.mubr.bf16.gmra.mxu1 %v980_v29  ;;  %v945_v29 = vmax.f32 %v811_v42, 0.0  ;;  %v943_v33 = vmax.f32 %v803_v17, 0.0  ;;  %v957_v2 = vmax.f32 %v859_v41, 0.0  ;;  %v959_v19 = vmax.f32 %v867_v31, 0.0 }
 0x107   : > { %v750_v38 = vadd.f32 %v2886_v44, %v749_v36  ;;  %v932_v39 = vmax.f32 %v758_v34, 0.0  ;;  %v944_v34 = vmax.f32 %v806_v26, 0.0  ;;  %v861_v35 = vpop.f32.mrf.mxu1 }
 0x108   : > { %v2475_v40 = vpop.f32.mrf.mxu0  ;;  %v989_v36 = vpack.c.bf16 %v946_v30, %v945_v29 }
 0x109   : > { %v930_v45 = vmax.f32 %v750_v38, 0.0  ;;  %v982_v53 = vpack.c.bf16 %v932_v39, %v931_v46  ;;  %v771_v59 = vadd.f32 %v2475_v40, %v2886_v44  ;;  %v988_v38 = vpack.c.bf16 %v944_v34, %v943_v33  ;;  %v2503_v39 = vpop.f32.mrf.mxu1  ;;  %v2728_v40 = vld [vmem:[%s3230_s5] sm:$0xff]  }
 0x10a   : > { %v762_v48 = vpop.f32.mrf.mxu0  ;;  %v948_v46 = vmax.f32 %v822_v37, 0.0  ;;  %2603 = vmatprep.subr.bf16.mxu0 %v2728_v40  ;;  %v3039_v37 = vld [vmem:[%s3229_s4] ss:$0 sm:$0xff] }
 0x10b   : > { %v981_v49 = vpack.c.bf16 %v930_v45, %v929_v43  ;;  %v763_v57 = vadd.f32 %v2886_v44, %v762_v48  ;;  %v935_v4 = vmax.f32 %v771_v59, 0.0  ;;  %v949_v43 = vmax.f32 %v827_v52, 0.0  ;;  %v874_v48 = vpop.f32.mrf.mxu1  ;;  %2604 = vmatpush3.bf16.msra.mxu0 %v2728_v40 }
 0x10c   : > { %v2476_v54 = vpop.f32.mrf.mxu0  ;;  %v950_v45 = vmax.f32 %v830_v61, 0.0  ;;  %v952_v59 = vmax.f32 %v838_v51, 0.0  ;;  %v875_v9 = vadd.f32 %v2886_v44, %v874_v48 }
 0x10d   : > { %v774_v58 = vadd.f32 %v2476_v54, %v2886_v44  ;;  %2549 = vmatprep.mubr.bf16.mxu1 %v981_v49  ;;  %v933_v22 = vmax.f32 %v763_v57, 0.0  ;;  %v990_v49 = vpack.c.bf16 %v948_v46, %v947_v6  ;;  %v953_v54 = vmax.f32 %v843_v47, 0.0 }
 0x10e   : > { %v765_v60 = vpop.f32.mrf.mxu0  ;;  %2550 = vmatmul.mubr.bf16.gmra.mxu1 %v982_v53  ;;  %v991_v21 = vpack.c.bf16 %v950_v45, %v949_v43  ;;  %v2504_v53 = vpop.f32.mrf.mxu1  ;;  %v954_v57 = vmax.f32 %v846_v56, 0.0  ;;  %v961_v15 = vmax.f32 %v875_v9, 0.0 }
 0x10f   : > { %v766_v63 = vadd.f32 %v2886_v44, %v765_v60  ;;  %v936_v0 = vmax.f32 %v774_v58, 0.0  ;;  %v951_v58 = vmax.f32 %v835_v50, 0.0  ;;  %v886_v16 = vadd.f32 %v2504_v53, %v2886_v44 }
 0x110   : > { %v877_v60 = vpop.f32.mrf.mxu1  ;;  %v993_v62 = vpack.c.bf16 %v954_v57, %v953_v54 }
 0x111   : > { %v934_v3 = vmax.f32 %v766_v63, 0.0  ;;  %v984_v14 = vpack.c.bf16 %v936_v0, %v935_v4  ;;  %v862_v63 = vadd.f32 %v2886_v44, %v861_v35  ;;  %v992_v12 = vpack.c.bf16 %v952_v59, %v951_v58 }
 0x112   : > { %v2507_v0 = vpop.f32.mrf.mxu1  ;;  %v956_v4 = vmax.f32 %v854_v11, 0.0  ;;  %v878_v10 = vadd.f32 %v2886_v44, %v877_v60  ;;  %v964_v29 = vmax.f32 %v886_v16, 0.0 }
 0x113   : > { %v983_v5 = vpack.c.bf16 %v934_v3, %v933_v22  ;;  %v958_v22 = vmax.f32 %v862_v63, 0.0  ;;  %v955_v3 = vmax.f32 %v851_v1, 0.0  ;;  %v899_v34 = vadd.f32 %v2507_v0, %v2886_v44 }
 0x114   : > { %v962_v18 = vmax.f32 %v878_v10, 0.0 }
 0x115   : > { %2553 = vmatprep.mubr.bf16.mxu1 %v983_v5  ;;  %v890_v5 = vpop.f32.mrf.mxu1  ;;  %v994_v13 = vpack.c.bf16 %v956_v4, %v955_v3 }
 0x116   : > { %2554 = vmatmul.mubr.bf16.gmra.mxu1 %v984_v14  ;;  %v870_v14 = vadd.f32 %v2500_v28, %v2886_v44  ;;  %v997_v32 = vpack.c.bf16 %v962_v18, %v961_v15 }
 0x117   : > { %2557 = vmatprep.mubr.bf16.mxu1 %v985_v8  ;;  %v995_v8 = vpack.c.bf16 %v958_v22, %v957_v2  ;;  %v2508_v55 = vpop.f32.mrf.mxu1 }
 0x118   : > { %v960_v20 = vmax.f32 %v870_v14, 0.0  ;;  %v902_v35 = vadd.f32 %v2508_v55, %v2886_v44 }
 0x119   : > { %v893_v23 = vpop.f32.mrf.mxu1 }
 0x11a   : > { %v894_v42 = vadd.f32 %v2886_v44, %v893_v23  ;;  %v996_v7 = vpack.c.bf16 %v960_v20, %v959_v19  ;;  %v968_v52 = vmax.f32 %v902_v35, 0.0 }
 0x11c   : > { %v966_v26 = vmax.f32 %v894_v42, 0.0 }
 0x11e   : > { %2558 = vmatmul.mubr.bf16.gmra.mxu1 %v986_v25  ;;  %v883_v25 = vadd.f32 %v2503_v39, %v2886_v44 }
 0x11f   : > { %2561 = vmatprep.mubr.bf16.mxu1 %v987_v24  ;;  %v891_v24 = vadd.f32 %v2886_v44, %v890_v5 }
 0x120   : > { %v963_v28 = vmax.f32 %v883_v25, 0.0 }
 0x121   : > { %v965_v17 = vmax.f32 %v891_v24, 0.0 }
 0x122   : > { %v998_v33 = vpack.c.bf16 %v964_v29, %v963_v28 }
 0x123   : > { %v999_v30 = vpack.c.bf16 %v966_v26, %v965_v17 }
 0x126   : > { %2562 = vmatmul.mubr.bf16.gmra.mxu1 %v988_v38 }
 0x127   : > { %2565 = vmatprep.mubr.bf16.mxu1 %v989_v36  ;;  %v967_v36 = vmax.f32 %v899_v34, 0.0 }
 0x129   : > { %v1000_v61 = vpack.c.bf16 %v968_v52, %v967_v36 }
 0x12e   : > { %2566 = vmatmul.mubr.bf16.gmra.mxu1 %v990_v49 }
 0x12f   : > { %2569 = vmatprep.mubr.bf16.mxu1 %v991_v21 }
 0x136   : > { %2570 = vmatmul.mubr.bf16.gmra.mxu1 %v992_v12 }
 0x137   : > { %2573 = vmatprep.mubr.bf16.mxu1 %v993_v62 }
 0x13e   : > { %2574 = vmatmul.mubr.bf16.gmra.mxu1 %v994_v13 }
 0x13f   : > { %2577 = vmatprep.mubr.bf16.mxu1 %v995_v8 }
 0x146   : > { %2578 = vmatmul.mubr.bf16.gmra.mxu1 %v996_v7 }
 0x147   : > { %2581 = vmatprep.mubr.bf16.mxu1 %v997_v32 }
 0x14e   : > { %2582 = vmatmul.mubr.bf16.gmra.mxu1 %v998_v33 }
 0x14f   : > { %2585 = vmatprep.mubr.bf16.mxu1 %v999_v30 }
 0x156   : > { %2586 = vmatmul.mubr.bf16.gmra.mxu1 %v1000_v61 }
 0x19e   : > { %v2527_v38 = vpop.f32.mrf.mxu1 }
 0x19f   : > { %v1115_v44 = vadd.f32 %v2527_v38, %v3039_v37 }
 0x1a0   : > { %v1106_v27 = vpop.f32.mrf.mxu1 }
 0x1a1   : > { %v1107_v40 = vadd.f32 %v3039_v37, %v1106_v27  ;;  %v1363_v56 = vmax.f32 %v1115_v44, 0.0 }
 0x1a2   : > { %v2528_v39 = vpop.f32.mrf.mxu1 }
 0x1a3   : > { %v1118_v43 = vadd.f32 %v2528_v39, %v3039_v37  ;;  %v1361_v21 = vmax.f32 %v1107_v40, 0.0 }
 0x1a4   : > { %v1109_v45 = vpop.f32.mrf.mxu1 }
 0x1a5   : > { %v1110_v6 = vadd.f32 %v3039_v37, %v1109_v45  ;;  %v1364_v46 = vmax.f32 %v1118_v43, 0.0 }
 0x1a6   : > { %v2531_v48 = vpop.f32.mrf.mxu1 }
 0x1a7   : > { %v1362_v47 = vmax.f32 %v1110_v6, 0.0  ;;  %v1426_v51 = vpack.c.bf16 %v1364_v46, %v1363_v56  ;;  %v1131_v58 = vadd.f32 %v2531_v48, %v3039_v37 }
 0x1a8   : > { %v1122_v49 = vpop.f32.mrf.mxu1 }
 0x1a9   : > { %v1425_v50 = vpack.c.bf16 %v1362_v47, %v1361_v21  ;;  %v1123_v54 = vadd.f32 %v3039_v37, %v1122_v49  ;;  %v1367_v1 = vmax.f32 %v1131_v58, 0.0 }
 0x1aa   : > { %v2532_v53 = vpop.f32.mrf.mxu1 }
 0x1ab   : > { %v1134_v57 = vadd.f32 %v2532_v53, %v3039_v37  ;;  %2605 = vmatprep.mubr.bf16.mxu0 %v1425_v50  ;;  %v1365_v63 = vmax.f32 %v1123_v54, 0.0 }
 0x1ac   : > { %v1125_v59 = vpop.f32.mrf.mxu1  ;;  %2606 = vmatmul.mubr.bf16.vlgmr.msra.gmra.mxu0 %v1426_v51 }
 0x1ad   : > { %v1126_v60 = vadd.f32 %v3039_v37, %v1125_v59  ;;  %v1368_v62 = vmax.f32 %v1134_v57, 0.0 }
 0x1ae   : > { %v2535_v41 = vpop.f32.mrf.mxu1 }
 0x1af   : > { %v1366_v12 = vmax.f32 %v1126_v60, 0.0  ;;  %v1428_v2 = vpack.c.bf16 %v1368_v62, %v1367_v1  ;;  %v1147_v5 = vadd.f32 %v2535_v41, %v3039_v37 }
 0x1b0   : > { %v1138_v11 = vpop.f32.mrf.mxu1 }
 0x1b1   : > { %v1427_v0 = vpack.c.bf16 %v1366_v12, %v1365_v63  ;;  %v1139_v3 = vadd.f32 %v3039_v37, %v1138_v11  ;;  %v1371_v55 = vmax.f32 %v1147_v5, 0.0 }
 0x1b2   : > { %v2536_v22 = vpop.f32.mrf.mxu1 }
 0x1b3   : > { %v1150_v4 = vadd.f32 %v2536_v22, %v3039_v37  ;;  %2609 = vmatprep.mubr.bf16.mxu0 %v1427_v0  ;;  %v1369_v31 = vmax.f32 %v1139_v3, 0.0 }
 0x1b4   : > { %v1141_v8 = vpop.f32.mrf.mxu1  ;;  %2610 = vmatmul.mubr.bf16.gmra.mxu0 %v1428_v2 }
 0x1b5   : > { %v1142_v9 = vadd.f32 %v3039_v37, %v1141_v8  ;;  %v1372_v10 = vmax.f32 %v1150_v4, 0.0 }
 0x1b6   : > { %v2539_v13 = vpop.f32.mrf.mxu1 }
 0x1b7   : > { %v1370_v14 = vmax.f32 %v1142_v9, 0.0  ;;  %v1430_v19 = vpack.c.bf16 %v1372_v10, %v1371_v55  ;;  %v1163_v24 = vadd.f32 %v2539_v13, %v3039_v37 }
 0x1b8   : > { %v1154_v15 = vpop.f32.mrf.mxu1 }
 0x1b9   : > { %v1429_v18 = vpack.c.bf16 %v1370_v14, %v1369_v31  ;;  %v1155_v23 = vadd.f32 %v3039_v37, %v1154_v15  ;;  %v1375_v28 = vmax.f32 %v1163_v24, 0.0 }
 0x1ba   : > { %v2540_v20 = vpop.f32.mrf.mxu1 }
 0x1bb   : > { %v1166_v32 = vadd.f32 %v2540_v20, %v3039_v37  ;;  %2613 = vmatprep.mubr.bf16.mxu0 %v1429_v18  ;;  %v1373_v17 = vmax.f32 %v1155_v23, 0.0 }
 0x1bc   : > { %v1157_v42 = vpop.f32.mrf.mxu1  ;;  %2614 = vmatmul.mubr.bf16.gmra.mxu0 %v1430_v19 }
 0x1bd   : > { %v1158_v7 = vadd.f32 %v3039_v37, %v1157_v42  ;;  %v1376_v25 = vmax.f32 %v1166_v32, 0.0 }
 0x1be   : > { %v2543_v16 = vpop.f32.mrf.mxu1 }
 0x1bf   : > { %v1374_v26 = vmax.f32 %v1158_v7, 0.0  ;;  %v1432_v33 = vpack.c.bf16 %v1376_v25, %v1375_v28  ;;  %v1179_v52 = vadd.f32 %v2543_v16, %v3039_v37 }
 0x1c0   : > { %v1170_v29 = vpop.f32.mrf.mxu1 }
 0x1c1   : > { %v1431_v30 = vpack.c.bf16 %v1374_v26, %v1373_v17  ;;  %v1171_v35 = vadd.f32 %v3039_v37, %v1170_v29  ;;  %v1379_v44 = vmax.f32 %v1179_v52, 0.0 }
 0x1c2   : > { %v2544_v34 = vpop.f32.mrf.mxu1 }
 0x1c3   : > { %v1182_v36 = vadd.f32 %v2544_v34, %v3039_v37  ;;  %2617 = vmatprep.mubr.bf16.mxu0 %v1431_v30  ;;  %v1377_v40 = vmax.f32 %v1171_v35, 0.0 }
 0x1c4   : > { %v1173_v61 = vpop.f32.mrf.mxu1  ;;  %2618 = vmatmul.mubr.bf16.gmra.mxu0 %v1432_v33 }
 0x1c5   : > { %v1174_v38 = vadd.f32 %v3039_v37, %v1173_v61  ;;  %v1380_v27 = vmax.f32 %v1182_v36, 0.0 }
 0x1c6   : > { %v2547_v39 = vpop.f32.mrf.mxu1 }
 0x1c7   : > { %v1378_v43 = vmax.f32 %v1174_v38, 0.0  ;;  %v1434_v46 = vpack.c.bf16 %v1380_v27, %v1379_v44  ;;  %v1195_v56 = vadd.f32 %v2547_v39, %v3039_v37 }
 0x1c8   : > { %v1186_v45 = vpop.f32.mrf.mxu1 }
 0x1c9   : > { %v1433_v6 = vpack.c.bf16 %v1378_v43, %v1377_v40  ;;  %v1187_v21 = vadd.f32 %v3039_v37, %v1186_v45  ;;  %v1383_v58 = vmax.f32 %v1195_v56, 0.0 }
 0x1ca   : > { %v2548_v48 = vpop.f32.mrf.mxu1 }
 0x1cb   : > { %v1198_v47 = vadd.f32 %v2548_v48, %v3039_v37  ;;  %2621 = vmatprep.mubr.bf16.mxu0 %v1433_v6  ;;  %v1381_v54 = vmax.f32 %v1187_v21, 0.0 }
 0x1cc   : > { %v1189_v49 = vpop.f32.mrf.mxu1  ;;  %2622 = vmatmul.mubr.bf16.gmra.mxu0 %v1434_v46 }
 0x1cd   : > { %v1190_v50 = vadd.f32 %v3039_v37, %v1189_v49  ;;  %v1384_v51 = vmax.f32 %v1198_v47, 0.0 }
 0x1ce   : > { %v2551_v53 = vpop.f32.mrf.mxu1 }
 0x1cf   : > { %v1382_v57 = vmax.f32 %v1190_v50, 0.0  ;;  %v1436_v62 = vpack.c.bf16 %v1384_v51, %v1383_v58  ;;  %v1211_v1 = vadd.f32 %v2551_v53, %v3039_v37 }
 0x1d0   : > { %v1202_v59 = vpop.f32.mrf.mxu1 }
 0x1d1   : > { %v1435_v60 = vpack.c.bf16 %v1382_v57, %v1381_v54  ;;  %v1203_v63 = vadd.f32 %v3039_v37, %v1202_v59  ;;  %v1387_v5 = vmax.f32 %v1211_v1, 0.0 }
 0x1d2   : > { %v2552_v41 = vpop.f32.mrf.mxu1 }
 0x1d3   : > { %v1214_v12 = vadd.f32 %v2552_v41, %v3039_v37  ;;  %2625 = vmatprep.mubr.bf16.mxu0 %v1435_v60  ;;  %v1385_v3 = vmax.f32 %v1203_v63, 0.0 }
 0x1d4   : > { %v1205_v11 = vpop.f32.mrf.mxu1  ;;  %2626 = vmatmul.mubr.bf16.gmra.mxu0 %v1436_v62 }
 0x1d5   : > { %v1206_v0 = vadd.f32 %v3039_v37, %v1205_v11  ;;  %v1388_v2 = vmax.f32 %v1214_v12, 0.0 }
 0x1d6   : > { %v2555_v22 = vpop.f32.mrf.mxu1 }
 0x1d7   : > { %v1386_v4 = vmax.f32 %v1206_v0, 0.0  ;;  %v1438_v10 = vpack.c.bf16 %v1388_v2, %v1387_v5  ;;  %v1227_v55 = vadd.f32 %v2555_v22, %v3039_v37 }
 0x1d8   : > { %v1218_v8 = vpop.f32.mrf.mxu1 }
 0x1d9   : > { %v1437_v9 = vpack.c.bf16 %v1386_v4, %v1385_v3  ;;  %v1219_v31 = vadd.f32 %v3039_v37, %v1218_v8  ;;  %v1391_v24 = vmax.f32 %v1227_v55, 0.0 }
 0x1da   : > { %v2556_v13 = vpop.f32.mrf.mxu1 }
 0x1db   : > { %v1230_v14 = vadd.f32 %v2556_v13, %v3039_v37  ;;  %2629 = vmatprep.mubr.bf16.mxu0 %v1437_v9  ;;  %v1389_v23 = vmax.f32 %v1219_v31, 0.0 }
 0x1dc   : > { %v1221_v15 = vpop.f32.mrf.mxu1  ;;  %2630 = vmatmul.mubr.bf16.gmra.mxu0 %v1438_v10 }
 0x1dd   : > { %v1222_v18 = vadd.f32 %v3039_v37, %v1221_v15  ;;  %v1392_v19 = vmax.f32 %v1230_v14, 0.0 }
 0x1de   : > { %v2559_v20 = vpop.f32.mrf.mxu1 }
 0x1df   : > { %v1390_v32 = vmax.f32 %v1222_v18, 0.0  ;;  %v1440_v25 = vpack.c.bf16 %v1392_v19, %v1391_v24  ;;  %v1243_v28 = vadd.f32 %v2559_v20, %v3039_v37 }
 0x1e0   : > { %v1234_v42 = vpop.f32.mrf.mxu1 }
 0x1e1   : > { %v1439_v7 = vpack.c.bf16 %v1390_v32, %v1389_v23  ;;  %v1235_v17 = vadd.f32 %v3039_v37, %v1234_v42  ;;  %v1395_v52 = vmax.f32 %v1243_v28, 0.0 }
 0x1e2   : > { %v2560_v16 = vpop.f32.mrf.mxu1 }
 0x1e3   : > { %v1246_v26 = vadd.f32 %v2560_v16, %v3039_v37  ;;  %2633 = vmatprep.mubr.bf16.mxu0 %v1439_v7  ;;  %v1393_v35 = vmax.f32 %v1235_v17, 0.0 }
 0x1e4   : > { %v1237_v29 = vpop.f32.mrf.mxu1  ;;  %2634 = vmatmul.mubr.bf16.gmra.mxu0 %v1440_v25 }
 0x1e5   : > { %v1238_v30 = vadd.f32 %v3039_v37, %v1237_v29  ;;  %v1396_v33 = vmax.f32 %v1246_v26, 0.0 }
 0x1e6   : > { %v2563_v34 = vpop.f32.mrf.mxu1 }
 0x1e7   : > { %v1394_v36 = vmax.f32 %v1238_v30, 0.0  ;;  %v1442_v27 = vpack.c.bf16 %v1396_v33, %v1395_v52  ;;  %v1259_v44 = vadd.f32 %v2563_v34, %v3039_v37 }
 0x1e8   : > { %v1250_v61 = vpop.f32.mrf.mxu1 }
 0x1e9   : > { %v1441_v38 = vpack.c.bf16 %v1394_v36, %v1393_v35  ;;  %v1251_v40 = vadd.f32 %v3039_v37, %v1250_v61  ;;  %v1399_v56 = vmax.f32 %v1259_v44, 0.0 }
 0x1ea   : > { %v2564_v39 = vpop.f32.mrf.mxu1 }
 0x1eb   : > { %v1262_v43 = vadd.f32 %v2564_v39, %v3039_v37  ;;  %2637 = vmatprep.mubr.bf16.mxu0 %v1441_v38  ;;  %v1397_v21 = vmax.f32 %v1251_v40, 0.0 }
 0x1ec   : > { %v1253_v45 = vpop.f32.mrf.mxu1  ;;  %2638 = vmatmul.mubr.bf16.gmra.mxu0 %v1442_v27 }
 0x1ed   : > { %v1254_v6 = vadd.f32 %v3039_v37, %v1253_v45  ;;  %v1400_v46 = vmax.f32 %v1262_v43, 0.0 }
 0x1ee   : > { %v2567_v48 = vpop.f32.mrf.mxu1 }
 0x1ef   : > { %v1398_v47 = vmax.f32 %v1254_v6, 0.0  ;;  %v1444_v51 = vpack.c.bf16 %v1400_v46, %v1399_v56  ;;  %v1275_v58 = vadd.f32 %v2567_v48, %v3039_v37 }
 0x1f0   : > { %v1266_v49 = vpop.f32.mrf.mxu1 }
 0x1f1   : > { %v1443_v50 = vpack.c.bf16 %v1398_v47, %v1397_v21  ;;  %v1267_v54 = vadd.f32 %v3039_v37, %v1266_v49  ;;  %v1403_v1 = vmax.f32 %v1275_v58, 0.0 }
 0x1f2   : > { %v2568_v53 = vpop.f32.mrf.mxu1 }
 0x1f3   : > { %v1278_v57 = vadd.f32 %v2568_v53, %v3039_v37  ;;  %2641 = vmatprep.mubr.bf16.mxu0 %v1443_v50  ;;  %v1401_v63 = vmax.f32 %v1267_v54, 0.0 }
 0x1f4   : > { %v1269_v59 = vpop.f32.mrf.mxu1  ;;  %2642 = vmatmul.mubr.bf16.gmra.mxu0 %v1444_v51 }
 0x1f5   : > { %v1270_v60 = vadd.f32 %v3039_v37, %v1269_v59  ;;  %v1404_v62 = vmax.f32 %v1278_v57, 0.0 }
 0x1f6   : > { %v2571_v41 = vpop.f32.mrf.mxu1 }
 0x1f7   : > { %v1402_v12 = vmax.f32 %v1270_v60, 0.0  ;;  %v1446_v2 = vpack.c.bf16 %v1404_v62, %v1403_v1  ;;  %v1291_v5 = vadd.f32 %v2571_v41, %v3039_v37 }
 0x1f8   : > { %v1282_v11 = vpop.f32.mrf.mxu1 }
 0x1f9   : > { %v1445_v0 = vpack.c.bf16 %v1402_v12, %v1401_v63  ;;  %v1283_v3 = vadd.f32 %v3039_v37, %v1282_v11  ;;  %v1407_v55 = vmax.f32 %v1291_v5, 0.0 }
 0x1fa   : > { %v2572_v22 = vpop.f32.mrf.mxu1 }
 0x1fb   : > { %v1294_v4 = vadd.f32 %v2572_v22, %v3039_v37  ;;  %2645 = vmatprep.mubr.bf16.mxu0 %v1445_v0  ;;  %v1405_v31 = vmax.f32 %v1283_v3, 0.0 }
 0x1fc   : > { %v1285_v8 = vpop.f32.mrf.mxu1  ;;  %2646 = vmatmul.mubr.bf16.gmra.mxu0 %v1446_v2 }
 0x1fd   : > { %v1286_v9 = vadd.f32 %v3039_v37, %v1285_v8  ;;  %v1408_v10 = vmax.f32 %v1294_v4, 0.0 }
 0x1fe   : > { %v2575_v13 = vpop.f32.mrf.mxu1 }
 0x1ff   : > { %v1406_v14 = vmax.f32 %v1286_v9, 0.0  ;;  %v1448_v19 = vpack.c.bf16 %v1408_v10, %v1407_v55  ;;  %v1307_v24 = vadd.f32 %v2575_v13, %v3039_v37  ;;  %v3108_v10 = vld [vmem:[%s3231_s6] ss:$0 sm:$0xff] }
 0x200   : > { %v1298_v15 = vpop.f32.mrf.mxu1 }
 0x201   : > { %v1447_v18 = vpack.c.bf16 %v1406_v14, %v1405_v31  ;;  %v1299_v23 = vadd.f32 %v3039_v37, %v1298_v15  ;;  %v1411_v28 = vmax.f32 %v1307_v24, 0.0 }
 0x202   : > { %v2576_v20 = vpop.f32.mrf.mxu1 }
 0x203   : > { %v1310_v32 = vadd.f32 %v2576_v20, %v3039_v37  ;;  %2649 = vmatprep.mubr.bf16.mxu0 %v1447_v18  ;;  %v1409_v17 = vmax.f32 %v1299_v23, 0.0 }
 0x204   : > { %v1301_v42 = vpop.f32.mrf.mxu1  ;;  %2650 = vmatmul.mubr.bf16.gmra.mxu0 %v1448_v19 }
 0x205   : > { %v1302_v7 = vadd.f32 %v3039_v37, %v1301_v42  ;;  %v1412_v25 = vmax.f32 %v1310_v32, 0.0 }
 0x206   : > { %v2579_v16 = vpop.f32.mrf.mxu1 }
 0x207   : > { %v1410_v26 = vmax.f32 %v1302_v7, 0.0  ;;  %v1450_v33 = vpack.c.bf16 %v1412_v25, %v1411_v28  ;;  %v1323_v52 = vadd.f32 %v2579_v16, %v3039_v37 }
 0x208   : > { %v1314_v29 = vpop.f32.mrf.mxu1 }
 0x209   : > { %v1449_v30 = vpack.c.bf16 %v1410_v26, %v1409_v17  ;;  %v1315_v35 = vadd.f32 %v3039_v37, %v1314_v29  ;;  %v1415_v44 = vmax.f32 %v1323_v52, 0.0 }
 0x20a   : > { %v2580_v34 = vpop.f32.mrf.mxu1 }
 0x20b   : > { %v1326_v36 = vadd.f32 %v2580_v34, %v3039_v37  ;;  %2653 = vmatprep.mubr.bf16.mxu0 %v1449_v30  ;;  %v1413_v40 = vmax.f32 %v1315_v35, 0.0 }
 0x20c   : > { %v1317_v61 = vpop.f32.mrf.mxu1  ;;  %2654 = vmatmul.mubr.bf16.gmra.mxu0 %v1450_v33 }
 0x20d   : > { %v1318_v38 = vadd.f32 %v3039_v37, %v1317_v61  ;;  %v1416_v27 = vmax.f32 %v1326_v36, 0.0 }
 0x20e   : > { %v2583_v39 = vpop.f32.mrf.mxu1 }
 0x20f   : > { %v1414_v43 = vmax.f32 %v1318_v38, 0.0  ;;  %v1452_v46 = vpack.c.bf16 %v1416_v27, %v1415_v44  ;;  %v1339_v56 = vadd.f32 %v2583_v39, %v3039_v37 }
 0x210   : > { %v1330_v45 = vpop.f32.mrf.mxu1 }
 0x211   : > { %v1451_v6 = vpack.c.bf16 %v1414_v43, %v1413_v40  ;;  %v1331_v21 = vadd.f32 %v3039_v37, %v1330_v45  ;;  %v1419_v58 = vmax.f32 %v1339_v56, 0.0 }
 0x212   : > { %v2584_v48 = vpop.f32.mrf.mxu1 }
 0x213   : > { %v1342_v47 = vadd.f32 %v2584_v48, %v3039_v37  ;;  %2657 = vmatprep.mubr.bf16.mxu0 %v1451_v6  ;;  %v1417_v54 = vmax.f32 %v1331_v21, 0.0 }
 0x214   : > { %v1333_v49 = vpop.f32.mrf.mxu1  ;;  %2658 = vmatmul.mubr.bf16.gmra.mxu0 %v1452_v46 }
 0x215   : > { %v1334_v50 = vadd.f32 %v3039_v37, %v1333_v49  ;;  %v1420_v51 = vmax.f32 %v1342_v47, 0.0 }
 0x216   : > { %v2587_v53 = vpop.f32.mrf.mxu1 }
 0x217   : > { %v1418_v57 = vmax.f32 %v1334_v50, 0.0  ;;  %v1454_v62 = vpack.c.bf16 %v1420_v51, %v1419_v58  ;;  %v1355_v1 = vadd.f32 %v2587_v53, %v3039_v37 }
 0x218   : > { %v1346_v59 = vpop.f32.mrf.mxu1 }
 0x219   : > { %v1453_v60 = vpack.c.bf16 %v1418_v57, %v1417_v54  ;;  %v1347_v63 = vadd.f32 %v3039_v37, %v1346_v59  ;;  %v1423_v4 = vmax.f32 %v1355_v1, 0.0 }
 0x21a   : > { %v2588_v41 = vpop.f32.mrf.mxu1 }
 0x21b   : > { %v1358_v12 = vadd.f32 %v2588_v41, %v3039_v37  ;;  %2661 = vmatprep.mubr.bf16.mxu0 %v1453_v60  ;;  %v1421_v22 = vmax.f32 %v1347_v63, 0.0 }
 0x21c   : > { %v1349_v11 = vpop.f32.mrf.mxu1  ;;  %2662 = vmatmul.mubr.bf16.gmra.mxu0 %v1454_v62 }
 0x21d   : > { %v1350_v0 = vadd.f32 %v3039_v37, %v1349_v11  ;;  %v1424_v2 = vmax.f32 %v1358_v12, 0.0 }
 0x21f   : > { %v1422_v3 = vmax.f32 %v1350_v0, 0.0  ;;  %v1456_v8 = vpack.c.bf16 %v1424_v2, %v1423_v4 }
 0x221   : > { %v1455_v5 = vpack.c.bf16 %v1422_v3, %v1421_v22 }
 0x223   : > { %2665 = vmatprep.mubr.bf16.mxu0 %v1455_v5 }
 0x224   : > { %2666 = vmatmul.mubr.bf16.gmra.mxu0 %v1456_v8 }
 0x26c   : > { %v2607_v9 = vpop.f32.mrf.mxu0 }
 0x26d   : > { %v1571_v31 = vadd.f32 %v2607_v9, %v3108_v10 }
 0x26e   : > { %v1562_v13 = vpop.f32.mrf.mxu0 }
 0x26f   : > { %v1563_v37 = vadd.f32 %v3108_v10, %v1562_v13  ;;  %v1819_v20 = vmax.f32 %v1571_v31, 0.0 }
 0x270   : > { %v2608_v14 = vpop.f32.mrf.mxu0 }
 0x271   : > { %v1574_v55 = vadd.f32 %v2608_v14, %v3108_v10  ;;  %v1817_v32 = vmax.f32 %v1563_v37, 0.0 }
 0x272   : > { %v1565_v15 = vpop.f32.mrf.mxu0 }
 0x273   : > { %v1820_v18 = vmax.f32 %v1574_v55, 0.0  ;;  %v1566_v19 = vadd.f32 %v3108_v10, %v1565_v15 }
 0x274   : > { %v2611_v23 = vpop.f32.mrf.mxu0 }
 0x275   : > { %v1818_v24 = vmax.f32 %v1566_v19, 0.0  ;;  %v1888_v42 = vmax.f32 %v1819_v20, %v1820_v18  ;;  %v1587_v16 = vadd.f32 %v2611_v23, %v3108_v10 }
 0x276   : > { %v1578_v7 = vpop.f32.mrf.mxu0 }
 0x277   : > { %v1881_v25 = vmax.f32 %v1817_v32, %v1818_v24  ;;  %v1579_v26 = vadd.f32 %v3108_v10, %v1578_v7  ;;  %v1889_v29 = vrot.slane %v1888_v42, 4  ;;  %v1823_v34 = vmax.f32 %v1587_v16, 0.0 }
 0x278   : > { %v2612_v17 = vpop.f32.mrf.mxu0 }
 0x279   : > { %v1590_v28 = vadd.f32 %v2612_v17, %v3108_v10  ;;  %v1882_v33 = vrot.slane %v1881_v25, 4  ;;  %v1821_v61 = vmax.f32 %v1579_v26, 0.0  ;;  %v1890_v39 = vmax.f32 %v1888_v42, %v1889_v29 }
 0x27a   : > { %v1581_v30 = vpop.f32.mrf.mxu0 }
 0x27b   : > { %v1824_v35 = vmax.f32 %v1590_v28, 0.0  ;;  %v1582_v36 = vadd.f32 %v3108_v10, %v1581_v30  ;;  %v1883_v43 = vmax.f32 %v1881_v25, %v1882_v33  ;;  %v1891_v47 = vrot.slane %v1890_v39, 2 }
 0x27c   : > { %v2615_v52 = vpop.f32.mrf.mxu0 }
 0x27d   : > { %v1902_v38 = vmax.f32 %v1823_v34, %v1824_v35  ;;  %v1822_v27 = vmax.f32 %v1582_v36, 0.0  ;;  %v1603_v6 = vadd.f32 %v2615_v52, %v3108_v10  ;;  %v1884_v50 = vrot.slane %v1883_v43, 2 }
 0x27e   : > { %v1594_v40 = vpop.f32.mrf.mxu0  ;;  %v1892_v63 = vmax.f32 %v1890_v39, %v1891_v47 }
 0x27f   : > { %v1903_v44 = vrot.slane %v1902_v38, 4  ;;  %v1895_v45 = vmax.f32 %v1821_v61, %v1822_v27  ;;  %v1595_v21 = vadd.f32 %v3108_v10, %v1594_v40  ;;  %v1827_v57 = vmax.f32 %v1603_v6, 0.0 }
 0x280   : > { %v2616_v46 = vpop.f32.mrf.mxu0  ;;  %v1885_v11 = vmax.f32 %v1883_v43, %v1884_v50  ;;  %v1893_v13 = vrot.slane %v1892_v63, 1 }
 0x281   : > { %v1896_v48 = vrot.slane %v1895_v45, 4  ;;  %v1606_v56 = vadd.f32 %v2616_v46, %v3108_v10  ;;  %v1904_v51 = vmax.f32 %v1902_v38, %v1903_v44  ;;  %v1825_v62 = vmax.f32 %v1595_v21, 0.0 }
 0x282   : > { %v1597_v49 = vpop.f32.mrf.mxu0  ;;  %v1886_v55 = vrot.slane %v1885_v11, 1  ;;  %v1894_v34 = vmax.f32 %v1892_v63, %v1893_v13 }
 0x283   : > { %v1897_v53 = vmax.f32 %v1895_v45, %v1896_v48  ;;  %v1598_v54 = vadd.f32 %v3108_v10, %v1597_v49  ;;  %v1828_v58 = vmax.f32 %v1606_v56, 0.0  ;;  %v1905_v0 = vrot.slane %v1904_v51, 2 }
 0x284   : > { %v2619_v59 = vpop.f32.mrf.mxu0  ;;  %v1887_v28 = vmax.f32 %v1885_v11, %v1886_v55 }
 0x285   : > { %v1898_v60 = vrot.slane %v1897_v53, 2  ;;  %v1826_v41 = vmax.f32 %v1598_v54, 0.0  ;;  %v1916_v12 = vmax.f32 %v1827_v57, %v1828_v58  ;;  %v1619_v4 = vadd.f32 %v2619_v59, %v3108_v10 }
 0x286   : > { %v1610_v1 = vpop.f32.mrf.mxu0  ;;  %v1906_v15 = vmax.f32 %v1904_v51, %v1905_v0  ;;  %v2138_v6 = vsel %vm2137_vm2, %v1894_v34, %v1887_v28 }
 0x287   : > { %v1909_v2 = vmax.f32 %v1825_v62, %v1826_v41  ;;  %v1899_v22 = vmax.f32 %v1897_v53, %v1898_v60  ;;  %v1917_v3 = vrot.slane %v1916_v12, 4  ;;  %v1611_v9 = vadd.f32 %v3108_v10, %v1610_v1 }
 0x288   : > { %v2620_v5 = vpop.f32.mrf.mxu0  ;;  %v1831_v32 = vmax.f32 %v1619_v4, 0.0  ;;  %v1907_v29 = vrot.slane %v1906_v15, 1 }
 0x289   : > { %v1910_v8 = vrot.slane %v1909_v2, 4  ;;  %v1918_v31 = vmax.f32 %v1916_v12, %v1917_v3  ;;  %v1622_v14 = vadd.f32 %v2620_v5, %v3108_v10  ;;  %v1900_v20 = vrot.slane %v1899_v22, 1 }
 0x28a   : > { %v1613_v37 = vpop.f32.mrf.mxu0  ;;  %v1829_v25 = vmax.f32 %v1611_v9, 0.0  ;;  %v1908_v46 = vmax.f32 %v1906_v15, %v1907_v29 }
 0x28b   : > { %v1911_v18 = vmax.f32 %v1909_v2, %v1910_v8  ;;  %v1614_v19 = vadd.f32 %v3108_v10, %v1613_v37  ;;  %v1919_v23 = vrot.slane %v1918_v31, 2  ;;  %v1832_v24 = vmax.f32 %v1622_v14, 0.0 }
 0x28c   : > { %v2623_v42 = vpop.f32.mrf.mxu0  ;;  %v1901_v35 = vmax.f32 %v1899_v22, %v1900_v20 }
 0x28d   : > { %v1912_v7 = vrot.slane %v1911_v18, 2  ;;  %v1830_v16 = vmax.f32 %v1614_v19, 0.0  ;;  %v1930_v17 = vmax.f32 %v1831_v32, %v1832_v24  ;;  %v1920_v36 = vmax.f32 %v1918_v31, %v1919_v23 }
 0x28e   : > { %v1626_v26 = vpop.f32.mrf.mxu0  ;;  %v1635_v44 = vadd.f32 %v2623_v42, %v3108_v10  ;;  %v2140_v47 = vsel %vm2139_vm3, %v1901_v35, %v2138_v6 }
 0x28f   : > { %v1913_v30 = vmax.f32 %v1911_v18, %v1912_v7  ;;  %v1923_v33 = vmax.f32 %v1829_v25, %v1830_v16  ;;  %v1931_v52 = vrot.slane %v1930_v17, 4  ;;  %v1627_v39 = vadd.f32 %v3108_v10, %v1626_v26 }
 0x290   : > { %v2624_v61 = vpop.f32.mrf.mxu0  ;;  %v1921_v53 = vrot.slane %v1920_v36, 1  ;;  %v1835_v60 = vmax.f32 %v1635_v44, 0.0  ;;  %v2142_v41 = vsel %vm2141_vm4, %v1908_v46, %v2140_v47 }
 0x291   : > { %v1914_v38 = vrot.slane %v1913_v30, 1  ;;  %v1924_v27 = vrot.slane %v1923_v33, 4  ;;  %v1638_v40 = vadd.f32 %v2624_v61, %v3108_v10  ;;  %v1932_v43 = vmax.f32 %v1930_v17, %v1931_v52 }
 0x292   : > { %v1629_v45 = vpop.f32.mrf.mxu0  ;;  %v1833_v57 = vmax.f32 %v1627_v39, 0.0  ;;  %v1922_v3 = vmax.f32 %v1920_v36, %v1921_v53 }
 0x293   : > { %v1925_v48 = vmax.f32 %v1923_v33, %v1924_v27  ;;  %v1630_v21 = vadd.f32 %v3108_v10, %v1629_v45  ;;  %v1915_v56 = vmax.f32 %v1913_v30, %v1914_v38  ;;  %v1933_v49 = vrot.slane %v1932_v43, 2 }
 0x294   : > { %v1836_v50 = vmax.f32 %v1638_v40, 0.0  ;;  %v2627_v51 = vpop.f32.mrf.mxu0 }
 0x295   : > { %v1926_v54 = vrot.slane %v1925_v48, 2  ;;  %v1834_v58 = vmax.f32 %v1630_v21, 0.0  ;;  %v1934_v59 = vmax.f32 %v1932_v43, %v1933_v49  ;;  %v2144_v1 = vsel %vm2143_vm5, %v1915_v56, %v2142_v41 }
 0x296   : > { %v1642_v62 = vpop.f32.mrf.mxu0  ;;  %v1944_v0 = vmax.f32 %v1835_v60, %v1836_v50  ;;  %v1651_v2 = vadd.f32 %v2627_v51, %v3108_v10  ;;  %v2146_v14 = vsel %vm2145_vm6, %v1922_v3, %v2144_v1 }
 0x297   : > { %v1927_v63 = vmax.f32 %v1925_v48, %v1926_v54  ;;  %v1937_v12 = vmax.f32 %v1833_v57, %v1834_v58  ;;  %v1935_v11 = vrot.slane %v1934_v59, 1  ;;  %v1643_v5 = vadd.f32 %v3108_v10, %v1642_v62 }
 0x298   : > { %v2628_v22 = vpop.f32.mrf.mxu0  ;;  %v1945_v15 = vrot.slane %v1944_v0, 4  ;;  %v1839_v18 = vmax.f32 %v1651_v2, 0.0 }
 0x299   : > { %v1928_v4 = vrot.slane %v1927_v63, 1  ;;  %v1938_v8 = vrot.slane %v1937_v12, 4  ;;  %v1654_v9 = vadd.f32 %v2628_v22, %v3108_v10  ;;  %v1936_v55 = vmax.f32 %v1934_v59, %v1935_v11 }
 0x29a   : > { %v1645_v13 = vpop.f32.mrf.mxu0  ;;  %v1837_v32 = vmax.f32 %v1643_v5, 0.0  ;;  %v1946_v26 = vmax.f32 %v1944_v0, %v1945_v15 }
 0x29b   : > { %v1929_v31 = vmax.f32 %v1927_v63, %v1928_v4  ;;  %v1646_v37 = vadd.f32 %v3108_v10, %v1645_v13  ;;  %v1840_v19 = vmax.f32 %v1654_v9, 0.0  ;;  %v1939_v7 = vmax.f32 %v1937_v12, %v1938_v8 }
 0x29c   : > { %v2631_v20 = vpop.f32.mrf.mxu0  ;;  %v1947_v39 = vrot.slane %v1946_v26, 2 }
 0x29d   : > { %v2148_v23 = vsel %vm2147_vm7, %v1929_v31, %v2146_v14  ;;  %v1838_v24 = vmax.f32 %v1646_v37, 0.0  ;;  %v1958_v25 = vmax.f32 %v1839_v18, %v1840_v19  ;;  %v1667_v29 = vadd.f32 %v2631_v20, %v3108_v10 }
 0x29e   : > { %v2150_v42 = vsel %vm2149_vm8, %v1936_v55, %v2148_v23  ;;  %v1658_v16 = vpop.f32.mrf.mxu0  ;;  %v1940_v35 = vrot.slane %v1939_v7, 2  ;;  %v1948_v51 = vmax.f32 %v1946_v26, %v1947_v39 }
 0x29f   : > { %2176 = vst [vmem:[%s3153_s9] sm:$0xff] %v2150_v42  ;;  %v1951_v17 = vmax.f32 %v1837_v32, %v1838_v24  ;;  %v1959_v28 = vrot.slane %v1958_v25, 4  ;;  %v1659_v34 = vadd.f32 %v3108_v10, %v1658_v16  ;;  %v1843_v40 = vmax.f32 %v1667_v29, 0.0 }
 0x2a0   : > { %v2632_v30 = vpop.f32.mrf.mxu0  ;;  %v1941_v48 = vmax.f32 %v1939_v7, %v1940_v35  ;;  %v1949_v22 = vrot.slane %v1948_v51, 1 }
 0x2a1   : > { %v1952_v33 = vrot.slane %v1951_v17, 4  ;;  %v1960_v36 = vmax.f32 %v1958_v25, %v1959_v28  ;;  %v1670_v52 = vadd.f32 %v2632_v30, %v3108_v10  ;;  %v1841_v6 = vmax.f32 %v1659_v34, 0.0 }
 0x2a2   : > { %v1661_v61 = vpop.f32.mrf.mxu0  ;;  %v1942_v62 = vrot.slane %v1941_v48, 1  ;;  %v1950_v20 = vmax.f32 %v1948_v51, %v1949_v22 }
 0x2a3   : > { %v1953_v38 = vmax.f32 %v1951_v17, %v1952_v33  ;;  %v1662_v27 = vadd.f32 %v3108_v10, %v1661_v61  ;;  %v1844_v43 = vmax.f32 %v1670_v52, 0.0  ;;  %v1961_v21 = vrot.slane %v1960_v36, 2 }
 0x2a4   : > { %v2635_v44 = vpop.f32.mrf.mxu0  ;;  %v1943_v14 = vmax.f32 %v1941_v48, %v1942_v62 }
 0x2a5   : > { %v1954_v45 = vrot.slane %v1953_v38, 2  ;;  %v1842_v46 = vmax.f32 %v1662_v27, 0.0  ;;  %v1972_v47 = vmax.f32 %v1843_v40, %v1844_v43  ;;  %v1683_v50 = vadd.f32 %v2635_v44, %v3108_v10 }
 0x2a6   : > { %v1674_v56 = vpop.f32.mrf.mxu0  ;;  %v1962_v41 = vmax.f32 %v1960_v36, %v1961_v21  ;;  %v2151_v17 = vsel %vm2137_vm2, %v1950_v20, %v1943_v14 }
 0x2a7   : > { %v1965_v49 = vmax.f32 %v1841_v6, %v1842_v46  ;;  %v1955_v53 = vmax.f32 %v1953_v38, %v1954_v45  ;;  %v1973_v54 = vrot.slane %v1972_v47, 4  ;;  %v1675_v59 = vadd.f32 %v3108_v10, %v1674_v56 }
 0x2a8   : > { %v2636_v57 = vpop.f32.mrf.mxu0  ;;  %v1847_v11 = vmax.f32 %v1683_v50, 0.0  ;;  %v1963_v55 = vrot.slane %v1962_v41, 1 }
 0x2a9   : > { %v1966_v58 = vrot.slane %v1965_v49, 4  ;;  %v1686_v60 = vadd.f32 %v2636_v57, %v3108_v10  ;;  %v1974_v63 = vmax.f32 %v1972_v47, %v1973_v54  ;;  %v1956_v3 = vrot.slane %v1955_v53, 1 }
 0x2aa   : > { %v1677_v12 = vpop.f32.mrf.mxu0  ;;  %v1845_v9 = vmax.f32 %v1675_v59, 0.0  ;;  %v1964_v30 = vmax.f32 %v1962_v41, %v1963_v55 }
 0x2ab   : > { %v1967_v1 = vmax.f32 %v1965_v49, %v1966_v58  ;;  %v1848_v0 = vmax.f32 %v1686_v60, 0.0  ;;  %v1678_v2 = vadd.f32 %v3108_v10, %v1677_v12  ;;  %v1975_v4 = vrot.slane %v1974_v63, 2 }
 0x2ac   : > { %v2639_v5 = vpop.f32.mrf.mxu0  ;;  %v1957_v23 = vmax.f32 %v1955_v53, %v1956_v3 }
 0x2ad   : > { %v1968_v8 = vrot.slane %v1967_v1, 2  ;;  %v1986_v13 = vmax.f32 %v1847_v11, %v1848_v0  ;;  %v1846_v31 = vmax.f32 %v1678_v2, 0.0  ;;  %v1976_v32 = vmax.f32 %v1974_v63, %v1975_v4 }
 0x2ae   : > { %v1690_v37 = vpop.f32.mrf.mxu0  ;;  %v1699_v26 = vadd.f32 %v2639_v5, %v3108_v10  ;;  %v2152_v36 = vsel %vm2139_vm3, %v1957_v23, %v2151_v17 }
 0x2af   : > { %v1969_v15 = vmax.f32 %v1967_v1, %v1968_v8  ;;  %v1987_v18 = vrot.slane %v1986_v13, 4  ;;  %v1979_v19 = vmax.f32 %v1845_v9, %v1846_v31  ;;  %v1691_v16 = vadd.f32 %v3108_v10, %v1690_v37 }
 0x2b0   : > { %v2640_v24 = vpop.f32.mrf.mxu0  ;;  %v1977_v52 = vrot.slane %v1976_v32, 1  ;;  %v1851_v45 = vmax.f32 %v1699_v26, 0.0  ;;  %v2153_v46 = vsel %vm2141_vm4, %v1964_v30, %v2152_v36 }
 0x2b1   : > { %v1970_v42 = vrot.slane %v1969_v15, 1  ;;  %v1988_v7 = vmax.f32 %v1986_v13, %v1987_v18  ;;  %v1980_v25 = vrot.slane %v1979_v19, 4  ;;  %v1702_v28 = vadd.f32 %v2640_v24, %v3108_v10 }
 0x2b2   : > { %v1693_v29 = vpop.f32.mrf.mxu0  ;;  %v1849_v43 = vmax.f32 %v1691_v16, 0.0  ;;  %v1978_v53 = vmax.f32 %v1976_v32, %v1977_v52 }
 0x2b3   : > { %v1989_v33 = vrot.slane %v1988_v7, 2  ;;  %v1981_v34 = vmax.f32 %v1979_v19, %v1980_v25  ;;  %v1694_v35 = vadd.f32 %v3108_v10, %v1693_v29  ;;  %v1971_v61 = vmax.f32 %v1969_v15, %v1970_v42 }
 0x2b4   : > { %v1852_v38 = vmax.f32 %v1702_v28, 0.0  ;;  %v2643_v27 = vpop.f32.mrf.mxu0 }
 0x2b5   : > { %v1990_v39 = vmax.f32 %v1988_v7, %v1989_v33  ;;  %v1982_v40 = vrot.slane %v1981_v34, 2  ;;  %v1850_v44 = vmax.f32 %v1694_v35, 0.0  ;;  %v2154_v47 = vsel %vm2143_vm5, %v1971_v61, %v2153_v46 }
 0x2b6   : > { %v1706_v6 = vpop.f32.mrf.mxu0  ;;  %v2000_v49 = vmax.f32 %v1851_v45, %v1852_v38  ;;  %v1715_v50 = vadd.f32 %v2643_v27, %v3108_v10  ;;  %v2155_v41 = vsel %vm2145_vm6, %v1978_v53, %v2154_v47 }
 0x2b7   : > { %v1983_v48 = vmax.f32 %v1981_v34, %v1982_v40  ;;  %v1993_v21 = vmax.f32 %v1849_v43, %v1850_v44  ;;  %v1991_v56 = vrot.slane %v1990_v39, 1  ;;  %v1707_v57 = vadd.f32 %v3108_v10, %v1706_v6 }
 0x2b8   : > { %v2644_v51 = vpop.f32.mrf.mxu0  ;;  %v2001_v1 = vrot.slane %v2000_v49, 4  ;;  %v1855_v11 = vmax.f32 %v1715_v50, 0.0 }
 0x2b9   : > { %v1984_v54 = vrot.slane %v1983_v48, 1  ;;  %v1994_v58 = vrot.slane %v1993_v21, 4  ;;  %v1718_v59 = vadd.f32 %v2644_v51, %v3108_v10  ;;  %v1992_v12 = vmax.f32 %v1990_v39, %v1991_v56 }
 0x2ba   : > { %v1709_v60 = vpop.f32.mrf.mxu0  ;;  %v1853_v3 = vmax.f32 %v1707_v57, 0.0  ;;  %v2002_v37 = vmax.f32 %v2000_v49, %v2001_v1 }
 0x2bb   : > { %v1985_v62 = vmax.f32 %v1983_v48, %v1984_v54  ;;  %v1710_v63 = vadd.f32 %v3108_v10, %v1709_v60  ;;  %v1856_v0 = vmax.f32 %v1718_v59, 0.0  ;;  %v1995_v8 = vmax.f32 %v1993_v21, %v1994_v58 }
 0x2bc   : > { %v2647_v2 = vpop.f32.mrf.mxu0  ;;  %v2003_v16 = vrot.slane %v2002_v37, 2 }
 0x2bd   : > { %v2156_v22 = vsel %vm2147_vm7, %v1985_v62, %v2155_v41  ;;  %v1854_v4 = vmax.f32 %v1710_v63, 0.0  ;;  %v2014_v9 = vmax.f32 %v1855_v11, %v1856_v0  ;;  %v1731_v14 = vadd.f32 %v2647_v2, %v3108_v10 }
 0x2be   : > { %v2157_v5 = vsel %vm2149_vm8, %v1992_v12, %v2156_v22  ;;  %v1722_v13 = vpop.f32.mrf.mxu0  ;;  %v1996_v23 = vrot.slane %v1995_v8, 2  ;;  %v2004_v61 = vmax.f32 %v2002_v37, %v2003_v16 }
 0x2bf   : > { %2177 = vst [vmem:[%s3153_s9 + $0x8] sm:$0xff] %v2157_v5  ;;  %v2007_v31 = vmax.f32 %v1853_v3, %v1854_v4  ;;  %v1723_v55 = vadd.f32 %v3108_v10, %v1722_v13  ;;  %v2015_v18 = vrot.slane %v2014_v9, 4  ;;  %v1859_v42 = vmax.f32 %v1731_v14, 0.0 }
 0x2c0   : > { %v2648_v15 = vpop.f32.mrf.mxu0  ;;  %v1997_v35 = vmax.f32 %v1995_v8, %v1996_v23  ;;  %v2005_v56 = vrot.slane %v2004_v61, 1 }
 0x2c1   : > { %v2008_v19 = vrot.slane %v2007_v31, 4  ;;  %v1734_v20 = vadd.f32 %v2648_v15, %v3108_v10  ;;  %v1857_v17 = vmax.f32 %v1723_v55, 0.0  ;;  %v2016_v28 = vmax.f32 %v2014_v9, %v2015_v18 }
 0x2c2   : > { %v1725_v32 = vpop.f32.mrf.mxu0  ;;  %v1998_v48 = vrot.slane %v1997_v35, 1  ;;  %v2006_v22 = vmax.f32 %v2004_v61, %v2005_v56 }
 0x2c3   : > { %v2009_v24 = vmax.f32 %v2007_v31, %v2008_v19  ;;  %v1860_v7 = vmax.f32 %v1734_v20, 0.0  ;;  %v1726_v25 = vadd.f32 %v3108_v10, %v1725_v32  ;;  %v2017_v40 = vrot.slane %v2016_v28, 2 }
 0x2c4   : > { %v2651_v26 = vpop.f32.mrf.mxu0  ;;  %v1999_v63 = vmax.f32 %v1997_v35, %v1998_v48 }
 0x2c5   : > { %v2010_v29 = vrot.slane %v2009_v24, 2  ;;  %v2028_v30 = vmax.f32 %v1859_v42, %v1860_v7  ;;  %v1858_v33 = vmax.f32 %v1726_v25, 0.0  ;;  %v1747_v27 = vadd.f32 %v2651_v26, %v3108_v10 }
 0x2c6   : > { %v1738_v34 = vpop.f32.mrf.mxu0  ;;  %v2018_v54 = vmax.f32 %v2016_v28, %v2017_v40  ;;  %v2158_v37 = vsel %vm2137_vm2, %v2006_v22, %v1999_v63 }
 0x2c7   : > { %v2029_v36 = vrot.slane %v2028_v30, 4  ;;  %v2021_v52 = vmax.f32 %v1857_v17, %v1858_v33  ;;  %v2011_v38 = vmax.f32 %v2009_v24, %v2010_v29  ;;  %v1739_v44 = vadd.f32 %v3108_v10, %v1738_v34 }
 0x2c8   : > { %v2652_v39 = vpop.f32.mrf.mxu0  ;;  %v1863_v50 = vmax.f32 %v1747_v27, 0.0  ;;  %v2019_v3 = vrot.slane %v2018_v54, 1 }
 0x2c9   : > { %v2022_v43 = vrot.slane %v2021_v52, 4  ;;  %v2030_v45 = vmax.f32 %v2028_v30, %v2029_v36  ;;  %v1750_v6 = vadd.f32 %v2652_v39, %v3108_v10  ;;  %v2012_v49 = vrot.slane %v2011_v38, 1 }
 0x2ca   : > { %v1741_v46 = vpop.f32.mrf.mxu0  ;;  %v1861_v58 = vmax.f32 %v1739_v44, 0.0  ;;  %v2020_v32 = vmax.f32 %v2018_v54, %v2019_v3 }
 0x2cb   : > { %v2023_v21 = vmax.f32 %v2021_v52, %v2022_v43  ;;  %v1742_v47 = vadd.f32 %v3108_v10, %v1741_v46  ;;  %v1864_v51 = vmax.f32 %v1750_v6, 0.0  ;;  %v2031_v60 = vrot.slane %v2030_v45, 2 }
 0x2cc   : > { %v2655_v53 = vpop.f32.mrf.mxu0  ;;  %v2013_v11 = vmax.f32 %v2011_v38, %v2012_v49 }
 0x2cd   : > { %v2024_v57 = vrot.slane %v2023_v21, 2  ;;  %v1862_v59 = vmax.f32 %v1742_v47, 0.0  ;;  %v2042_v62 = vmax.f32 %v1863_v50, %v1864_v51  ;;  %v2032_v8 = vmax.f32 %v2030_v45, %v2031_v60 }
 0x2ce   : > { %v1754_v41 = vpop.f32.mrf.mxu0  ;;  %v2159_v18 = vsel %vm2139_vm3, %v2013_v11, %v2158_v37  ;;  %v1763_v20 = vadd.f32 %v2655_v53, %v3108_v10 }
 0x2cf   : > { %v2025_v12 = vmax.f32 %v2023_v21, %v2024_v57  ;;  %v2035_v1 = vmax.f32 %v1861_v58, %v1862_v59  ;;  %v2043_v0 = vrot.slane %v2042_v62, 4  ;;  %v1755_v13 = vadd.f32 %v3108_v10, %v1754_v41 }
 0x2d0   : > { %v2656_v2 = vpop.f32.mrf.mxu0  ;;  %v2033_v25 = vrot.slane %v2032_v8, 1  ;;  %v2160_v29 = vsel %vm2141_vm4, %v2020_v32, %v2159_v18  ;;  %v1867_v34 = vmax.f32 %v1763_v20, 0.0 }
 0x2d1   : > { %v2026_v4 = vrot.slane %v2025_v12, 1  ;;  %v2036_v5 = vrot.slane %v2035_v1, 4  ;;  %v2044_v9 = vmax.f32 %v2042_v62, %v2043_v0  ;;  %v1766_v31 = vadd.f32 %v2656_v2, %v3108_v10 }
 0x2d2   : > { %v1757_v14 = vpop.f32.mrf.mxu0  ;;  %v1865_v17 = vmax.f32 %v1755_v13, 0.0  ;;  %v2034_v40 = vmax.f32 %v2032_v8, %v2033_v25 }
 0x2d3   : > { %v2037_v55 = vmax.f32 %v2035_v1, %v2036_v5  ;;  %v1758_v15 = vadd.f32 %v3108_v10, %v1757_v14  ;;  %v2045_v19 = vrot.slane %v2044_v9, 2  ;;  %v2027_v24 = vmax.f32 %v2025_v12, %v2026_v4 }
 0x2d4   : > { %v2659_v23 = vpop.f32.mrf.mxu0  ;;  %v1868_v26 = vmax.f32 %v1766_v31, 0.0 }
 0x2d5   : > { %v2038_v42 = vrot.slane %v2037_v55, 2  ;;  %v1866_v7 = vmax.f32 %v1758_v15, 0.0  ;;  %v2046_v16 = vmax.f32 %v2044_v9, %v2045_v19  ;;  %v1779_v36 = vadd.f32 %v2659_v23, %v3108_v10 }
 0x2d6   : > { %v1770_v28 = vpop.f32.mrf.mxu0  ;;  %v2161_v61 = vsel %vm2143_vm5, %v2027_v24, %v2160_v29  ;;  %v2056_v43 = vmax.f32 %v1867_v34, %v1868_v26 }
 0x2d7   : > { %v2039_v30 = vmax.f32 %v2037_v55, %v2038_v42  ;;  %v2047_v33 = vrot.slane %v2046_v16, 1  ;;  %v2049_v35 = vmax.f32 %v1865_v17, %v1866_v7  ;;  %v1771_v27 = vadd.f32 %v3108_v10, %v1770_v28 }
 0x2d8   : > { %v2660_v52 = vpop.f32.mrf.mxu0  ;;  %v2162_v21 = vsel %vm2145_vm6, %v2034_v40, %v2161_v61  ;;  %v1871_v56 = vmax.f32 %v1779_v36, 0.0  ;;  %v2057_v57 = vrot.slane %v2056_v43, 4 }
 0x2d9   : > { %v2040_v38 = vrot.slane %v2039_v30, 1  ;;  %v1782_v39 = vadd.f32 %v2660_v52, %v3108_v10  ;;  %v2048_v48 = vmax.f32 %v2046_v16, %v2047_v33  ;;  %v2050_v47 = vrot.slane %v2049_v35, 4 }
 0x2da   : > { %v1773_v44 = vpop.f32.mrf.mxu0  ;;  %v1869_v51 = vmax.f32 %v1771_v27, 0.0  ;;  %v2058_v11 = vmax.f32 %v2056_v43, %v2057_v57 }
 0x2db   : > { %v2041_v45 = vmax.f32 %v2039_v30, %v2040_v38  ;;  %v1872_v6 = vmax.f32 %v1782_v39, 0.0  ;;  %v1774_v46 = vadd.f32 %v3108_v10, %v1773_v44  ;;  %v2051_v62 = vmax.f32 %v2049_v35, %v2050_v47 }
 0x2dc   : > { %v2663_v49 = vpop.f32.mrf.mxu0  ;;  %v2059_v55 = vrot.slane %v2058_v11, 2 }
 0x2dd   : > { %v2163_v50 = vsel %vm2147_vm7, %v2041_v45, %v2162_v21  ;;  %v1870_v53 = vmax.f32 %v1774_v46, 0.0  ;;  %v2070_v58 = vmax.f32 %v1871_v56, %v1872_v6  ;;  %v1795_v41 = vadd.f32 %v2663_v49, %v3108_v10 }
 0x2de   : > { %v2164_v54 = vsel %vm2149_vm8, %v2048_v48, %v2163_v50  ;;  %v1786_v59 = vpop.f32.mrf.mxu0  ;;  %v2052_v5 = vrot.slane %v2051_v62, 2  ;;  %v2060_v17 = vmax.f32 %v2058_v11, %v2059_v55 }
 0x2df   : > { %2178 = vst [vmem:[%s3153_s9 + $0x10] sm:$0xff] %v2164_v54  ;;  %v2063_v60 = vmax.f32 %v1869_v51, %v1870_v53  ;;  %v1787_v1 = vadd.f32 %v3108_v10, %v1786_v59  ;;  %v2071_v0 = vrot.slane %v2070_v58, 4  ;;  %v1875_v8 = vmax.f32 %v1795_v41, 0.0 }
 0x2e0   : > { %v2664_v63 = vpop.f32.mrf.mxu0  ;;  %v2053_v23 = vmax.f32 %v2051_v62, %v2052_v5  ;;  %v2061_v40 = vrot.slane %v2060_v17, 1 }
 0x2e1   : > { %v2064_v12 = vrot.slane %v2063_v60, 4  ;;  %v1798_v2 = vadd.f32 %v2664_v63, %v3108_v10  ;;  %v1873_v14 = vmax.f32 %v1787_v1, 0.0  ;;  %v2072_v15 = vmax.f32 %v2070_v58, %v2071_v0 }
 0x2e2   : > { %v1789_v22 = vpop.f32.mrf.mxu0  ;;  %v2054_v35 = vrot.slane %v2053_v23, 1  ;;  %v2062_v50 = vmax.f32 %v2060_v17, %v2061_v40 }
 0x2e3   : > { %v2065_v3 = vmax.f32 %v2063_v60, %v2064_v12  ;;  %v1790_v4 = vadd.f32 %v3108_v10, %v1789_v22  ;;  %v1876_v9 = vmax.f32 %v1798_v2, 0.0  ;;  %v2073_v26 = vrot.slane %v2072_v15, 2 }
 0x2e4   : > { %v2667_v13 = vpop.f32.mrf.mxu0  ;;  %v2055_v48 = vmax.f32 %v2053_v23, %v2054_v35 }
 0x2e5   : > { %v2066_v31 = vrot.slane %v2065_v3, 2  ;;  %v1874_v37 = vmax.f32 %v1790_v4, 0.0  ;;  %v2084_v18 = vmax.f32 %v1875_v8, %v1876_v9  ;;  %v1811_v24 = vadd.f32 %v2667_v13, %v3108_v10 }
 0x2e6   : > { %v1802_v19 = vpop.f32.mrf.mxu0  ;;  %v2074_v43 = vmax.f32 %v2072_v15, %v2073_v26  ;;  %v2165_v57 = vsel %vm2137_vm2, %v2062_v50, %v2055_v48 }
 0x2e7   : > { %v2077_v20 = vmax.f32 %v1873_v14, %v1874_v37  ;;  %v2085_v32 = vrot.slane %v2084_v18, 4  ;;  %v2067_v7 = vmax.f32 %v2065_v3, %v2066_v31  ;;  %v1803_v16 = vadd.f32 %v3108_v10, %v1802_v19 }
 0x2e8   : > { %v2668_v42 = vpop.f32.mrf.mxu0  ;;  %v1879_v36 = vmax.f32 %v1811_v24, 0.0 }
 0x2e9   : > { %v2078_v25 = vrot.slane %v2077_v20, 4  ;;  %v2086_v28 = vmax.f32 %v2084_v18, %v2085_v32  ;;  %v1814_v29 = vadd.f32 %v2668_v42, %v3108_v10  ;;  %v2068_v61 = vrot.slane %v2067_v7, 1 }
 0x2ea   : > { %v1805_v30 = vpop.f32.mrf.mxu0  ;;  %v1877_v27 = vmax.f32 %v1803_v16, 0.0 }
 0x2eb   : > { %v2079_v33 = vmax.f32 %v2077_v20, %v2078_v25  ;;  %v1806_v34 = vadd.f32 %v3108_v10, %v1805_v30  ;;  %v1880_v52 = vmax.f32 %v1814_v29, 0.0  ;;  %v2087_v44 = vrot.slane %v2086_v28, 2 }
 0x2ec   : > { %v2069_v47 = vmax.f32 %v2067_v7, %v2068_v61  ;;  %v2075_v10 = vrot.slane %v2074_v43, 1 }
 0x2ed   : > { %v2080_v38 = vrot.slane %v2079_v33, 2  ;;  %v1878_v39 = vmax.f32 %v1806_v34, 0.0  ;;  %v2098_v45 = vmax.f32 %v1879_v36, %v1880_v52  ;;  %v2088_v51 = vmax.f32 %v2086_v28, %v2087_v44 }
 0x2ee   : > { %v2166_v59 = vsel %vm2139_vm3, %v2069_v47, %v2165_v57  ;;  %v2076_v41 = vmax.f32 %v2074_v43, %v2075_v10 }
 0x2ef   : > { %v2081_v6 = vmax.f32 %v2079_v33, %v2080_v38  ;;  %v2091_v46 = vmax.f32 %v1877_v27, %v1878_v39  ;;  %v2099_v21 = vrot.slane %v2098_v45, 4  ;;  %v2089_v63 = vrot.slane %v2088_v51, 1 }
 0x2f0   : > { %v2167_v11 = vsel %vm2141_vm4, %v2076_v41, %v2166_v59 }
 0x2f1   : > { %v2082_v56 = vrot.slane %v2081_v6, 1  ;;  %v2092_v49 = vrot.slane %v2091_v46, 4  ;;  %v2100_v53 = vmax.f32 %v2098_v45, %v2099_v21  ;;  %v2090_v3 = vmax.f32 %v2088_v51, %v2089_v63 }
 0x2f3   : > { %v2093_v54 = vmax.f32 %v2091_v46, %v2092_v49  ;;  %v2101_v58 = vrot.slane %v2100_v53, 2  ;;  %v2083_v60 = vmax.f32 %v2081_v6, %v2082_v56 }
 0x2f5   : > { %v2094_v62 = vrot.slane %v2093_v54, 2  ;;  %v2102_v12 = vmax.f32 %v2100_v53, %v2101_v58  ;;  %v2168_v2 = vsel %vm2143_vm5, %v2083_v60, %v2167_v11 }
 0x2f6   : > { %v2169_v8 = vsel %vm2145_vm6, %v2090_v3, %v2168_v2 }
 0x2f7   : > { %v2095_v1 = vmax.f32 %v2093_v54, %v2094_v62  ;;  %v2103_v0 = vrot.slane %v2102_v12, 1 }
 0x2f9   : > { %v2096_v22 = vrot.slane %v2095_v1, 1  ;;  %v2104_v5 = vmax.f32 %v2102_v12, %v2103_v0 }
 0x2fb   : > { %v2097_v4 = vmax.f32 %v2095_v1, %v2096_v22 }
 0x2fd   : > { %v2170_v9 = vsel %vm2147_vm7, %v2097_v4, %v2169_v8 }
 0x2fe   : > { %v2171_v13 = vsel %vm2149_vm8, %v2104_v5, %v2170_v9 }
 0x2ff   : > { %2179 = vst [vmem:[%s3153_s9 + $0x18] sm:$0xff] %v2171_v13 }
 0x300 PF: > { %s17_s24 = sadd.s32 1, %s2735_s24  }
 0x301   : > { %p14_p5 = scmp.ge.s32.totalorder %s17_s24, 4  }
 0x303   :  { %16 = sbr.rel (!%p14_p5) target bundleno = 1 (0x1), region = 78 }

// kernel: custom-call.26
= control target key start
LH: loop header
LB: loop body
LE: loop exit
PB: predicated region body
PF: predicated region fallthrough
CT: control target
= control target key end

     0   :  { %s6_s0 = inlined_call_operand.vmem [shape: f32[2,16], index: 0, kind: output, shape index: {}]  }

// kernel: _lambda_.5
= control target key start
LH: loop header
LB: loop body
LE: loop exit
PB: predicated region body
PF: predicated region fallthrough
CT: control target
= control target key end

     0   :  { %s1351_s24 = smov 0   ;;  %s1491_s0 = inlined_call_operand.vmem [shape: bf16[256,35], index: 0, kind: input, shape index: {}]   ;;  %s1492_s1 = inlined_call_operand.vmem [shape: bf16[35,128], index: 1, kind: input, shape index: {}]   ;;  %s1493_s2 = inlined_call_operand.vmem [shape: f32[1,128], index: 2, kind: input, shape index: {}]   ;;  %s1494_s3 = inlined_call_operand.vmem [shape: bf16[128,128], index: 3, kind: input, shape index: {}]   ;;  %s1495_s4 = inlined_call_operand.vmem [shape: f32[1,128], index: 4, kind: input, shape index: {}]   ;;  %s1496_s5 = inlined_call_operand.vmem [shape: bf16[128,128], index: 5, kind: input, shape index: {}]   ;;  %s1497_s6 = inlined_call_operand.vmem [shape: f32[1,128], index: 6, kind: input, shape index: {}]   ;;  %s1498_s7 = inlined_call_operand.vmem [shape: f32[32,128], index: 7, kind: output, shape index: {}]  }
   0x1 LB: > { %s1088_s25 = sadd.s32 4294967295, %s1308_s24   ;;  %p1092_p0 = scmp.ge.s32.totalorder %s1308_s24, 1  ;;  %s1308_s24 = sphi %s1351_s24, %s17_s24  }
   0x2   : > { %p238_p1 = scmp.lt.s32.totalorder %s1308_s24, 3 }
   0x4   : > { %p239_p2 = pnand %p1092_p0, %p238_p1 }
   0x5   : > { %s1093_s30 = sshll.u32 (!%p239_p2), %s1088_s25, 4  ;;  %s1451_s10 = sshll.u32 (!%p239_p2), %s1088_s25, 1 }
   0x6   : > { %242 = sbr.rel (%p239_p2) target bundleno = 684 (0x2ac), region = 48  ;;  %p271_p3 = scmp.lt.s32.totalorder (!%p239_p2), %s1093_s30, 31 }
   0x7   : > { %p277_p4 = scmp.lt.s32.totalorder (!%p239_p2), %s1451_s10, 3 }
   0xb   : > { %v1275_v0 = vld [vmem:[%s1492_s1 + $0x10] ss:$0 sps:$4 sm:$0x33]   ;;  %vm391_vm0 = vcmask 1040384   ;;  %vm392_vm1 = vcmask 1041408   ;;  %v1310_v1 = vmov 65535  }
   0xc   : > { %v393_v2 = vsel %vm391_vm0, 4294967295, %v1310_v1  ;;  %v1276_v4 = vld [vmem:[%s1492_s1 + $0x8] sm:$0xff]   ;;  %v1286_v6 = vld [vmem:[%s1494_s3 + $0x38] sm:$0xff]   ;;  %v1287_v7 = vld [vmem:[%s1494_s3 + $0x30] sm:$0xff]   ;;  %s1500_s30 = smov (!%p271_p3, %s1093_s30), 31  ;;  %vm366_vm2 = vcmask 285696  }
   0xd   : > { %v394_v3 = vsel %vm392_vm1, %v393_v2, 0  ;;  %1202 = vmatprep.subr.bf16.mxu1 %v1286_v6  ;;  %v1277_v8 = vld [vmem:[%s1492_s1] sm:$0xff]   ;;  %s1094_s14 = sshll.u32 %s1500_s30, 2  ;;  %v1288_v9 = vld [vmem:[%s1494_s3 + $0x28] sm:$0xff]   ;;  %v1290_v14 = vld [vmem:[%s1494_s3 + $0x18] sm:$0xff]   ;;  %vm1007_vm3 = vcmask 1041409  }
   0xe   : > { %v396_v5 = vand.u32 %v1275_v0, %v394_v3  ;;  %1203 = vmatpush3.bf16.msra.mxu1 %v1286_v6  ;;  %s274_s19 = scalar_lea.vmem %s1491_s0, %s1094_s14  ;;  %v1289_v11 = vld [vmem:[%s1494_s3 + $0x20] sm:$0xff]   ;;  %v1291_v20 = vld [vmem:[%s1494_s3 + $0x10] sm:$0xff]   ;;  %v1292_v21 = vld [vmem:[%s1494_s3 + $0x8] sm:$0xff]   ;;  %vm1009_vm4 = vcmask 1042434   ;;  %vm1011_vm5 = vcmask 1043459   ;;  %vm1013_vm6 = vcmask 1044484  }
   0xf   : > { %1204 = vmatprep.subr.bf16.mxu1 %v1287_v7  ;;  %v1278_v10 = vld [vmem:[%s274_s19] sm:$0xff]   ;;  %v1279_v12 = vld [vmem:[%s274_s19 + $0x8] sm:$0xff]   ;;  %v1280_v13 = vld [vmem:[%s274_s19 + $0x10] sm:$0xff]   ;;  %vm1015_vm7 = vcmask 1045509   ;;  %vm1017_vm8 = vcmask 1046534   ;;  %s1502_s10 = smov (!%p277_p4, %s1451_s10), 3 }
  0x10   : > { %1180 = vmatprep.subr.bf16.mxu0 %v396_v5  ;;  %1186 = vmatprep.mubr.msk.bf16.mxu0 %vm366_vm2, %v1278_v10  ;;  %v1281_v15 = vld [vmem:[%s274_s19 + $0x18] sm:$0xff]   ;;  %v1282_v16 = vld [vmem:[%s274_s19 + $0x20] sm:$0xff]   ;;  %v1283_v17 = vld [vmem:[%s274_s19 + $0x28] sm:$0xff]   ;;  %vm1019_vm9 = vcmask 1047559   ;;  %s1096_s25 = sshll.u32 %s1502_s10, 3 }
  0x11   : > { %1181 = vmatpush3.bf16.msra.mxu0 %v396_v5  ;;  %v1284_v18 = vld [vmem:[%s274_s19 + $0x30] sm:$0xff]   ;;  %v1285_v19 = vld [vmem:[%s274_s19 + $0x38] sm:$0xff]   ;;  %v1293_v22 = vld [vmem:[%s1494_s3] sm:$0xff]   ;;  %s1473_s13 = scalar_lea.vmem %s1498_s7, %s1096_s25 }
  0x12   : > { %1182 = vmatprep.subr.bf16.mxu0 %v1276_v4  ;;  %1205 = vmatpush3.bf16.msra.mxu1 %v1287_v7  ;;  %v1294_v23 = vld [vmem:[%s1496_s5 + $0x38] sm:$0xff]   ;;  %v1295_v24 = vld [vmem:[%s1496_s5 + $0x30] sm:$0xff]   ;;  %v1296_v25 = vld [vmem:[%s1496_s5 + $0x28] sm:$0xff]  }
  0x13   : > { %1206 = vmatprep.subr.bf16.mxu1 %v1288_v9  ;;  %v1297_v26 = vld [vmem:[%s1496_s5 + $0x20] sm:$0xff]   ;;  %v1298_v27 = vld [vmem:[%s1496_s5 + $0x18] sm:$0xff]  }
  0x14   : > { %v1097_v30 = vld [vmem:[%s1493_s2] ss:$0 sm:$0xff] }
  0x15   : > { %1183 = vmatpush3.bf16.msra.mxu0 %v1276_v4 }
  0x16   : > { %1184 = vmatprep.subr.bf16.mxu0 %v1277_v8  ;;  %1207 = vmatpush3.bf16.msra.mxu1 %v1288_v9 }
  0x17   : > { %1208 = vmatprep.subr.bf16.mxu1 %v1289_v11 }
  0x19   : > { %1185 = vmatpush3.bf16.msra.mxu0 %v1277_v8 }
  0x1a   : > { %1209 = vmatpush3.bf16.msra.mxu1 %v1289_v11  ;;  %1234 = vmatprep.subr.bf16.mxu0 %v1294_v23 }
  0x1b   : > { %1210 = vmatprep.subr.bf16.mxu1 %v1290_v14 }
  0x1c   : > { %1187 = vmatmul.mubr.msk.bf16.vlgmr.msra.gmra.mxu0 %vm366_vm2, %v1279_v12 }
  0x1d   : > { %1190 = vmatprep.mubr.msk.bf16.mxu0 %vm366_vm2, %v1280_v13  ;;  %1235 = vmatpush3.bf16.msra.mxu0 %v1294_v23  ;;  %v1301_v23 = vld [vmem:[%s1496_s5] sm:$0xff]  }
  0x1e   : > { %1211 = vmatpush3.bf16.msra.mxu1 %v1290_v14  ;;  %1236 = vmatprep.subr.bf16.mxu0 %v1295_v24 }
  0x1f   : > { %1212 = vmatprep.subr.bf16.mxu1 %v1291_v20 }
  0x21   : > { %1237 = vmatpush3.bf16.msra.mxu0 %v1295_v24 }
  0x22   : > { %1213 = vmatpush3.bf16.msra.mxu1 %v1291_v20  ;;  %1238 = vmatprep.subr.bf16.mxu0 %v1296_v25 }
  0x23   : > { %1214 = vmatprep.subr.bf16.mxu1 %v1292_v21 }
  0x24   : > { %1191 = vmatmul.mubr.msk.bf16.gmra.mxu0 %vm366_vm2, %v1281_v15 }
  0x25   : > { %1194 = vmatprep.mubr.msk.bf16.mxu0 %vm366_vm2, %v1282_v16  ;;  %1239 = vmatpush3.bf16.msra.mxu0 %v1296_v25 }
  0x26   : > { %1215 = vmatpush3.bf16.msra.mxu1 %v1292_v21  ;;  %1240 = vmatprep.subr.bf16.mxu0 %v1297_v26  ;;  %v1299_v21 = vld [vmem:[%s1496_s5 + $0x10] sm:$0xff]  }
  0x27   : > { %1216 = vmatprep.subr.bf16.mxu1 %v1293_v22 }
  0x29   : > { %1241 = vmatpush3.bf16.msra.mxu0 %v1297_v26  ;;  %v1117_v26 = vld [vmem:[%s1495_s4] ss:$0 sm:$0xff] }
  0x2a   : > { %1217 = vmatpush3.bf16.msra.mxu1 %v1293_v22  ;;  %1242 = vmatprep.subr.bf16.mxu0 %v1298_v27  ;;  %v1300_v22 = vld [vmem:[%s1496_s5 + $0x8] sm:$0xff]  }
  0x2c   : > { %1195 = vmatmul.mubr.msk.bf16.gmra.mxu0 %vm366_vm2, %v1283_v17 }
  0x2d   : > { %1198 = vmatprep.mubr.msk.bf16.mxu0 %vm366_vm2, %v1284_v18  ;;  %1243 = vmatpush3.bf16.msra.mxu0 %v1298_v27 }
  0x2e   : > { %1244 = vmatprep.subr.bf16.mxu0 %v1299_v21 }
  0x31   : > { %1245 = vmatpush3.bf16.msra.mxu0 %v1299_v21 }
  0x32   : > { %1246 = vmatprep.subr.bf16.mxu0 %v1300_v22 }
  0x34   : > { %1199 = vmatmul.mubr.msk.bf16.gmra.mxu0 %vm366_vm2, %v1285_v19 }
  0x35   : > { %1247 = vmatpush3.bf16.msra.mxu0 %v1300_v22 }
  0x36   : > { %1248 = vmatprep.subr.bf16.mxu0 %v1301_v23 }
  0x39   : > { %1249 = vmatpush3.bf16.msra.mxu0 %v1301_v23 }
  0xdc   : > { %v1188_v28 = vpop.f32.mrf.mxu0 }
  0xdd   : > { %v441_v34 = vadd.f32 %v1188_v28, %v1097_v30 }
  0xde   : > { %v432_v29 = vpop.f32.mrf.mxu0 }
  0xdf   : > { %v433_v32 = vadd.f32 %v1097_v30, %v432_v29  ;;  %v497_v41 = vmax.f32 %v441_v34, 0.0 }
  0xe0   : > { %v1189_v31 = vpop.f32.mrf.mxu0 }
  0xe1   : > { %v444_v33 = vadd.f32 %v1189_v31, %v1097_v30  ;;  %v495_v39 = vmax.f32 %v433_v32, 0.0 }
  0xe2   : > { %v435_v35 = vpop.f32.mrf.mxu0 }
  0xe3   : > { %v436_v36 = vadd.f32 %v1097_v30, %v435_v35  ;;  %v498_v37 = vmax.f32 %v444_v33, 0.0 }
  0xe4   : > { %v1192_v38 = vpop.f32.mrf.mxu0 }
  0xe5   : > { %v496_v40 = vmax.f32 %v436_v36, 0.0  ;;  %v512_v44 = vpack.c.bf16 %v498_v37, %v497_v41  ;;  %v457_v48 = vadd.f32 %v1192_v38, %v1097_v30 }
  0xe6   : > { %v448_v42 = vpop.f32.mrf.mxu0 }
  0xe7   : > { %v511_v43 = vpack.c.bf16 %v496_v40, %v495_v39  ;;  %v449_v46 = vadd.f32 %v1097_v30, %v448_v42  ;;  %v501_v55 = vmax.f32 %v457_v48, 0.0 }
  0xe8   : > { %v1193_v45 = vpop.f32.mrf.mxu0 }
  0xe9   : > { %v460_v47 = vadd.f32 %v1193_v45, %v1097_v30  ;;  %1218 = vmatprep.mubr.bf16.mxu1 %v511_v43  ;;  %v499_v53 = vmax.f32 %v449_v46, 0.0 }
  0xea   : > { %v451_v49 = vpop.f32.mrf.mxu0  ;;  %1219 = vmatmul.mubr.bf16.vlgmr.msra.gmra.mxu1 %v512_v44 }
  0xeb   : > { %v452_v50 = vadd.f32 %v1097_v30, %v451_v49  ;;  %v502_v51 = vmax.f32 %v460_v47, 0.0 }
  0xec   : > { %v1196_v52 = vpop.f32.mrf.mxu0 }
  0xed   : > { %v500_v54 = vmax.f32 %v452_v50, 0.0  ;;  %v514_v58 = vpack.c.bf16 %v502_v51, %v501_v55  ;;  %v473_v62 = vadd.f32 %v1196_v52, %v1097_v30 }
  0xee   : > { %v464_v56 = vpop.f32.mrf.mxu0 }
  0xef   : > { %v513_v57 = vpack.c.bf16 %v500_v54, %v499_v53  ;;  %v465_v60 = vadd.f32 %v1097_v30, %v464_v56  ;;  %v505_v5 = vmax.f32 %v473_v62, 0.0 }
  0xf0   : > { %v1197_v59 = vpop.f32.mrf.mxu0 }
  0xf1   : > { %v476_v61 = vadd.f32 %v1197_v59, %v1097_v30  ;;  %1222 = vmatprep.mubr.bf16.mxu1 %v513_v57  ;;  %v503_v3 = vmax.f32 %v465_v60, 0.0 }
  0xf2   : > { %v467_v63 = vpop.f32.mrf.mxu0  ;;  %1223 = vmatmul.mubr.bf16.gmra.mxu1 %v514_v58 }
  0xf3   : > { %v468_v0 = vadd.f32 %v1097_v30, %v467_v63  ;;  %v506_v1 = vmax.f32 %v476_v61, 0.0 }
  0xf4   : > { %v1200_v2 = vpop.f32.mrf.mxu0 }
  0xf5   : > { %v504_v4 = vmax.f32 %v468_v0, 0.0  ;;  %v516_v8 = vpack.c.bf16 %v506_v1, %v505_v5  ;;  %v489_v12 = vadd.f32 %v1200_v2, %v1097_v30 }
  0xf6   : > { %v480_v6 = vpop.f32.mrf.mxu0 }
  0xf7   : > { %v515_v7 = vpack.c.bf16 %v504_v4, %v503_v3  ;;  %v481_v10 = vadd.f32 %v1097_v30, %v480_v6  ;;  %v509_v18 = vmax.f32 %v489_v12, 0.0 }
  0xf8   : > { %v1201_v9 = vpop.f32.mrf.mxu0 }
  0xf9   : > { %v492_v11 = vadd.f32 %v1201_v9, %v1097_v30  ;;  %1226 = vmatprep.mubr.bf16.mxu1 %v515_v7  ;;  %v507_v16 = vmax.f32 %v481_v10, 0.0 }
  0xfa   : > { %v483_v13 = vpop.f32.mrf.mxu0  ;;  %1227 = vmatmul.mubr.bf16.gmra.mxu1 %v516_v8 }
  0xfb   : > { %v484_v14 = vadd.f32 %v1097_v30, %v483_v13  ;;  %v510_v15 = vmax.f32 %v492_v11, 0.0 }
  0xfd   : > { %v508_v17 = vmax.f32 %v484_v14, 0.0  ;;  %v518_v20 = vpack.c.bf16 %v510_v15, %v509_v18 }
  0xff   : > { %v517_v19 = vpack.c.bf16 %v508_v17, %v507_v16  ;;  %v1438_v17 = vld [vmem:[%s1497_s6] ss:$0 sm:$0xff] }
 0x101   : > { %1230 = vmatprep.mubr.bf16.mxu1 %v517_v19 }
 0x102   : > { %1231 = vmatmul.mubr.bf16.gmra.mxu1 %v518_v20 }
 0x1aa   : > { %v1220_v24 = vpop.f32.mrf.mxu1 }
 0x1ab   : > { %v633_v30 = vadd.f32 %v1220_v24, %v1117_v26 }
 0x1ac   : > { %v624_v25 = vpop.f32.mrf.mxu1 }
 0x1ad   : > { %v625_v28 = vadd.f32 %v1117_v26, %v624_v25  ;;  %v689_v37 = vmax.f32 %v633_v30, 0.0 }
 0x1ae   : > { %v1221_v27 = vpop.f32.mrf.mxu1 }
 0x1af   : > { %v636_v29 = vadd.f32 %v1221_v27, %v1117_v26  ;;  %v687_v35 = vmax.f32 %v625_v28, 0.0 }
 0x1b0   : > { %v627_v31 = vpop.f32.mrf.mxu1 }
 0x1b1   : > { %v628_v32 = vadd.f32 %v1117_v26, %v627_v31  ;;  %v690_v33 = vmax.f32 %v636_v29, 0.0 }
 0x1b2   : > { %v1224_v34 = vpop.f32.mrf.mxu1 }
 0x1b3   : > { %v688_v36 = vmax.f32 %v628_v32, 0.0  ;;  %v704_v40 = vpack.c.bf16 %v690_v33, %v689_v37  ;;  %v649_v44 = vadd.f32 %v1224_v34, %v1117_v26 }
 0x1b4   : > { %v640_v38 = vpop.f32.mrf.mxu1 }
 0x1b5   : > { %v703_v39 = vpack.c.bf16 %v688_v36, %v687_v35  ;;  %v641_v42 = vadd.f32 %v1117_v26, %v640_v38  ;;  %v693_v51 = vmax.f32 %v649_v44, 0.0 }
 0x1b6   : > { %v1225_v41 = vpop.f32.mrf.mxu1 }
 0x1b7   : > { %v652_v43 = vadd.f32 %v1225_v41, %v1117_v26  ;;  %1250 = vmatprep.mubr.bf16.mxu0 %v703_v39  ;;  %v691_v49 = vmax.f32 %v641_v42, 0.0 }
 0x1b8   : > { %v643_v45 = vpop.f32.mrf.mxu1  ;;  %1251 = vmatmul.mubr.bf16.vlgmr.msra.gmra.mxu0 %v704_v40 }
 0x1b9   : > { %v644_v46 = vadd.f32 %v1117_v26, %v643_v45  ;;  %v694_v47 = vmax.f32 %v652_v43, 0.0 }
 0x1ba   : > { %v1228_v48 = vpop.f32.mrf.mxu1 }
 0x1bb   : > { %v692_v50 = vmax.f32 %v644_v46, 0.0  ;;  %v706_v54 = vpack.c.bf16 %v694_v47, %v693_v51  ;;  %v665_v58 = vadd.f32 %v1228_v48, %v1117_v26 }
 0x1bc   : > { %v656_v52 = vpop.f32.mrf.mxu1 }
 0x1bd   : > { %v705_v53 = vpack.c.bf16 %v692_v50, %v691_v49  ;;  %v657_v56 = vadd.f32 %v1117_v26, %v656_v52  ;;  %v697_v1 = vmax.f32 %v665_v58, 0.0 }
 0x1be   : > { %v1229_v55 = vpop.f32.mrf.mxu1 }
 0x1bf   : > { %v668_v57 = vadd.f32 %v1229_v55, %v1117_v26  ;;  %1254 = vmatprep.mubr.bf16.mxu0 %v705_v53  ;;  %v695_v63 = vmax.f32 %v657_v56, 0.0 }
 0x1c0   : > { %v659_v59 = vpop.f32.mrf.mxu1  ;;  %1255 = vmatmul.mubr.bf16.gmra.mxu0 %v706_v54 }
 0x1c1   : > { %v660_v60 = vadd.f32 %v1117_v26, %v659_v59  ;;  %v698_v61 = vmax.f32 %v668_v57, 0.0 }
 0x1c2   : > { %v1232_v62 = vpop.f32.mrf.mxu1 }
 0x1c3   : > { %v696_v0 = vmax.f32 %v660_v60, 0.0  ;;  %v708_v4 = vpack.c.bf16 %v698_v61, %v697_v1  ;;  %v681_v8 = vadd.f32 %v1232_v62, %v1117_v26 }
 0x1c4   : > { %v672_v2 = vpop.f32.mrf.mxu1 }
 0x1c5   : > { %v707_v3 = vpack.c.bf16 %v696_v0, %v695_v63  ;;  %v673_v6 = vadd.f32 %v1117_v26, %v672_v2  ;;  %v701_v14 = vmax.f32 %v681_v8, 0.0 }
 0x1c6   : > { %v1233_v5 = vpop.f32.mrf.mxu1 }
 0x1c7   : > { %v684_v7 = vadd.f32 %v1233_v5, %v1117_v26  ;;  %1258 = vmatprep.mubr.bf16.mxu0 %v707_v3  ;;  %v699_v12 = vmax.f32 %v673_v6, 0.0 }
 0x1c8   : > { %v675_v9 = vpop.f32.mrf.mxu1  ;;  %1259 = vmatmul.mubr.bf16.gmra.mxu0 %v708_v4 }
 0x1c9   : > { %v676_v10 = vadd.f32 %v1117_v26, %v675_v9  ;;  %v702_v11 = vmax.f32 %v684_v7, 0.0 }
 0x1cb   : > { %v700_v13 = vmax.f32 %v676_v10, 0.0  ;;  %v710_v16 = vpack.c.bf16 %v702_v11, %v701_v14 }
 0x1cd   : > { %v709_v15 = vpack.c.bf16 %v700_v13, %v699_v12 }
 0x1cf   : > { %1262 = vmatprep.mubr.bf16.mxu0 %v709_v15 }
 0x1d0   : > { %1263 = vmatmul.mubr.bf16.gmra.mxu0 %v710_v16 }
 0x278   : > { %v1252_v18 = vpop.f32.mrf.mxu0 }
 0x279   : > { %v825_v19 = vadd.f32 %v1252_v18, %v1438_v17 }
 0x27a   : > { %v816_v20 = vpop.f32.mrf.mxu0 }
 0x27b   : > { %v881_v21 = vmax.f32 %v825_v19, 0.0  ;;  %v817_v22 = vadd.f32 %v1438_v17, %v816_v20 }
 0x27c   : > { %v1253_v23 = vpop.f32.mrf.mxu0 }
 0x27d   : > { %v907_v24 = vrot.slane %v881_v21, 4  ;;  %v879_v25 = vmax.f32 %v817_v22, 0.0  ;;  %v828_v26 = vadd.f32 %v1253_v23, %v1438_v17 }
 0x27e   : > { %v819_v27 = vpop.f32.mrf.mxu0 }
 0x27f   : > { %v908_v28 = vmax.f32 %v881_v21, %v907_v24  ;;  %v895_v29 = vrot.slane %v879_v25, 4  ;;  %v882_v30 = vmax.f32 %v828_v26, 0.0  ;;  %v820_v31 = vadd.f32 %v1438_v17, %v819_v27 }
 0x280   : > { %v1256_v32 = vpop.f32.mrf.mxu0 }
 0x281   : > { %v909_v33 = vrot.slane %v908_v28, 2  ;;  %v896_v34 = vmax.f32 %v879_v25, %v895_v29  ;;  %v913_v35 = vrot.slane %v882_v30, 4  ;;  %v880_v36 = vmax.f32 %v820_v31, 0.0 }
 0x282   : > { %v841_v37 = vadd.f32 %v1256_v32, %v1438_v17  ;;  %v832_v38 = vpop.f32.mrf.mxu0 }
 0x283   : > { %v910_v39 = vmax.f32 %v908_v28, %v909_v33  ;;  %v897_v40 = vrot.slane %v896_v34, 2  ;;  %v914_v41 = vmax.f32 %v882_v30, %v913_v35  ;;  %v901_v42 = vrot.slane %v880_v36, 4 }
 0x284   : > { %v885_v43 = vmax.f32 %v841_v37, 0.0  ;;  %v833_v44 = vadd.f32 %v1438_v17, %v832_v38  ;;  %v1257_v45 = vpop.f32.mrf.mxu0 }
 0x285   : > { %v911_v46 = vrot.slane %v910_v39, 1  ;;  %v898_v47 = vmax.f32 %v896_v34, %v897_v40  ;;  %v915_v48 = vrot.slane %v914_v41, 2  ;;  %v902_v49 = vmax.f32 %v880_v36, %v901_v42 }
 0x286   : > { %v931_v50 = vrot.slane %v885_v43, 4  ;;  %v883_v51 = vmax.f32 %v833_v44, 0.0  ;;  %v844_v52 = vadd.f32 %v1257_v45, %v1438_v17  ;;  %v835_v53 = vpop.f32.mrf.mxu0 }
 0x287   : > { %v899_v54 = vrot.slane %v898_v47, 1  ;;  %v903_v55 = vrot.slane %v902_v49, 2  ;;  %v836_v59 = vadd.f32 %v1438_v17, %v835_v53  ;;  %v912_v61 = vmax.f32 %v910_v39, %v911_v46 }
 0x288   : > { %v932_v56 = vmax.f32 %v885_v43, %v931_v50  ;;  %v919_v57 = vrot.slane %v883_v51, 4  ;;  %v886_v58 = vmax.f32 %v844_v52, 0.0  ;;  %v1260_v60 = vpop.f32.mrf.mxu0  ;;  %v916_v62 = vmax.f32 %v914_v41, %v915_v48 }
 0x289   : > { %v904_v63 = vmax.f32 %v902_v49, %v903_v55  ;;  %v857_v0 = vadd.f32 %v1260_v60, %v1438_v17  ;;  %v884_v4 = vmax.f32 %v836_v59, 0.0  ;;  %v900_v6 = vmax.f32 %v898_v47, %v899_v54 }
 0x28a   : > { %v933_v1 = vrot.slane %v932_v56, 2  ;;  %v920_v2 = vmax.f32 %v883_v51, %v919_v57  ;;  %v937_v3 = vrot.slane %v886_v58, 4  ;;  %v848_v5 = vpop.f32.mrf.mxu0  ;;  %v917_v20 = vrot.slane %v916_v62, 1 }
 0x28b   : > { %v905_v7 = vrot.slane %v904_v63, 1  ;;  %v889_v8 = vmax.f32 %v857_v0, 0.0  ;;  %v849_v9 = vadd.f32 %v1438_v17, %v848_v5  ;;  %v925_v13 = vrot.slane %v884_v4, 4 }
 0x28c   : > { %v934_v10 = vmax.f32 %v932_v56, %v933_v1  ;;  %v921_v11 = vrot.slane %v920_v2, 2  ;;  %v938_v12 = vmax.f32 %v886_v58, %v937_v3  ;;  %v1261_v14 = vpop.f32.mrf.mxu0  ;;  %v918_v36 = vmax.f32 %v916_v62, %v917_v20 }
 0x28d   : > { %v906_v15 = vmax.f32 %v904_v63, %v905_v7  ;;  %v955_v16 = vrot.slane %v889_v8, 4  ;;  %v887_v18 = vmax.f32 %v849_v9, 0.0  ;;  %v860_v19 = vadd.f32 %v1261_v14, %v1438_v17 }
 0x28e   : > { %v922_v21 = vmax.f32 %v920_v2, %v921_v11  ;;  %v939_v22 = vrot.slane %v938_v12, 2  ;;  %v926_v23 = vmax.f32 %v884_v4, %v925_v13  ;;  %v851_v24 = vpop.f32.mrf.mxu0  ;;  %v935_v29 = vrot.slane %v934_v10, 1 }
 0x28f   : > { %v1008_v25 = vsel %vm1007_vm3, %v906_v15, %v900_v6  ;;  %v956_v26 = vmax.f32 %v889_v8, %v955_v16  ;;  %v943_v27 = vrot.slane %v887_v18, 4  ;;  %v890_v28 = vmax.f32 %v860_v19, 0.0 }
 0x290   : > { %v923_v30 = vrot.slane %v922_v21, 1  ;;  %v1264_v31 = vpop.f32.mrf.mxu0  ;;  %v1010_v32 = vsel %vm1009_vm4, %v912_v61, %v1008_v25  ;;  %v940_v33 = vmax.f32 %v938_v12, %v939_v22  ;;  %v927_v34 = vrot.slane %v926_v23, 2 }
 0x291   : > { %v944_v35 = vmax.f32 %v887_v18, %v943_v27  ;;  %v957_v37 = vrot.slane %v956_v26, 2  ;;  %v961_v38 = vrot.slane %v890_v28, 4  ;;  %v852_v39 = vadd.f32 %v1438_v17, %v851_v24 }
 0x292   : > { %v864_v40 = vpop.f32.mrf.mxu0  ;;  %v924_v41 = vmax.f32 %v922_v21, %v923_v30  ;;  %v928_v42 = vmax.f32 %v926_v23, %v927_v34  ;;  %v873_v43 = vadd.f32 %v1264_v31, %v1438_v17  ;;  %v1012_v44 = vsel %vm1011_vm5, %v918_v36, %v1010_v32 }
 0x293   : > { %v945_v45 = vrot.slane %v944_v35, 2  ;;  %v962_v46 = vmax.f32 %v890_v28, %v961_v38  ;;  %v888_v47 = vmax.f32 %v852_v39, 0.0  ;;  %v936_v49 = vmax.f32 %v934_v10, %v935_v29 }
 0x294   : > { %v1265_v48 = vpop.f32.mrf.mxu0  ;;  %v941_v50 = vrot.slane %v940_v33, 1  ;;  %v929_v51 = vrot.slane %v928_v42, 1  ;;  %v893_v52 = vmax.f32 %v873_v43, 0.0  ;;  %v958_v53 = vmax.f32 %v956_v26, %v957_v37 }
 0x295   : > { %v949_v54 = vrot.slane %v888_v47, 4  ;;  %v865_v55 = vadd.f32 %v1438_v17, %v864_v40  ;;  %v876_v56 = vadd.f32 %v1265_v48, %v1438_v17  ;;  %v1014_v58 = vsel %vm1013_vm6, %v924_v41, %v1012_v44 }
 0x296   : > { %v867_v57 = vpop.f32.mrf.mxu0  ;;  %v930_v59 = vmax.f32 %v928_v42, %v929_v51  ;;  %v963_v60 = vrot.slane %v962_v46, 2  ;;  %v979_v61 = vrot.slane %v893_v52, 4  ;;  %v946_v62 = vmax.f32 %v944_v35, %v945_v45 }
 0x297   : > { %v950_v63 = vmax.f32 %v888_v47, %v949_v54  ;;  %v891_v0 = vmax.f32 %v865_v55, 0.0  ;;  %v894_v1 = vmax.f32 %v876_v56, 0.0  ;;  %v942_v2 = vmax.f32 %v940_v33, %v941_v50 }
 0x298   : > { %v1016_v3 = vsel %vm1015_vm7, %v930_v59, %v1014_v58  ;;  %v980_v4 = vmax.f32 %v893_v52, %v979_v61  ;;  %v868_v5 = vadd.f32 %v1438_v17, %v867_v57  ;;  %v964_v10 = vmax.f32 %v962_v46, %v963_v60 }
 0x299   : > { %v1018_v6 = vsel %vm1017_vm8, %v936_v49, %v1016_v3  ;;  %v951_v7 = vrot.slane %v950_v63, 2  ;;  %v967_v8 = vrot.slane %v891_v0, 4  ;;  %v985_v11 = vrot.slane %v894_v1, 4 }
 0x29a   : > { %v1020_v9 = vsel %vm1019_vm9, %v942_v2, %v1018_v6  ;;  %v892_v12 = vmax.f32 %v868_v5, 0.0  ;;  %v947_v13 = vrot.slane %v946_v62, 1  ;;  %v981_v15 = vrot.slane %v980_v4, 2 }
 0x29b   : > { %1030 = vst [vmem:[%s1473_s13] sm:$0xff] %v1020_v9  ;;  %v952_v14 = vmax.f32 %v950_v63, %v951_v7  ;;  %v968_v16 = vmax.f32 %v891_v0, %v967_v8  ;;  %v959_v18 = vrot.slane %v958_v53, 1  ;;  %v986_v19 = vmax.f32 %v894_v1, %v985_v11 }
 0x29c   : > { %v973_v20 = vrot.slane %v892_v12, 4  ;;  %v965_v17 = vrot.slane %v964_v10, 1  ;;  %v948_v25 = vmax.f32 %v946_v62, %v947_v13  ;;  %v982_v27 = vmax.f32 %v980_v4, %v981_v15 }
 0x29d   : > { %v953_v21 = vrot.slane %v952_v14, 1  ;;  %v969_v22 = vrot.slane %v968_v16, 2  ;;  %v987_v23 = vrot.slane %v986_v19, 2  ;;  %v960_v29 = vmax.f32 %v958_v53, %v959_v18 }
 0x29e   : > { %v974_v24 = vmax.f32 %v892_v12, %v973_v20  ;;  %v966_v34 = vmax.f32 %v964_v10, %v965_v17  ;;  %v983_v37 = vrot.slane %v982_v27, 1 }
 0x29f   : > { %v954_v26 = vmax.f32 %v952_v14, %v953_v21  ;;  %v970_v28 = vmax.f32 %v968_v16, %v969_v22  ;;  %v988_v30 = vmax.f32 %v986_v19, %v987_v23 }
 0x2a0   : > { %v975_v31 = vrot.slane %v974_v24, 2  ;;  %v984_v43 = vmax.f32 %v982_v27, %v983_v37 }
 0x2a1   : > { %v1021_v32 = vsel %vm1007_vm3, %v954_v26, %v948_v25  ;;  %v971_v33 = vrot.slane %v970_v28, 1  ;;  %v989_v40 = vrot.slane %v988_v30, 1 }
 0x2a2   : > { %v1022_v35 = vsel %vm1009_vm4, %v960_v29, %v1021_v32  ;;  %v976_v36 = vmax.f32 %v974_v24, %v975_v31 }
 0x2a3   : > { %v972_v38 = vmax.f32 %v970_v28, %v971_v33  ;;  %v1023_v39 = vsel %vm1011_vm5, %v966_v34, %v1022_v35  ;;  %v990_v45 = vmax.f32 %v988_v30, %v989_v40 }
 0x2a4   : > { %v977_v41 = vrot.slane %v976_v36, 1 }
 0x2a5   : > { %v1024_v44 = vsel %vm1013_vm6, %v972_v38, %v1023_v39 }
 0x2a6   : > { %v978_v42 = vmax.f32 %v976_v36, %v977_v41 }
 0x2a8   : > { %v1025_v46 = vsel %vm1015_vm7, %v978_v42, %v1024_v44 }
 0x2a9   : > { %v1026_v47 = vsel %vm1017_vm8, %v984_v43, %v1025_v46 }
 0x2aa   : > { %v1027_v48 = vsel %vm1019_vm9, %v990_v45, %v1026_v47 }
 0x2ab   : > { %1031 = vst [vmem:[%s1473_s13 + $0x8] sm:$0xff] %v1027_v48 }
 0x2ac PF: > { %s17_s24 = sadd.s32 1, %s1308_s24  }
 0x2ad   : > { %p14_p5 = scmp.ge.s32.totalorder %s17_s24, 4  }
 0x2af   :  { %16 = sbr.rel (!%p14_p5) target bundleno = 1 (0x1), region = 78 }

// kernel: _lambda_.6
= control target key start
LH: loop header
LB: loop body
LE: loop exit
PB: predicated region body
PF: predicated region fallthrough
CT: control target
= control target key end

     0   :  { %s1089_s24 = smov 0   ;;  %s1187_s0 = inlined_call_operand.vmem [shape: bf16[128,67], index: 0, kind: input, shape index: {}]   ;;  %s1188_s1 = inlined_call_operand.vmem [shape: bf16[67,128], index: 1, kind: input, shape index: {}]   ;;  %s1189_s2 = inlined_call_operand.vmem [shape: f32[1,128], index: 2, kind: input, shape index: {}]   ;;  %s1190_s3 = inlined_call_operand.vmem [shape: bf16[128,128], index: 3, kind: input, shape index: {}]   ;;  %s1191_s4 = inlined_call_operand.vmem [shape: f32[1,128], index: 4, kind: input, shape index: {}]   ;;  %s1192_s5 = inlined_call_operand.vmem [shape: bf16[128,128], index: 5, kind: input, shape index: {}]   ;;  %s1193_s6 = inlined_call_operand.vmem [shape: f32[1,128], index: 6, kind: input, shape index: {}]   ;;  %s1194_s7 = inlined_call_operand.vmem [shape: f32[16,128], index: 7, kind: output, shape index: {}]  }
   0x1 LB: > { %s1095_s25 = sadd.s32 4294967295, %s1046_s24   ;;  %p869_p0 = scmp.ge.s32.totalorder %s1046_s24, 1  ;;  %s1046_s24 = sphi %s1089_s24, %s17_s24  }
   0x2   : > { %p238_p1 = scmp.lt.s32.totalorder %s1046_s24, 3 }
   0x4   : > { %p239_p2 = pnand %p869_p0, %p238_p1 }
   0x5   : > { %s870_s30 = sshll.u32 (!%p239_p2), %s1095_s25, 3  ;;  %p275_p4 = scmp.lt.s32.totalorder (!%p239_p2), %s1095_s25, 1 }
   0x6   : > { %242 = sbr.rel (%p239_p2) target bundleno = 675 (0x2a3), region = 48  ;;  %p270_p3 = scmp.lt.s32.totalorder (!%p239_p2), %s870_s30, 15 }
   0xb   : > { %v1015_v0 = vld [vmem:[%s1188_s1 + $0x20] ss:$0 sps:$4 sm:$0x33]   ;;  %vm364_vm0 = vcmask 1040384   ;;  %vm365_vm1 = vcmask 1041408   ;;  %v1048_v1 = vmov 65535  }
   0xc   : > { %v366_v2 = vsel %vm364_vm0, 4294967295, %v1048_v1  ;;  %v1016_v5 = vld [vmem:[%s1188_s1 + $0x18] sm:$0xff]   ;;  %s1196_s30 = smov (!%p270_p3, %s870_s30), 15  ;;  %v1025_v7 = vld [vmem:[%s1190_s3 + $0x30] sm:$0xff]   ;;  %v1026_v9 = vld [vmem:[%s1190_s3 + $0x28] sm:$0xff]   ;;  %vm351_vm2 = vcmask 547840  }
   0xd   : > { %v367_v3 = vsel %vm365_vm1, %v366_v2, 0  ;;  %v1024_v6 = vld [vmem:[%s1190_s3 + $0x38] sm:$0xff]   ;;  %v1017_v8 = vld [vmem:[%s1188_s1 + $0x10] sm:$0xff]   ;;  %s871_s14 = sshll.u32 %s1196_s30, 2  ;;  %v1018_v11 = vld [vmem:[%s1188_s1 + $0x8] sm:$0xff]   ;;  %vm796_vm3 = vcmask 1041409  }
   0xe   : > { %v369_v4 = vand.u32 %v1015_v0, %v367_v3  ;;  %958 = vmatprep.subr.bf16.mxu1 %v1024_v6  ;;  %s273_s19 = scalar_lea.vmem %s1187_s0, %s871_s14  ;;  %v1027_v12 = vld [vmem:[%s1190_s3 + $0x20] sm:$0xff]   ;;  %v1028_v14 = vld [vmem:[%s1190_s3 + $0x18] sm:$0xff]   ;;  %v1029_v18 = vld [vmem:[%s1190_s3 + $0x10] sm:$0xff]   ;;  %vm798_vm4 = vcmask 1042434   ;;  %vm800_vm5 = vcmask 1043459   ;;  %s1198_s25 = smov (!%p275_p4, %s1095_s25), 1 }
   0xf   : > { %959 = vmatpush3.bf16.msra.mxu1 %v1024_v6  ;;  %v1020_v10 = vld [vmem:[%s273_s19] sm:$0xff]   ;;  %v1021_v15 = vld [vmem:[%s273_s19 + $0x8] sm:$0xff]   ;;  %v1022_v16 = vld [vmem:[%s273_s19 + $0x10] sm:$0xff]   ;;  %vm802_vm6 = vcmask 1044484   ;;  %s872_s14 = sshll.u32 %s1198_s25, 3  ;;  %vm804_vm7 = vcmask 1045509  }
  0x10   : > { %940 = vmatprep.subr.bf16.mxu0 %v369_v4  ;;  %960 = vmatprep.subr.bf16.mxu1 %v1025_v7  ;;  %v1019_v13 = vld [vmem:[%s1188_s1] sm:$0xff]   ;;  %v1023_v17 = vld [vmem:[%s273_s19 + $0x18] sm:$0xff]   ;;  %v1030_v19 = vld [vmem:[%s1190_s3 + $0x8] sm:$0xff]   ;;  %vm806_vm8 = vcmask 1046534   ;;  %vm808_vm9 = vcmask 1047559   ;;  %s278_s17 = scalar_lea.vmem %s1194_s7, %s872_s14 }
  0x11   : > { %941 = vmatpush3.bf16.msra.mxu0 %v369_v4  ;;  %950 = vmatprep.mubr.msk.bf16.mxu0 %vm351_vm2, %v1020_v10  ;;  %v1031_v20 = vld [vmem:[%s1190_s3] sm:$0xff]   ;;  %v1032_v21 = vld [vmem:[%s1192_s5 + $0x38] sm:$0xff]   ;;  %v1033_v22 = vld [vmem:[%s1192_s5 + $0x30] sm:$0xff]  }
  0x12   : > { %942 = vmatprep.subr.bf16.mxu0 %v1016_v5  ;;  %v1034_v23 = vld [vmem:[%s1192_s5 + $0x28] sm:$0xff]   ;;  %v1035_v24 = vld [vmem:[%s1192_s5 + $0x20] sm:$0xff]   ;;  %v1036_v25 = vld [vmem:[%s1192_s5 + $0x18] sm:$0xff]  }
  0x13   : > { %961 = vmatpush3.bf16.msra.mxu1 %v1025_v7  ;;  %v873_v28 = vld [vmem:[%s1189_s2] ss:$0 sm:$0xff]  ;;  %v1037_v55 = vld [vmem:[%s1192_s5 + $0x10] sm:$0xff]   ;;  %v1038_v56 = vld [vmem:[%s1192_s5 + $0x8] sm:$0xff]  }
  0x14   : > { %962 = vmatprep.subr.bf16.mxu1 %v1026_v9  ;;  %v1039_v57 = vld [vmem:[%s1192_s5] sm:$0xff]  }
  0x15   : > { %943 = vmatpush3.bf16.msra.mxu0 %v1016_v5  ;;  %v887_v60 = vld [vmem:[%s1191_s4] ss:$0 sm:$0xff] }
  0x16   : > { %944 = vmatprep.subr.bf16.mxu0 %v1017_v8 }
  0x17   : > { %963 = vmatpush3.bf16.msra.mxu1 %v1026_v9 }
  0x18   : > { %964 = vmatprep.subr.bf16.mxu1 %v1027_v12 }
  0x19   : > { %945 = vmatpush3.bf16.msra.mxu0 %v1017_v8 }
  0x1a   : > { %946 = vmatprep.subr.bf16.mxu0 %v1018_v11 }
  0x1b   : > { %965 = vmatpush3.bf16.msra.mxu1 %v1027_v12 }
  0x1c   : > { %966 = vmatprep.subr.bf16.mxu1 %v1028_v14 }
  0x1d   : > { %947 = vmatpush3.bf16.msra.mxu0 %v1018_v11 }
  0x1e   : > { %948 = vmatprep.subr.bf16.mxu0 %v1019_v13 }
  0x1f   : > { %967 = vmatpush3.bf16.msra.mxu1 %v1028_v14 }
  0x20   : > { %968 = vmatprep.subr.bf16.mxu1 %v1029_v18 }
  0x21   : > { %949 = vmatpush3.bf16.msra.mxu0 %v1019_v13 }
  0x22   : > { %982 = vmatprep.subr.bf16.mxu0 %v1032_v21 }
  0x23   : > { %969 = vmatpush3.bf16.msra.mxu1 %v1029_v18 }
  0x24   : > { %951 = vmatmul.mubr.msk.bf16.vlgmr.msra.gmra.mxu0 %vm351_vm2, %v1021_v15  ;;  %970 = vmatprep.subr.bf16.mxu1 %v1030_v19 }
  0x25   : > { %954 = vmatprep.mubr.msk.bf16.mxu0 %vm351_vm2, %v1022_v16  ;;  %983 = vmatpush3.bf16.msra.mxu0 %v1032_v21 }
  0x26   : > { %984 = vmatprep.subr.bf16.mxu0 %v1033_v22 }
  0x27   : > { %971 = vmatpush3.bf16.msra.mxu1 %v1030_v19 }
  0x28   : > { %972 = vmatprep.subr.bf16.mxu1 %v1031_v20 }
  0x29   : > { %985 = vmatpush3.bf16.msra.mxu0 %v1033_v22 }
  0x2a   : > { %986 = vmatprep.subr.bf16.mxu0 %v1034_v23 }
  0x2b   : > { %973 = vmatpush3.bf16.msra.mxu1 %v1031_v20 }
  0x2c   : > { %955 = vmatmul.mubr.msk.bf16.gmra.mxu0 %vm351_vm2, %v1023_v17 }
  0x2d   : > { %987 = vmatpush3.bf16.msra.mxu0 %v1034_v23  ;;  %v896_v23 = vld [vmem:[%s1193_s6] ss:$0 sm:$0xff] }
  0x2e   : > { %988 = vmatprep.subr.bf16.mxu0 %v1035_v24 }
  0x31   : > { %989 = vmatpush3.bf16.msra.mxu0 %v1035_v24 }
  0x32   : > { %990 = vmatprep.subr.bf16.mxu0 %v1036_v25 }
  0x35   : > { %991 = vmatpush3.bf16.msra.mxu0 %v1036_v25 }
  0x36   : > { %992 = vmatprep.subr.bf16.mxu0 %v1037_v55 }
  0x39   : > { %993 = vmatpush3.bf16.msra.mxu0 %v1037_v55 }
  0x3a   : > { %994 = vmatprep.subr.bf16.mxu0 %v1038_v56 }
  0x3d   : > { %995 = vmatpush3.bf16.msra.mxu0 %v1038_v56 }
  0x3e   : > { %996 = vmatprep.subr.bf16.mxu0 %v1039_v57 }
  0x41   : > { %997 = vmatpush3.bf16.msra.mxu0 %v1039_v57 }
  0xe4   : > { %v952_v26 = vpop.f32.mrf.mxu0 }
  0xe5   : > { %v414_v32 = vadd.f32 %v952_v26, %v873_v28 }
  0xe6   : > { %v405_v27 = vpop.f32.mrf.mxu0 }
  0xe7   : > { %v406_v30 = vadd.f32 %v873_v28, %v405_v27  ;;  %v438_v39 = vmax.f32 %v414_v32, 0.0 }
  0xe8   : > { %v953_v29 = vpop.f32.mrf.mxu0 }
  0xe9   : > { %v417_v31 = vadd.f32 %v953_v29, %v873_v28  ;;  %v436_v37 = vmax.f32 %v406_v30, 0.0 }
  0xea   : > { %v408_v33 = vpop.f32.mrf.mxu0 }
  0xeb   : > { %v409_v34 = vadd.f32 %v873_v28, %v408_v33  ;;  %v439_v35 = vmax.f32 %v417_v31, 0.0 }
  0xec   : > { %v956_v36 = vpop.f32.mrf.mxu0 }
  0xed   : > { %v437_v38 = vmax.f32 %v409_v34, 0.0  ;;  %v445_v42 = vpack.c.bf16 %v439_v35, %v438_v39  ;;  %v430_v46 = vadd.f32 %v956_v36, %v873_v28 }
  0xee   : > { %v421_v40 = vpop.f32.mrf.mxu0 }
  0xef   : > { %v444_v41 = vpack.c.bf16 %v437_v38, %v436_v37  ;;  %v422_v44 = vadd.f32 %v873_v28, %v421_v40  ;;  %v442_v52 = vmax.f32 %v430_v46, 0.0 }
  0xf0   : > { %v957_v43 = vpop.f32.mrf.mxu0 }
  0xf1   : > { %v433_v45 = vadd.f32 %v957_v43, %v873_v28  ;;  %974 = vmatprep.mubr.bf16.mxu1 %v444_v41  ;;  %v440_v50 = vmax.f32 %v422_v44, 0.0 }
  0xf2   : > { %v424_v47 = vpop.f32.mrf.mxu0  ;;  %975 = vmatmul.mubr.bf16.vlgmr.msra.gmra.mxu1 %v445_v42 }
  0xf3   : > { %v425_v48 = vadd.f32 %v873_v28, %v424_v47  ;;  %v443_v49 = vmax.f32 %v433_v45, 0.0 }
  0xf5   : > { %v441_v51 = vmax.f32 %v425_v48, 0.0  ;;  %v447_v54 = vpack.c.bf16 %v443_v49, %v442_v52 }
  0xf7   : > { %v446_v53 = vpack.c.bf16 %v441_v51, %v440_v50 }
  0xf9   : > { %978 = vmatprep.mubr.bf16.mxu1 %v446_v53 }
  0xfa   : > { %979 = vmatmul.mubr.bf16.gmra.mxu1 %v447_v54 }
 0x1b2   : > { %v976_v58 = vpop.f32.mrf.mxu1 }
 0x1b3   : > { %v562_v0 = vadd.f32 %v976_v58, %v887_v60 }
 0x1b4   : > { %v553_v59 = vpop.f32.mrf.mxu1 }
 0x1b5   : > { %v554_v62 = vadd.f32 %v887_v60, %v553_v59  ;;  %v586_v7 = vmax.f32 %v562_v0, 0.0 }
 0x1b6   : > { %v977_v61 = vpop.f32.mrf.mxu1 }
 0x1b7   : > { %v565_v63 = vadd.f32 %v977_v61, %v887_v60  ;;  %v584_v5 = vmax.f32 %v554_v62, 0.0 }
 0x1b8   : > { %v556_v1 = vpop.f32.mrf.mxu1 }
 0x1b9   : > { %v557_v2 = vadd.f32 %v887_v60, %v556_v1  ;;  %v587_v3 = vmax.f32 %v565_v63, 0.0 }
 0x1ba   : > { %v980_v4 = vpop.f32.mrf.mxu1 }
 0x1bb   : > { %v585_v6 = vmax.f32 %v557_v2, 0.0  ;;  %v593_v10 = vpack.c.bf16 %v587_v3, %v586_v7  ;;  %v578_v14 = vadd.f32 %v980_v4, %v887_v60 }
 0x1bc   : > { %v569_v8 = vpop.f32.mrf.mxu1 }
 0x1bd   : > { %v592_v9 = vpack.c.bf16 %v585_v6, %v584_v5  ;;  %v570_v12 = vadd.f32 %v887_v60, %v569_v8  ;;  %v590_v20 = vmax.f32 %v578_v14, 0.0 }
 0x1be   : > { %v981_v11 = vpop.f32.mrf.mxu1 }
 0x1bf   : > { %v581_v13 = vadd.f32 %v981_v11, %v887_v60  ;;  %998 = vmatprep.mubr.bf16.mxu0 %v592_v9  ;;  %v588_v18 = vmax.f32 %v570_v12, 0.0 }
 0x1c0   : > { %v572_v15 = vpop.f32.mrf.mxu1  ;;  %999 = vmatmul.mubr.bf16.vlgmr.msra.gmra.mxu0 %v593_v10 }
 0x1c1   : > { %v573_v16 = vadd.f32 %v887_v60, %v572_v15  ;;  %v591_v17 = vmax.f32 %v581_v13, 0.0 }
 0x1c3   : > { %v589_v19 = vmax.f32 %v573_v16, 0.0  ;;  %v595_v22 = vpack.c.bf16 %v591_v17, %v590_v20 }
 0x1c5   : > { %v594_v21 = vpack.c.bf16 %v589_v19, %v588_v18 }
 0x1c7   : > { %1002 = vmatprep.mubr.bf16.mxu0 %v594_v21 }
 0x1c8   : > { %1003 = vmatmul.mubr.bf16.gmra.mxu0 %v595_v22 }
 0x280   : > { %v1000_v24 = vpop.f32.mrf.mxu0 }
 0x281   : > { %v710_v25 = vadd.f32 %v1000_v24, %v896_v23 }
 0x282   : > { %v701_v26 = vpop.f32.mrf.mxu0 }
 0x283   : > { %v734_v27 = vmax.f32 %v710_v25, 0.0  ;;  %v702_v28 = vadd.f32 %v896_v23, %v701_v26 }
 0x284   : > { %v1001_v29 = vpop.f32.mrf.mxu0 }
 0x285   : > { %v752_v30 = vrot.slane %v734_v27, 4  ;;  %v732_v31 = vmax.f32 %v702_v28, 0.0  ;;  %v713_v32 = vadd.f32 %v1001_v29, %v896_v23 }
 0x286   : > { %v704_v33 = vpop.f32.mrf.mxu0 }
 0x287   : > { %v753_v34 = vmax.f32 %v734_v27, %v752_v30  ;;  %v740_v35 = vrot.slane %v732_v31, 4  ;;  %v735_v36 = vmax.f32 %v713_v32, 0.0  ;;  %v705_v37 = vadd.f32 %v896_v23, %v704_v33 }
 0x288   : > { %v1004_v38 = vpop.f32.mrf.mxu0 }
 0x289   : > { %v741_v39 = vmax.f32 %v732_v31, %v740_v35  ;;  %v758_v40 = vrot.slane %v735_v36, 4  ;;  %v733_v41 = vmax.f32 %v705_v37, 0.0  ;;  %v726_v42 = vadd.f32 %v1004_v38, %v896_v23 }
 0x28a   : > { %v717_v43 = vpop.f32.mrf.mxu0  ;;  %v754_v44 = vrot.slane %v753_v34, 2 }
 0x28b   : > { %v742_v45 = vrot.slane %v741_v39, 2  ;;  %v759_v46 = vmax.f32 %v735_v36, %v758_v40  ;;  %v746_v47 = vrot.slane %v733_v41, 4  ;;  %v738_v48 = vmax.f32 %v726_v42, 0.0 }
 0x28c   : > { %v718_v49 = vadd.f32 %v896_v23, %v717_v43  ;;  %v1005_v50 = vpop.f32.mrf.mxu0  ;;  %v755_v57 = vmax.f32 %v753_v34, %v754_v44 }
 0x28d   : > { %v743_v51 = vmax.f32 %v741_v39, %v742_v45  ;;  %v747_v52 = vmax.f32 %v733_v41, %v746_v47  ;;  %v776_v53 = vrot.slane %v738_v48, 4  ;;  %v729_v55 = vadd.f32 %v1005_v50, %v896_v23 }
 0x28e   : > { %v736_v54 = vmax.f32 %v718_v49, 0.0  ;;  %v720_v56 = vpop.f32.mrf.mxu0  ;;  %v760_v58 = vrot.slane %v759_v46, 2  ;;  %v756_v5 = vrot.slane %v755_v57, 1 }
 0x28f   : > { %v748_v59 = vrot.slane %v747_v52, 2  ;;  %v777_v60 = vmax.f32 %v738_v48, %v776_v53  ;;  %v739_v62 = vmax.f32 %v729_v55, 0.0  ;;  %v721_v63 = vadd.f32 %v896_v23, %v720_v56 }
 0x290   : > { %v764_v61 = vrot.slane %v736_v54, 4  ;;  %v744_v0 = vrot.slane %v743_v51, 1  ;;  %v761_v6 = vmax.f32 %v759_v46, %v760_v58  ;;  %v757_v19 = vmax.f32 %v755_v57, %v756_v5 }
 0x291   : > { %v749_v1 = vmax.f32 %v747_v52, %v748_v59  ;;  %v782_v3 = vrot.slane %v739_v62, 4  ;;  %v737_v4 = vmax.f32 %v721_v63, 0.0  ;;  %v778_v8 = vrot.slane %v777_v60, 2 }
 0x292   : > { %v765_v2 = vmax.f32 %v736_v54, %v764_v61  ;;  %v745_v12 = vmax.f32 %v743_v51, %v744_v0  ;;  %v762_v17 = vrot.slane %v761_v6, 1 }
 0x293   : > { %v750_v7 = vrot.slane %v749_v1, 1  ;;  %v783_v10 = vmax.f32 %v739_v62, %v782_v3  ;;  %v770_v11 = vrot.slane %v737_v4, 4  ;;  %v779_v20 = vmax.f32 %v777_v60, %v778_v8 }
 0x294   : > { %v766_v9 = vrot.slane %v765_v2, 2  ;;  %v763_v25 = vmax.f32 %v761_v6, %v762_v17 }
 0x295   : > { %v751_v13 = vmax.f32 %v749_v1, %v750_v7  ;;  %v784_v15 = vrot.slane %v783_v10, 2  ;;  %v771_v16 = vmax.f32 %v737_v4, %v770_v11  ;;  %v780_v27 = vrot.slane %v779_v20, 1 }
 0x296   : > { %v767_v14 = vmax.f32 %v765_v2, %v766_v9 }
 0x297   : > { %v797_v18 = vsel %vm796_vm3, %v751_v13, %v745_v12  ;;  %v785_v22 = vmax.f32 %v783_v10, %v784_v15  ;;  %v772_v23 = vrot.slane %v771_v16, 2  ;;  %v781_v33 = vmax.f32 %v779_v20, %v780_v27 }
 0x298   : > { %v768_v21 = vrot.slane %v767_v14, 1  ;;  %v799_v24 = vsel %vm798_vm4, %v757_v19, %v797_v18 }
 0x299   : > { %v773_v26 = vmax.f32 %v771_v16, %v772_v23  ;;  %v801_v29 = vsel %vm800_vm5, %v763_v25, %v799_v24  ;;  %v786_v30 = vrot.slane %v785_v22, 1 }
 0x29a   : > { %v769_v28 = vmax.f32 %v767_v14, %v768_v21 }
 0x29b   : > { %v774_v31 = vrot.slane %v773_v26, 1  ;;  %v787_v35 = vmax.f32 %v785_v22, %v786_v30 }
 0x29c   : > { %v803_v34 = vsel %vm802_vm6, %v769_v28, %v801_v29 }
 0x29d   : > { %v775_v32 = vmax.f32 %v773_v26, %v774_v31 }
 0x29f   : > { %v805_v36 = vsel %vm804_vm7, %v775_v32, %v803_v34 }
 0x2a0   : > { %v807_v37 = vsel %vm806_vm8, %v781_v33, %v805_v36 }
 0x2a1   : > { %v809_v38 = vsel %vm808_vm9, %v787_v35, %v807_v37 }
 0x2a2   : > { %811 = vst [vmem:[%s278_s17] sm:$0xff] %v809_v38 }
 0x2a3 PF: > { %s17_s24 = sadd.s32 1, %s1046_s24  }
 0x2a4   : > { %p14_p5 = scmp.ge.s32.totalorder %s17_s24, 4  }
 0x2a6   :  { %16 = sbr.rel (!%p14_p5) target bundleno = 1 (0x1), region = 78 }

// kernel: _lambda_.7
= control target key start
LH: loop header
LB: loop body
LE: loop exit
PB: predicated region body
PF: predicated region fallthrough
CT: control target
= control target key end

     0   :  { %s88_s0 = inlined_call_operand.vmem [shape: f32[2,8,128], index: 0, kind: input, shape index: {}]   ;;  %s89_s1 = inlined_call_operand.hbm [shape: f32[2,128], index: 1, kind: output, shape index: {}]  }
   0x1   :  { %v9_v0 = vld [vmem:[%s88_s0] sm:$0xff]  ;;  %v10_v1 = vld [vmem:[%s88_s0 + $0x8] sm:$0xff] }
   0x2   :  { %6 = vsyncpa [#allocation3], 0  ;;  %v11_v2 = vrot.slane %v9_v0, 4  ;;  %v17_v3 = vrot.slane %v10_v1, 4  ;;  %s68_s10 = smov [#allocation2]   ;;  %vm27_vm0 = vcmask 1041409  }
   0x3   :  { %s37_s11 = sshll.u32 %s68_s10, 4  ;;  %s38_s11 = int_to_ptr.vmem [resolvable:$true] %s37_s11 }
   0x4   :  { %v12_v4 = vadd.f32 %v11_v2, %v9_v0  ;;  %v18_v5 = vadd.f32 %v17_v3, %v10_v1  ;;  %s46_s0 = scalar_lea.vmem %s38_s11, 32  ;;  %p51_p1 = scmp.lt.s32.totalorder %s38_s11, %s38_s11 }
   0x5   :  { %p47_p0 = scmp.ne.s32.totalorder %s38_s11, %s46_s0  ;;  %p52_p2 = scmp.lt.s32.totalorder %s46_s0, %s46_s0 }
   0x6   :  { %v13_v6 = vrot.slane %v12_v4, 2  ;;  %v19_v7 = vrot.slane %v18_v5, 2 }
   0x7   :  { %p53_p3 = por %p52_p2, %p51_p1 }
   0x8   :  { %v14_v8 = vadd.f32 %v13_v6, %v12_v4  ;;  %v20_v9 = vadd.f32 %v19_v7, %v18_v5 }
   0x9   :  { %p54_p4 = pnand %p53_p3, %p47_p0 }
   0xa   :  { %v15_v10 = vrot.slane %v14_v8, 1  ;;  %v21_v11 = vrot.slane %v20_v9, 1 }
   0xc   :  { %v16_v12 = vadd.f32 %v15_v10, %v14_v8  ;;  %v22_v13 = vadd.f32 %v21_v11, %v20_v9 }
   0xe   :  { %v23_v14 = vmul.f32 0.125, %v16_v12  ;;  %v24_v15 = vmul.f32 0.125, %v22_v13 }
  0x10   :  { %v28_v16 = vsel %vm27_vm0, %v24_v15, %v23_v14 }
  0x11   :  { %30 = vst [vmem:[#allocation2] sm:$0x3] %v28_v16 }
  0x12   :  { %57 = shalt.err (!%p54_p4)
}
  0x13   :  { %40 = dma.vmem_to_hbm [thread:$0]  %s38_s11, 32, %s89_s1, [#allocation3]  }
  0x14   :  { %66 = dma.done.wait [#allocation3], 32  }
  0x15   :  { %67 = vsyncadd [#allocation3], 4294967264 }
  0x16   :  { %44 = vsyncpa [#allocation3], 1 }

</bundles_post_ra>
